<compile_context>
chip_gen: v5e
topology: v5e:2x2
jax: 0.10.0
libtpu: 0.0.40
codegen_flags: <defaults>
</compile_context>

<pallas_src>
import jax
import jax.numpy as jnp
from jax.experimental import pallas as pl
from jax.experimental.pallas import tpu as pltpu

IMG_FEAT = 2048   # resnet50 pooled feature dim
TXT_FEAT = 768    # bert-base-uncased hidden size
HIDDEN   = 1024   # fc1 output dim
TK       = 512    # K tile over the fc1 image-half reduction axis (2048 / 512 = 4 steps)


def vqa_head_kernel(img_ref, cls_ref, w1i_ref, w1t_ref, b1_ref, w2_ref, b2_ref,
                    out_ref, acc_ref):
    k = pl.program_id(0)

    @pl.when(k == 0)
    def _():
        # Fold the fc1 bias into the accumulator init.
        acc_ref[...] = jnp.broadcast_to(b1_ref[...], acc_ref.shape).astype(jnp.float32)

    # Partial fc1: image half of the concatenated input, K-tiled (bf16 in, f32 acc).
    acc_ref[...] += jnp.dot(img_ref[...], w1i_ref[...],
                            preferred_element_type=jnp.float32)

    @pl.when(k == pl.num_programs(0) - 1)
    def _():
        # Remaining fc1 contribution from the BERT CLS features (text half of W1).
        h = acc_ref[...] + jnp.dot(cls_ref[...], w1t_ref[...],
                                   preferred_element_type=jnp.float32)
        # dropout(p=0.5): identity in eval mode (validation / trained-model inference).
        out = jnp.dot(h.astype(w2_ref.dtype), w2_ref[...],
                      preferred_element_type=jnp.float32) + b2_ref[...]
        out_ref[...] = out.astype(out_ref.dtype)


def vqa_head(image_features, last_hidden_state, params, num_answers):
    """image_features: [B, 2048] f32; last_hidden_state: [B, S, 768] f32."""
    w1i, w1t, b1, w2p, b2p = params
    B = image_features.shape[0]
    n_pad = w2p.shape[1]                 # fc2 out dim padded to a multiple of 128 lanes
    n_k = IMG_FEAT // TK                 # fc1 image-half reduction steps

    # Wrapper glue (tiny vs the MiB-scale weight traffic): CLS extraction + bf16 cast.
    img16 = image_features.astype(jnp.bfloat16)
    cls16 = last_hidden_state[:, 0, :].astype(jnp.bfloat16)

    out_pad = pl.pallas_call(
        vqa_head_kernel,
        out_shape=jax.ShapeDtypeStruct((B, n_pad), jnp.float32),
        grid=(n_k,),
        in_specs=[
            pl.BlockSpec((B, TK), lambda k: (0, k)),             # image activations (K-tiled)
            pl.BlockSpec((B, TXT_FEAT), lambda k: (0, 0)),       # CLS activations (resident)
            pl.BlockSpec((TK, HIDDEN), lambda k: (k, 0)),        # W1 image half (K-tiled)
            pl.BlockSpec((TXT_FEAT, HIDDEN), lambda k: (0, 0)),  # W1 text half (resident)
            pl.BlockSpec((1, HIDDEN), lambda k: (0, 0)),         # fc1 bias
            pl.BlockSpec((HIDDEN, n_pad), lambda k: (0, 0)),     # fc2 weights (lane-padded)
            pl.BlockSpec((1, n_pad), lambda k: (0, 0)),          # fc2 bias (lane-padded)
        ],
        out_specs=pl.BlockSpec((B, n_pad), lambda k: (0, 0)),
        scratch_shapes=[pltpu.VMEM((B, HIDDEN), jnp.float32)],   # fc1 accumulator
        compiler_params=pltpu.CompilerParams(
            dimension_semantics=("arbitrary",)),                 # reduction axis
    )(img16, cls16, w1i, w1t, b1, w2p, b2p)

    return out_pad[:, :num_answers]


def init_params(key, num_answers):
    k1, k2, k3, k4 = jax.random.split(key, 4)
    n_pad = ((num_answers + 127) // 128) * 128
    # fc1: Linear(2048 + 768, 1024) -> split into image / text halves of W1 (stored bf16).
    w1i = (jax.random.normal(k1, (IMG_FEAT, HIDDEN), jnp.float32) * 0.02).astype(jnp.bfloat16)
    w1t = (jax.random.normal(k2, (TXT_FEAT, HIDDEN), jnp.float32) * 0.02).astype(jnp.bfloat16)
    b1  = jnp.full((1, HIDDEN), 0.01, jnp.float32)
    # fc2: Linear(1024, num_answers), output dim zero-padded to a multiple of 128 lanes.
    w2  = (jax.random.normal(k3, (HIDDEN, num_answers), jnp.float32) * 0.02).astype(jnp.bfloat16)
    b2  = jax.random.normal(k4, (1, num_answers), jnp.float32) * 0.01
    w2p = jnp.zeros((HIDDEN, n_pad), jnp.bfloat16).at[:, :num_answers].set(w2)
    b2p = jnp.zeros((1, n_pad), jnp.float32).at[:, :num_answers].set(b2)
    return (w1i, w1t, b1, w2p, b2p)


def reference(image_features, last_hidden_state, params, num_answers):
    """Plain-JAX reference mirroring the PyTorch forward (eval mode, same bf16 casts)."""
    w1i, w1t, b1, w2p, b2p = params
    img16 = image_features.astype(jnp.bfloat16)
    cls16 = last_hidden_state[:, 0, :].astype(jnp.bfloat16)
    h = (jnp.dot(img16, w1i, preferred_element_type=jnp.float32)
         + jnp.dot(cls16, w1t, preferred_element_type=jnp.float32)
         + b1)
    out = jnp.dot(h.astype(jnp.bfloat16), w2p, preferred_element_type=jnp.float32) + b2p
    return out[:, :num_answers]


if __name__ == "__main__":
    B, S, NUM_ANSWERS = 2, 8, 32
    key = jax.random.PRNGKey(0)
    k_img, k_txt, k_param = jax.random.split(key, 3)

    # Backbone outputs (see TODO(synk) above): pretrained encoders are not translated.
    image_features    = jax.random.normal(k_img, (B, IMG_FEAT), jnp.float32)
    last_hidden_state = jax.random.normal(k_txt, (B, S, TXT_FEAT), jnp.float32)

    params = init_params(k_param, NUM_ANSWERS)

    out = vqa_head(image_features, last_hidden_state, params, NUM_ANSWERS)
    out = jax.block_until_ready(out)

    ref = reference(image_features, last_hidden_state, params, NUM_ANSWERS)
    assert out.shape == (B, NUM_ANSWERS)
    assert jnp.allclose(out, ref, atol=5e-3, rtol=5e-3), "Pallas output mismatch vs reference"

    print("KERNEL_OK")
</pallas_src>

<mosaic_0001>
module attributes {stable_mosaic.version = 11 : i64} {
  func.func @vqa_head_kernel(%arg0: i32, %arg1: memref<2x512xbf16, #tpu.memory_space<vmem>>, %arg2: memref<2x768xbf16, #tpu.memory_space<vmem>>, %arg3: memref<512x1024xbf16, #tpu.memory_space<vmem>>, %arg4: memref<768x1024xbf16, #tpu.memory_space<vmem>>, %arg5: memref<1x1024xf32, #tpu.memory_space<vmem>>, %arg6: memref<1024x128xbf16, #tpu.memory_space<vmem>>, %arg7: memref<1x128xf32, #tpu.memory_space<vmem>>, %arg8: memref<2x128xf32, #tpu.memory_space<vmem>>, %arg9: memref<2x1024xf32, #tpu.memory_space<vmem>>) attributes {dimension_semantics = [#tpu.dimension_semantics<arbitrary>], iteration_bounds = array<i64: 4>, scalar_prefetch = 0 : i64, scratch_operands = 1 : i64, tpu.core_type = #tpu.core_type<tc>, window_params = [{transform_indices = @transform_0, window_bounds = array<i64: 2, 512>}, {pipeline_mode = #tpu.pipeline_mode<synchronous>, transform_indices = @transform_1, window_bounds = array<i64: 2, 768>}, {transform_indices = @transform_2, window_bounds = array<i64: 512, 1024>}, {pipeline_mode = #tpu.pipeline_mode<synchronous>, transform_indices = @transform_3, window_bounds = array<i64: 768, 1024>}, {pipeline_mode = #tpu.pipeline_mode<synchronous>, transform_indices = @transform_4, window_bounds = array<i64: 1, 1024>}, {pipeline_mode = #tpu.pipeline_mode<synchronous>, transform_indices = @transform_5, window_bounds = array<i64: 1024, 128>}, {pipeline_mode = #tpu.pipeline_mode<synchronous>, transform_indices = @transform_6, window_bounds = array<i64: 1, 128>}, {pipeline_mode = #tpu.pipeline_mode<synchronous>, transform_indices = @transform_7, window_bounds = array<i64: 2, 128>}]} {
    %c0_i32 = arith.constant 0 : i32
    %0 = arith.cmpi eq, %arg0, %c0_i32 : i32
    %1 = arith.extui %0 : i1 to i32
    %c0_i32_0 = arith.constant 0 : i32
    %2 = arith.cmpi ne, %1, %c0_i32_0 : i32
    scf.if %2 {
      %c0_9 = arith.constant 0 : index
      %c0_10 = arith.constant 0 : index
      %12 = vector.load %arg5[%c0_9, %c0_10] : memref<1x1024xf32, #tpu.memory_space<vmem>>, vector<1x1024xf32>
      %13 = vector.shape_cast %12 : vector<1x1024xf32> to vector<1x1024xf32>
      %14 = vector.broadcast %13 : vector<1x1024xf32> to vector<2x1024xf32>
      %c0_11 = arith.constant 0 : index
      %c0_12 = arith.constant 0 : index
      %15 = vector.load %arg9[%c0_11, %c0_12] : memref<2x1024xf32, #tpu.memory_space<vmem>>, vector<2x1024xf32>
      tpu.vector_store %arg9[%c0_11, %c0_12], %14 {strides = array<i32>} : memref<2x1024xf32, #tpu.memory_space<vmem>>, vector<2x1024xf32>,
    } else {
    }
    %c0 = arith.constant 0 : index
    %c0_1 = arith.constant 0 : index
    %3 = vector.load %arg9[%c0, %c0_1] : memref<2x1024xf32, #tpu.memory_space<vmem>>, vector<2x1024xf32>
    %c0_2 = arith.constant 0 : index
    %c0_3 = arith.constant 0 : index
    %4 = vector.load %arg1[%c0_2, %c0_3] : memref<2x512xbf16, #tpu.memory_space<vmem>>, vector<2x512xbf16>
    %c0_4 = arith.constant 0 : index
    %c0_5 = arith.constant 0 : index
    %5 = vector.load %arg3[%c0_4, %c0_5] : memref<512x1024xbf16, #tpu.memory_space<vmem>>, vector<512x1024xbf16>
    %cst = arith.constant dense<0.000000e+00> : vector<2x1024xf32>
    %6 = tpu.matmul %4, %5, %cst {dimension_numbers = #tpu.dot_dimension_numbers<[1], [0], [0], [1], [0, 0, 1, 1], [], []>} : vector<2x512xbf16>, vector<512x1024xbf16>, vector<2x1024xf32> -> vector<2x1024xf32>
    %7 = arith.addf %3, %6 : vector<2x1024xf32>
    %c0_6 = arith.constant 0 : index
    %c0_7 = arith.constant 0 : index
    %8 = vector.load %arg9[%c0_6, %c0_7] : memref<2x1024xf32, #tpu.memory_space<vmem>>, vector<2x1024xf32>
    tpu.vector_store %arg9[%c0_6, %c0_7], %7 {strides = array<i32>} : memref<2x1024xf32, #tpu.memory_space<vmem>>, vector<2x1024xf32>,
    %c3_i32 = arith.constant 3 : i32
    %9 = arith.cmpi eq, %arg0, %c3_i32 : i32
    %10 = arith.extui %9 : i1 to i32
    %c0_i32_8 = arith.constant 0 : i32
    %11 = arith.cmpi ne, %10, %c0_i32_8 : i32
    scf.if %11 {
      %c0_9 = arith.constant 0 : index
      %c0_10 = arith.constant 0 : index
      %12 = vector.load %arg9[%c0_9, %c0_10] : memref<2x1024xf32, #tpu.memory_space<vmem>>, vector<2x1024xf32>
      %c0_11 = arith.constant 0 : index
      %c0_12 = arith.constant 0 : index
      %13 = vector.load %arg2[%c0_11, %c0_12] : memref<2x768xbf16, #tpu.memory_space<vmem>>, vector<2x768xbf16>
      %c0_13 = arith.constant 0 : index
      %c0_14 = arith.constant 0 : index
      %14 = vector.load %arg4[%c0_13, %c0_14] : memref<768x1024xbf16, #tpu.memory_space<vmem>>, vector<768x1024xbf16>
      %cst_15 = arith.constant dense<0.000000e+00> : vector<2x1024xf32>
      %15 = tpu.matmul %13, %14, %cst_15 {dimension_numbers = #tpu.dot_dimension_numbers<[1], [0], [0], [1], [0, 0, 1, 1], [], []>} : vector<2x768xbf16>, vector<768x1024xbf16>, vector<2x1024xf32> -> vector<2x1024xf32>
      %16 = arith.addf %12, %15 : vector<2x1024xf32>
      %17 = arith.truncf %16 : vector<2x1024xf32> to vector<2x1024xbf16>
      %c0_16 = arith.constant 0 : index
      %c0_17 = arith.constant 0 : index
      %18 = vector.load %arg6[%c0_16, %c0_17] : memref<1024x128xbf16, #tpu.memory_space<vmem>>, vector<1024x128xbf16>
      %cst_18 = arith.constant dense<0.000000e+00> : vector<2x128xf32>
      %19 = tpu.matmul %17, %18, %cst_18 {dimension_numbers = #tpu.dot_dimension_numbers<[1], [0], [0], [1], [0, 0, 1, 1], [], []>} : vector<2x1024xbf16>, vector<1024x128xbf16>, vector<2x128xf32> -> vector<2x128xf32>
      %c0_19 = arith.constant 0 : index
      %c0_20 = arith.constant 0 : index
      %20 = vector.load %arg7[%c0_19, %c0_20] : memref<1x128xf32, #tpu.memory_space<vmem>>, vector<1x128xf32>
      %21 = vector.broadcast %20 : vector<1x128xf32> to vector<2x128xf32>
      %22 = arith.addf %19, %21 : vector<2x128xf32>
      %c0_21 = arith.constant 0 : index
      %c0_22 = arith.constant 0 : index
      %23 = vector.load %arg8[%c0_21, %c0_22] : memref<2x128xf32, #tpu.memory_space<vmem>>, vector<2x128xf32>
      tpu.vector_store %arg8[%c0_21, %c0_22], %22 {strides = array<i32>} : memref<2x128xf32, #tpu.memory_space<vmem>>, vector<2x128xf32>,
    } else {
    }
    return
  }
  func.func @transform_0(%arg0: i32) -> (i32, i32) {
    %c0_i32 = arith.constant 0 : i32
    %c0_i32_0 = arith.constant 0 : i32
    return %c0_i32, %arg0 : i32, i32
  }
  func.func @transform_1(%arg0: i32) -> (i32, i32) {
    %c0_i32 = arith.constant 0 : i32
    %c0_i32_0 = arith.constant 0 : i32
    %c0_i32_1 = arith.constant 0 : i32
    return %c0_i32, %c0_i32_0 : i32, i32
  }
  func.func @transform_2(%arg0: i32) -> (i32, i32) {
    %c0_i32 = arith.constant 0 : i32
    %c0_i32_0 = arith.constant 0 : i32
    return %arg0, %c0_i32 : i32, i32
  }
  func.func @transform_3(%arg0: i32) -> (i32, i32) {
    %c0_i32 = arith.constant 0 : i32
    %c0_i32_0 = arith.constant 0 : i32
    %c0_i32_1 = arith.constant 0 : i32
    return %c0_i32, %c0_i32_0 : i32, i32
  }
  func.func @transform_4(%arg0: i32) -> (i32, i32) {
    %c0_i32 = arith.constant 0 : i32
    %c0_i32_0 = arith.constant 0 : i32
    %c0_i32_1 = arith.constant 0 : i32
    return %c0_i32, %c0_i32_0 : i32, i32
  }
  func.func @transform_5(%arg0: i32) -> (i32, i32) {
    %c0_i32 = arith.constant 0 : i32
    %c0_i32_0 = arith.constant 0 : i32
    %c0_i32_1 = arith.constant 0 : i32
    return %c0_i32, %c0_i32_0 : i32, i32
  }
  func.func @transform_6(%arg0: i32) -> (i32, i32) {
    %c0_i32 = arith.constant 0 : i32
    %c0_i32_0 = arith.constant 0 : i32
    %c0_i32_1 = arith.constant 0 : i32
    return %c0_i32, %c0_i32_0 : i32, i32
  }
  func.func @transform_7(%arg0: i32) -> (i32, i32) {
    %c0_i32 = arith.constant 0 : i32
    %c0_i32_0 = arith.constant 0 : i32
    %c0_i32_1 = arith.constant 0 : i32
    return %c0_i32, %c0_i32_0 : i32, i32
  }
}

</mosaic_0001>

<bundles_post_ra>
// kernel: tpu_custom_call.1
= control target key start
LH: loop header
LB: loop body
LE: loop exit
PB: predicated region body
PF: predicated region fallthrough
CT: control target
= control target key end

     0   :  { %s11137_s0 = inlined_call_operand.hbm [shape: bf16[2,2048], index: 0, kind: input, shape index: {}]   ;;  %s11138_s1 = inlined_call_operand.hbm [shape: bf16[2,768], index: 1, kind: input, shape index: {}]   ;;  %s11139_s2 = inlined_call_operand.hbm [shape: bf16[2048,1024], index: 2, kind: input, shape index: {}]   ;;  %s11140_s3 = inlined_call_operand.hbm [shape: bf16[768,1024], index: 3, kind: input, shape index: {}]   ;;  %s11141_s4 = inlined_call_operand.hbm [shape: f32[1,1024], index: 4, kind: input, shape index: {}]   ;;  %s11142_s5 = inlined_call_operand.hbm [shape: bf16[1024,128], index: 5, kind: input, shape index: {}]   ;;  %s11143_s6 = inlined_call_operand.hbm [shape: f32[1,128], index: 6, kind: input, shape index: {}]   ;;  %s11144_s7 = inlined_call_operand.hbm [shape: f32[2,128], index: 7, kind: output, shape index: {}]  }
   0x1   :  { %11148 = sst [smem:[#allocation24_spill]] %s11138_s1 }
   0x2   :  { %11149 = sst [smem:[#allocation25_spill]] %s11141_s4 }
   0x3   :  { %12 = vsyncpa [#allocation4], 0 }
   0x4   :  { %14 = vsyncpa [#allocation4 + $0x1], 0 }
   0x5   :  { %15 = vsyncpa [#allocation7], 0 }
   0x6   :  { %16 = vsyncpa [#allocation11], 0 }
   0x7   :  { %17 = vsyncpa [#allocation14], 0 }
   0x8   :  { %18 = vsyncpa [#allocation5], 0  ;;  %s10199_s24 = smov 0   ;;  %s10201_s25 = smov 0  }
   0x9   :  { %s10203_s26 = smov 0   ;;  %s10205_s27 = smov 0  }
   0xa LB: > { %s11150_s1 = sld [smem:[#allocation24_spill]]  ;;  %s10223_s8 = sadd.s32 4294967295, %s10147_s27   ;;  %s10147_s27 = sphi %s10205_s27, %s11164_s27   ;;  %s10143_s26 = sphi %s10203_s26, %s11163_s26   ;;  %s10139_s25 = sphi %s10201_s25, %s11162_s25   ;;  %s10135_s24 = sphi %s10199_s24, %s11161_s24  }
   0xb   : > { %p6181_p0 = scmp.ge.s32.totalorder %s10147_s27, 1  ;;  %p45_p1 = scmp.eq.s32.totalorder %s10223_s8, 0 }
   0xc   : > { %p207_p2 = scmp.lt.s32.totalorder %s10147_s27, 5  ;;  %p6182_p3 = scmp.ne.s32.totalorder %s10223_s8, 0 }
   0xd   : > { %s10149_s10 = smov [#allocation6]   ;;  %s11152_s4 = sld [smem:[#allocation25_spill]] }
   0xe   : > { %p10229_p4 = pnand %p6181_p0, %p207_p2  ;;  %s221_s11 = sshll.u32 %s10149_s10, 4  ;;  %s222_s11 = int_to_ptr.vmem [resolvable:$true] %s221_s11 }
   0xf   : > { %s10150_s16 = smov [#allocation10]   ;;  %s10249_s18 = sadd.s32 1, %s10147_s27  }
  0x10   : > { %s219_s30 = sshll.u32 %s11150_s1, 4  ;;  %p9758_p5 = pneg %p10229_p4  ;;  %s220_s30 = int_to_ptr.hbm [resolvable:$true] %s219_s30 }
  0x11   : > { %s247_s17 = sshll.u32 %s10150_s16, 4  ;;  %s31_s19 = sadd.s32 1, %s10143_s26  ;;  %s248_s17 = int_to_ptr.vmem [resolvable:$true] %s247_s17 }
  0x12   : > { %p10240_p6 = pnand %p9758_p5, %p45_p1  ;;  %s28_s20 = ssub.s32 %s10147_s27, %s10249_s18 }
  0x13   : > { %s245_s14 = sshll.u32 %s11152_s4, 4  ;;  %p38_p7 = scmp.ne.s32.totalorder %s10143_s26, %s10139_s25  ;;  %s246_s14 = int_to_ptr.hbm [resolvable:$true] %s245_s14 }
  0x14   : > { %9761 = dma.hbm_to_vmem [thread:$0]  (!%p10240_p6), %s220_s30, 96, %s222_s11, [#allocation7]  }
  0x15   : > { %9767 = dma.hbm_to_vmem [thread:$0]  (!%p10240_p6), %s246_s14, 128, %s248_s17, [#allocation11]  }
  0x16   : > { %p29_p8 = scmp.eq.s32.totalorder %s28_s20, 0  ;;  %p39_p9 = scmp.eq.s32.totalorder %s10147_s27, 0 }
  0x17   : > { %p44_p10 = scmp.ne.s32.totalorder %s10139_s25, %s10135_s24  ;;  %p9786_p11 = scmp.lt.s32.totalorder %s10147_s27, 4 }
  0x18   : > { %s10261_s21 = scalar_select %p29_p8, %s10143_s26, %s31_s19  }
  0x19   : > { %p40_p12 = por %p39_p9, %p38_p7  ;;  %p10265_p13 = por %p45_p1, %p44_p10 }
  0x1a   : > { %s284_s23 = sand.u32 1, %s10147_s27   ;;  %s286_s28 = sand.u32 1, %s10143_s26  }
  0x1b   : > { %s6188_s29 = sshll.u32 %s286_s28, 2  ;;  %s6189_s30 = sshll.u32 %s10147_s27, 2 }
  0x1c   : > { %s292_s12 = scalar_lea.hbm %s11137_s0, %s6189_s30  ;;  %s288_s13 = scalar_lea.vmem [#allocation3], %s6188_s29 }
  0x1d   : > { %s296_s14 = sshll.u32 %s288_s13, 4  ;;  %s294_s24 = sshll.u32 %s292_s12, 4  ;;  %s297_s14 = int_to_ptr.vmem [resolvable:$true] %s296_s14  ;;  %s295_s24 = int_to_ptr.hbm [resolvable:$true] %s294_s24 }
  0x1e   : > { %p10277_p0 = pnand %p9786_p11, %p40_p12  ;;  %s6190_s17 = sshll.u32 %s286_s28, 11 }
  0x1f   : > { %s230_s1 = sshll.u32 %s11140_s3, 4  ;;  %s10284_s4 = scalar_lea.sflag [#allocation4], %s284_s23  ;;  %s231_s1 = int_to_ptr.hbm [resolvable:$true] %s230_s1 }
  0x20   : > { %s9911_s30 = sshra.s32 %s295_s24, 4  ;;  %p9915_p5 = pneg %p10277_p0  ;;  %s9912_s30 = int_to_ptr.hbm [resolvable:$true] %s9911_s30 }
  0x21   : > { %s9913_s29 = scalar_lea.hbm %s9912_s30, 4  ;;  %s9918_s28 = scalar_lea.hbm %s11137_s0, 16 }
  0x22   : > { %p9914_p2 = scmp.ne.s32.totalorder %s9912_s30, %s9913_s29  ;;  %p9919_p9 = scmp.lt.s32.totalorder %s9912_s30, %s11137_s0 }
  0x23   : > { %p9920_p10 = scmp.lt.s32.totalorder %s9918_s28, %s9913_s29 }
  0x24   : > { %p9916_p7 = pnand %p9915_p5, %p9914_p2 }
  0x25   : > { %p9921_p11 = por %p9920_p10, %p9919_p9 }
  0x26   : > { %p9917_p8 = pneg %p9916_p7 }
  0x28   : > { %p9922_p12 = pnand %p9921_p11, %p9917_p8 }
  0x2a   : > { %9925 = shalt.err (!%p9922_p12)
}
  0x2b   : > { %9777 = dma.hbm_to_vmem [thread:$0]  (!%p10277_p0), %s295_s24, 64, %s297_s14, %s10284_s4  }
  0x2c   : > { %s307_s23 = scalar_lea.vmem [#allocation8], %s6190_s17  ;;  %s10151_s20 = smov [#allocation9]  }
  0x2d   : > { %s10300_s19 = sshll.u32 %s307_s23, 4  ;;  %s232_s10 = sshll.u32 %s10151_s20, 4  ;;  %s233_s10 = int_to_ptr.vmem [resolvable:$true] %s232_s10 }
  0x2e   : > { %11156 = sst [smem:[#allocation23_spill]] %s10300_s19  ;;  %s11146_s30 = smov 512  }
  0x2f   : > { %s11147_s29 = smov 32   ;;  %s256_s24 = sshll.u32 %s11142_s5, 4  ;;  %s257_s24 = int_to_ptr.hbm [resolvable:$true] %s256_s24 }
  0x30   : > { %9764 = dma.hbm_to_vmem [thread:$0]  (!%p10240_p6), %s231_s1, 49152, %s233_s10, [#allocation7], %s11146_s30, %s11146_s30, %s11147_s29  }
  0x31   : > { %s10154_s17 = smov [#allocation12]   ;;  %s271_s23 = sshll.u32 %s11143_s6, 4  ;;  %s272_s23 = int_to_ptr.hbm [resolvable:$true] %s271_s23 }
  0x32   : > { %s258_s28 = sshll.u32 %s10154_s17, 4  ;;  %s10155_s20 = smov 64   ;;  %s259_s28 = int_to_ptr.vmem [resolvable:$true] %s258_s28 }
  0x33   : > { %s10156_s19 = smov 4   ;;  %s10157_s1 = smov [#allocation13]  }
  0x34   : > { %9770 = dma.hbm_to_vmem [thread:$0]  (!%p10240_p6), %s257_s24, 8192, %s259_s28, [#allocation11], %s10155_s20, %s10155_s20, %s10156_s19  }
  0x35   : > { %s273_s10 = sshll.u32 %s10157_s1, 4  ;;  %s9025_s30 = sshll.u32 %s10147_s27, 11  ;;  %s274_s10 = int_to_ptr.vmem [resolvable:$true] %s273_s10 }
  0x36   : > { %s313_s29 = scalar_lea.hbm %s11139_s2, %s9025_s30  ;;  %s10038_s27 = scalar_lea.hbm %s11139_s2, 8192 }
  0x37   : > { %9773 = dma.hbm_to_vmem [thread:$0]  (!%p10240_p6), %s272_s23, 16, %s274_s10, [#allocation14]  }
  0x38   : > { %s314_s17 = sshll.u32 %s313_s29, 4  ;;  %s315_s17 = int_to_ptr.hbm [resolvable:$true] %s314_s17 }
  0x39   : > { %s10031_s12 = sshra.s32 %s315_s17, 4  ;;  %s10032_s12 = int_to_ptr.hbm [resolvable:$true] %s10031_s12 }
  0x3a   : > { %s10033_s13 = scalar_lea.hbm %s10032_s12, 2048  ;;  %p10039_p9 = scmp.lt.s32.totalorder %s10032_s12, %s11139_s2 }
  0x3b   : > { %p10034_p2 = scmp.ne.s32.totalorder %s10032_s12, %s10033_s13  ;;  %p10040_p10 = scmp.lt.s32.totalorder %s10038_s27, %s10033_s13 }
  0x3d   : > { %p10036_p7 = pnand %p10034_p2, %p9915_p5  ;;  %p10041_p6 = por %p10040_p10, %p10039_p9 }
  0x3f   : > { %p10037_p8 = pneg %p10036_p7 }
  0x41   : > { %p10042_p11 = pnand %p10041_p6, %p10037_p8 }
  0x43   : > { %10045 = shalt.err (!%p10042_p11)
}
  0x44   : > { %s11157_s15 = smov 32   ;;  %s11158_s30 = smov 512  }
  0x45   : > { %s11159_s29 = sld [smem:[#allocation23_spill]]  ;;  %s330_s1 = sand.u32 (!%p10229_p4), 1, %s10223_s8  }
  0x46   : > { %s332_s10 = sand.u32 (!%p10229_p4), 1, %s10139_s25   ;;  %s331_s14 = scalar_lea.sflag (!%p10229_p4), [#allocation4], %s330_s1 }
  0x47   : > { %s10343_s11 = sshll.u32 (!%p10229_p4), %s332_s10, 2 }
  0x48   : > { %328 = sbr.rel (%p10229_p4) target bundleno = 1295 (0x50f), region = 48  ;;  %s334_s16 = scalar_lea.vmem (!%p10229_p4), [#allocation3], %s10343_s11 }
  0x4b   : > { %s11160_s23 = int_to_ptr.vmem [resolvable:$true] %s11159_s29 }
  0x4c   : > { %9780 = dma.hbm_to_vmem [thread:$0]  (!%p10277_p0), %s315_s17, 32768, %s11160_s23, %s10284_s4, %s11158_s30, %s11158_s30, %s11157_s15  }
  0x4d   : > { %10106 = dma.done.wait (%p10265_p13), %s331_s14, 64  }
  0x4e   : > { %10108 = vsyncadd (%p10265_p13), %s331_s14, 4294967232 }
  0x4f   : > { %10110 = dma.done.wait (%p45_p1), [#allocation7], 96  }
  0x50   : > { %10112 = vsyncadd (%p45_p1), [#allocation7], 4294967200  ;;  %s6197_s4 = sshll.u32 %s332_s10, 11 }
  0x51   : > { %s10354_s9 = scalar_lea.vmem [#allocation8], %s6197_s4 }
  0x52   : > { %10114 = dma.done.wait (%p10265_p13), %s331_s14, 32768  }
  0x53   : > { %10116 = vsyncadd (%p10265_p13), %s331_s14, 4294934528 }
  0x54   : > { %10118 = dma.done.wait (%p45_p1), [#allocation7], 49152  }
  0x55   : > { %10120 = vsyncadd (%p45_p1), [#allocation7], 4294918144 }
  0x56   : > { %10122 = dma.done.wait (%p45_p1), [#allocation11], 8320  }
  0x57   : > { %10124 = vsyncadd (%p45_p1), [#allocation11], 4294958976 }
  0x58   : > { %10126 = dma.done.wait (%p45_p1), [#allocation14], 16  }
  0x59   : > { %10128 = vsyncadd (%p45_p1), [#allocation14], 4294967280  ;;  %406 = sbr.rel (%p6182_p3) target bundleno = 103 (0x67), region = 80 }
  0x5e   : > { %v407_v0 = vld [vmem:[#allocation10] sm:$0xff]  ;;  %vm423_vm0 = vcmask 1041408   ;;  %vm425_vm1 = vcmask 1045508   ;;  %vm427_vm2 = vcmask 1043456  }
  0x5f   : > { %v409_v1 = vperm.slane %v407_v0, 0  ;;  %v410_v2 = vperm.slane %v407_v0, 1  ;;  %v411_v3 = vperm.slane %v407_v0, 2  ;;  %v412_v4 = vperm.slane %v407_v0, 3 }
  0x60   : > { %v413_v5 = vperm.slane %v407_v0, 4  ;;  %v414_v6 = vperm.slane %v407_v0, 5  ;;  %v415_v7 = vperm.slane %v407_v0, 6  ;;  %v416_v8 = vperm.slane %v407_v0, 7 }
  0x61   : > { %v417_v9 = vrot.slane %v410_v2, 6  ;;  %v418_v10 = vrot.slane %v411_v3, 4  ;;  %v419_v11 = vrot.slane %v412_v4, 2 }
  0x62   : > { %v420_v12 = vrot.slane %v414_v6, 6  ;;  %v421_v13 = vrot.slane %v415_v7, 4  ;;  %v422_v14 = vrot.slane %v416_v8, 2 }
  0x63   : > { %v424_v15 = vsel %vm423_vm0, %v409_v1, %v417_v9  ;;  %v426_v16 = vsel %vm425_vm1, %v418_v10, %v419_v11 }
  0x64   : > { %v428_v17 = vsel %vm427_vm2, %v424_v15, %v426_v16  ;;  %v429_v18 = vsel %vm423_vm0, %v413_v5, %v420_v12  ;;  %v430_v19 = vsel %vm425_vm1, %v421_v13, %v422_v14 }
  0x65   : > { %434 = vst [vmem:[#allocation2] sm:$0xff] %v428_v17  ;;  %v431_v20 = vsel %vm427_vm2, %v429_v18, %v430_v19 }
  0x66   : > { %435 = vst [vmem:[#allocation2 + $0x8] sm:$0xff] %v431_v20 }
  0x67 PF: > { %v6429_v21 = vld [vmem:[%s10354_s9 + $0x1c0] sm:$0xf]  ;;  %vm2415_vm3 = vcmask 1041408   ;;  %vm2417_vm4 = vcmask 1045508   ;;  %vm2419_vm5 = vcmask 1043456   ;;  %p7227_p1 = scmp.ne.s32.totalorder %s10223_s8, 3 }
  0x68   : > { %v9086_v22 = vld [vmem:[%s10354_s9 + $0x1dc] sm:$0xf0] }
  0x69   : > { %v6685_v23 = vld [vmem:[%s10354_s9 + $0x3c0] sm:$0xf]  ;;  %v6430_v24 = vor.u32 %v9086_v22, %v6429_v21 }
  0x6a   : > { %v9150_v25 = vld [vmem:[%s10354_s9 + $0x3dc] sm:$0xf0] }
  0x6b   : > { %v6941_v26 = vld [vmem:[%s10354_s9 + $0x5c0] sm:$0xf]  ;;  %v6686_v28 = vor.u32 %v9150_v25, %v6685_v23  ;;  %1985 = vmatpush.bf16.msra.mxu0 %v6430_v24 }
  0x6c   : > { %v9214_v27 = vld [vmem:[%s10354_s9 + $0x5dc] sm:$0xf0] }
  0x6d   : > { %v6942_v29 = vor.u32 %v9214_v27, %v6941_v26  ;;  %v7197_v30 = vld [vmem:[%s10354_s9 + $0x7c0] sm:$0xf]  ;;  %1998 = vmatpush.bf16.msra.mxu1 %v6686_v28 }
  0x6e   : > { %v9278_v31 = vld [vmem:[%s10354_s9 + $0x7dc] sm:$0xf0] }
  0x6f   : > { %v6397_v32 = vld [vmem:[%s10354_s9 + $0x180] sm:$0xf]  ;;  %v7198_v33 = vor.u32 %v9278_v31, %v7197_v30  ;;  %2011 = vmatpush.bf16.msra.mxu2 %v6942_v29 }
  0x70   : > { %v9078_v34 = vld [vmem:[%s10354_s9 + $0x19c] sm:$0xf0] }
  0x71   : > { %v6653_v35 = vld [vmem:[%s10354_s9 + $0x380] sm:$0xf]  ;;  %v6398_v37 = vor.u32 %v9078_v34, %v6397_v32  ;;  %2024 = vmatpush.bf16.msra.mxu3 %v7198_v33 }
  0x72   : > { %v9142_v36 = vld [vmem:[%s10354_s9 + $0x39c] sm:$0xf0] }
  0x73   : > { %v6654_v38 = vor.u32 %v9142_v36, %v6653_v35  ;;  %v6909_v39 = vld [vmem:[%s10354_s9 + $0x580] sm:$0xf]  ;;  %1986 = vmatpush.bf16.msra.mxu0 %v6398_v37 }
  0x74   : > { %v9206_v40 = vld [vmem:[%s10354_s9 + $0x59c] sm:$0xf0] }
  0x75   : > { %v7165_v41 = vld [vmem:[%s10354_s9 + $0x780] sm:$0xf]  ;;  %v6910_v42 = vor.u32 %v9206_v40, %v6909_v39  ;;  %1999 = vmatpush.bf16.msra.mxu1 %v6654_v38 }
  0x76   : > { %v9270_v43 = vld [vmem:[%s10354_s9 + $0x79c] sm:$0xf0] }
  0x77   : > { %v6365_v44 = vld [vmem:[%s10354_s9 + $0x140] sm:$0xf]  ;;  %v7166_v46 = vor.u32 %v9270_v43, %v7165_v41  ;;  %2012 = vmatpush.bf16.msra.mxu2 %v6910_v42 }
  0x78   : > { %v9070_v45 = vld [vmem:[%s10354_s9 + $0x15c] sm:$0xf0] }
  0x79   : > { %v6621_v47 = vld [vmem:[%s10354_s9 + $0x340] sm:$0xf]  ;;  %v6366_v50 = vor.u32 %v9070_v45, %v6365_v44  ;;  %2025 = vmatpush.bf16.msra.mxu3 %v7166_v46 }
  0x7a   : > { %v9134_v48 = vld [vmem:[%s10354_s9 + $0x35c] sm:$0xf0] }
  0x7b   : > { %v6877_v49 = vld [vmem:[%s10354_s9 + $0x540] sm:$0xf]  ;;  %v6622_v54 = vor.u32 %v9134_v48, %v6621_v47  ;;  %1987 = vmatpush.bf16.msra.mxu0 %v6366_v50  ;;  %v6431_v50 = vld [vmem:[%s10354_s9 + $0x1e0] sm:$0xf0] }
  0x7c   : > { %v9198_v51 = vld [vmem:[%s10354_s9 + $0x55c] sm:$0xf0] }
  0x7d   : > { %v7133_v52 = vld [vmem:[%s10354_s9 + $0x740] sm:$0xf]  ;;  %v6878_v55 = vor.u32 %v9198_v51, %v6877_v49  ;;  %2000 = vmatpush.bf16.msra.mxu1 %v6622_v54  ;;  %v9082_v49 = vld [vmem:[%s10354_s9 + $0x1c4] sm:$0xf] }
  0x7e   : > { %v9262_v53 = vld [vmem:[%s10354_s9 + $0x75c] sm:$0xf0]  ;;  %v9146_v51 = vld [vmem:[%s10354_s9 + $0x3c4] sm:$0xf] }
  0x7f   : > { %v6333_v56 = vld [vmem:[%s10354_s9 + $0x100] sm:$0xf]  ;;  %v7134_v59 = vor.u32 %v9262_v53, %v7133_v52  ;;  %2013 = vmatpush.bf16.msra.mxu2 %v6878_v55  ;;  %v6687_v53 = vld [vmem:[%s10354_s9 + $0x3e0] sm:$0xf0] }
  0x80   : > { %v9062_v57 = vld [vmem:[%s10354_s9 + $0x11c] sm:$0xf0]  ;;  %v9210_v54 = vld [vmem:[%s10354_s9 + $0x5c4] sm:$0xf] }
  0x81   : > { %v6589_v58 = vld [vmem:[%s10354_s9 + $0x300] sm:$0xf]  ;;  %v6334_v1 = vor.u32 %v9062_v57, %v6333_v56  ;;  %2026 = vmatpush.bf16.msra.mxu3 %v7134_v59  ;;  %v6943_v55 = vld [vmem:[%s10354_s9 + $0x5e0] sm:$0xf0] }
  0x82   : > { %v9126_v60 = vld [vmem:[%s10354_s9 + $0x31c] sm:$0xf0]  ;;  %v7199_v59 = vld [vmem:[%s10354_s9 + $0x7e0] sm:$0xf0] }
  0x83   : > { %v6845_v61 = vld [vmem:[%s10354_s9 + $0x500] sm:$0xf]  ;;  %v6590_v2 = vor.u32 %v9126_v60, %v6589_v58  ;;  %1988 = vmatpush.bf16.msra.mxu0 %v6334_v1  ;;  %v9274_v58 = vld [vmem:[%s10354_s9 + $0x7c4] sm:$0xf] }
  0x84   : > { %v9190_v62 = vld [vmem:[%s10354_s9 + $0x51c] sm:$0xf0]  ;;  %v6399_v1 = vld [vmem:[%s10354_s9 + $0x1a0] sm:$0xf0] }
  0x85   : > { %v7101_v63 = vld [vmem:[%s10354_s9 + $0x700] sm:$0xf]  ;;  %v6846_v3 = vor.u32 %v9190_v62, %v6845_v61  ;;  %2001 = vmatpush.bf16.msra.mxu1 %v6590_v2  ;;  %v6434_v61 = vor.u32 %v9082_v49, %v6431_v50  ;;  %v6690_v62 = vor.u32 %v9146_v51, %v6687_v53  ;;  %v9138_v2 = vld [vmem:[%s10354_s9 + $0x384] sm:$0xf] }
  0x86   : > { %v9254_v0 = vld [vmem:[%s10354_s9 + $0x71c] sm:$0xf0]  ;;  %v7071_v49 = vld [vmem:[%s10354_s9 + $0x6e0] sm:$0xf0] }
  0x87   : > { %v6301_v4 = vld [vmem:[%s10354_s9 + $0xc0] sm:$0xf]  ;;  %v7102_v7 = vor.u32 %v9254_v0, %v7101_v63  ;;  %2014 = vmatpush.bf16.msra.mxu2 %v6846_v3  ;;  %v6946_v63 = vor.u32 %v9210_v54, %v6943_v55  ;;  %v9074_v0 = vld [vmem:[%s10354_s9 + $0x184] sm:$0xf]  ;;  %v7202_v3 = vor.u32 %v9274_v58, %v7199_v59 }
  0x88   : > { %v9054_v5 = vld [vmem:[%s10354_s9 + $0xdc] sm:$0xf0]  ;;  %v9042_v53 = vld [vmem:[%s10354_s9 + $0x84] sm:$0xf] }
  0x89   : > { %v6557_v6 = vld [vmem:[%s10354_s9 + $0x2c0] sm:$0xf]  ;;  %v6302_v13 = vor.u32 %v9054_v5, %v6301_v4  ;;  %2027 = vmatpush.bf16.msra.mxu3 %v7102_v7  ;;  %v6655_v4 = vld [vmem:[%s10354_s9 + $0x3a0] sm:$0xf0] }
  0x8a   : > { %v9118_v8 = vld [vmem:[%s10354_s9 + $0x2dc] sm:$0xf0]  ;;  %v9202_v5 = vld [vmem:[%s10354_s9 + $0x584] sm:$0xf] }
  0x8b   : > { %v6813_v9 = vld [vmem:[%s10354_s9 + $0x4c0] sm:$0xf]  ;;  %v6558_v14 = vor.u32 %v9118_v8, %v6557_v6  ;;  %1989 = vmatpush.bf16.msra.mxu0 %v6302_v13  ;;  %v6911_v6 = vld [vmem:[%s10354_s9 + $0x5a0] sm:$0xf0] }
  0x8c   : > { %v9182_v10 = vld [vmem:[%s10354_s9 + $0x4dc] sm:$0xf0]  ;;  %v9266_v7 = vld [vmem:[%s10354_s9 + $0x784] sm:$0xf] }
  0x8d   : > { %v7069_v11 = vld [vmem:[%s10354_s9 + $0x6c0] sm:$0xf]  ;;  %v6814_v15 = vor.u32 %v9182_v10, %v6813_v9  ;;  %2002 = vmatpush.bf16.msra.mxu1 %v6558_v14  ;;  %v7167_v8 = vld [vmem:[%s10354_s9 + $0x7a0] sm:$0xf0]  ;;  %v438_v9 = vld [vmem:[%s334_s16] sm:$0xf]  ;;  %v6402_v10 = vor.u32 %v9074_v0, %v6399_v1 }
  0x8e   : > { %v9246_v12 = vld [vmem:[%s10354_s9 + $0x6dc] sm:$0xf0]  ;;  %696 = vst [vmem:[#allocation1] ss:$9 sm:$0xff] %v438_v9  ;;  %v9066_v13 = vld [vmem:[%s10354_s9 + $0x144] sm:$0xf] }
  0x8f   : > { %v6269_v16 = vld [vmem:[%s10354_s9 + $0x80] sm:$0xf]  ;;  %v7070_v19 = vor.u32 %v9246_v12, %v7069_v11  ;;  %2015 = vmatpush.bf16.msra.mxu2 %v6814_v15  ;;  %v6658_v11 = vor.u32 %v9138_v2, %v6655_v4  ;;  %v6914_v12 = vor.u32 %v9202_v5, %v6911_v6  ;;  %v6367_v14 = vld [vmem:[%s10354_s9 + $0x160] sm:$0xf0] }
  0x90   : > { %v9046_v17 = vld [vmem:[%s10354_s9 + $0x9c] sm:$0xf0]  ;;  %v9130_v15 = vld [vmem:[%s10354_s9 + $0x344] sm:$0xf] }
  0x91   : > { %v6525_v18 = vld [vmem:[%s10354_s9 + $0x280] sm:$0xf]  ;;  %v6270_v25 = vor.u32 %v9046_v17, %v6269_v16  ;;  %2028 = vmatpush.bf16.msra.mxu3 %v7070_v19  ;;  %v7170_v16 = vor.u32 %v9266_v7, %v7167_v8  ;;  %v6623_v17 = vld [vmem:[%s10354_s9 + $0x360] sm:$0xf0] }
  0x92   : > { %v9110_v20 = vld [vmem:[%s10354_s9 + $0x29c] sm:$0xf0]  ;;  %v6879_v19 = vld [vmem:[%s10354_s9 + $0x560] sm:$0xf0] }
  0x93   : > { %v6781_v21 = vld [vmem:[%s10354_s9 + $0x480] sm:$0xf]  ;;  %v6526_v26 = vor.u32 %v9110_v20, %v6525_v18  ;;  %1990 = vmatpush.bf16.msra.mxu0 %v6270_v25  ;;  %v9194_v18 = vld [vmem:[%s10354_s9 + $0x544] sm:$0xf] }
  0x94   : > { %v9174_v22 = vld [vmem:[%s10354_s9 + $0x49c] sm:$0xf0]  ;;  %v9258_v20 = vld [vmem:[%s10354_s9 + $0x744] sm:$0xf]  ;;  %v6882_v25 = vor.u32 %v9194_v18, %v6879_v19 }
  0x95   : > { %v7037_v23 = vld [vmem:[%s10354_s9 + $0x680] sm:$0xf]  ;;  %v6782_v27 = vor.u32 %v9174_v22, %v6781_v21  ;;  %2003 = vmatpush.bf16.msra.mxu1 %v6526_v26  ;;  %v7135_v21 = vld [vmem:[%s10354_s9 + $0x760] sm:$0xf0]  ;;  %v6370_v22 = vor.u32 %v9066_v13, %v6367_v14 }
  0x96   : > { %v9238_v24 = vld [vmem:[%s10354_s9 + $0x69c] sm:$0xf0]  ;;  %v6335_v26 = vld [vmem:[%s10354_s9 + $0x120] sm:$0xf0] }
  0x97   : > { %v6237_v28 = vld [vmem:[%s10354_s9 + $0x40] sm:$0xf]  ;;  %v7038_v31 = vor.u32 %v9238_v24, %v7037_v23  ;;  %2016 = vmatpush.bf16.msra.mxu2 %v6782_v27  ;;  %v9058_v23 = vld [vmem:[%s10354_s9 + $0x104] sm:$0xf]  ;;  %v6626_v24 = vor.u32 %v9130_v15, %v6623_v17 }
  0x98   : > { %v9038_v29 = vld [vmem:[%s10354_s9 + $0x5c] sm:$0xf0]  ;;  %v9122_v27 = vld [vmem:[%s10354_s9 + $0x304] sm:$0xf] }
  0x99   : > { %v6493_v30 = vld [vmem:[%s10354_s9 + $0x240] sm:$0xf]  ;;  %v6238_v37 = vor.u32 %v9038_v29, %v6237_v28  ;;  %2029 = vmatpush.bf16.msra.mxu3 %v7038_v31  ;;  %v6591_v28 = vld [vmem:[%s10354_s9 + $0x320] sm:$0xf0]  ;;  %v7138_v29 = vor.u32 %v9258_v20, %v7135_v21 }
  0x9a   : > { %v9102_v32 = vld [vmem:[%s10354_s9 + $0x25c] sm:$0xf0]  ;;  %v6847_v31 = vld [vmem:[%s10354_s9 + $0x520] sm:$0xf0] }
  0x9b   : > { %v6749_v33 = vld [vmem:[%s10354_s9 + $0x440] sm:$0xf]  ;;  %v6494_v40 = vor.u32 %v9102_v32, %v6493_v30  ;;  %1991 = vmatpush.bf16.msra.mxu0 %v6238_v37  ;;  %v9186_v30 = vld [vmem:[%s10354_s9 + $0x504] sm:$0xf]  ;;  %v10481_v37 = vld [vmem:[#allocation1 + $0x1b] sm:$0xff] }
  0x9c   : > { %v9166_v34 = vld [vmem:[%s10354_s9 + $0x45c] sm:$0xf0]  ;;  %v9250_v32 = vld [vmem:[%s10354_s9 + $0x704] sm:$0xf] }
  0x9d   : > { %v7005_v35 = vld [vmem:[%s10354_s9 + $0x640] sm:$0xf]  ;;  %v6750_v41 = vor.u32 %v9166_v34, %v6749_v33  ;;  %2004 = vmatpush.bf16.msra.mxu1 %v6494_v40  ;;  %v7103_v33 = vld [vmem:[%s10354_s9 + $0x720] sm:$0xf0]  ;;  %v10476_v34 = vld [vmem:[#allocation1 + $0x12] sm:$0xff]  ;;  %v6850_v40 = vor.u32 %v9186_v30, %v6847_v31 }
  0x9e   : > { %v9230_v36 = vld [vmem:[%s10354_s9 + $0x65c] sm:$0xf0]  ;;  %v6271_v54 = vld [vmem:[%s10354_s9 + $0xa0] sm:$0xf0]  ;;  %v7205_v31 = vld [vmem:[%s10354_s9 + $0x7c8] sm:$0xf] }
  0x9f   : > { %v6205_v38 = vld [vmem:[%s10354_s9] sm:$0xf]  ;;  %v7006_v45 = vor.u32 %v9230_v36, %v7005_v35  ;;  %2017 = vmatpush.bf16.msra.mxu2 %v6750_v41  ;;  %v6338_v36 = vor.u32 %v9058_v23, %v6335_v26  ;;  %v9050_v41 = vld [vmem:[%s10354_s9 + $0xc4] sm:$0xf]  ;;  %v9087_v23 = vld [vmem:[%s10354_s9 + $0x1e4] sm:$0xf0] }
  0xa0   : > { %v9030_v39 = vld [vmem:[%s10354_s9 + $0x1c] sm:$0xf0]  ;;  %v9106_v55 = vld [vmem:[%s10354_s9 + $0x284] sm:$0xf]  ;;  %v9151_v26 = vld [vmem:[%s10354_s9 + $0x3e4] sm:$0xf0] }
  0xa1   : > { %v6461_v42 = vld [vmem:[%s10354_s9 + $0x200] sm:$0xf]  ;;  %v6206_v52 = vor.u32 %v9030_v39, %v6205_v38  ;;  %2030 = vmatpush.bf16.msra.mxu3 %v7006_v45  ;;  %v6594_v39 = vor.u32 %v9122_v27, %v6591_v28  ;;  %v6559_v45 = vld [vmem:[%s10354_s9 + $0x2e0] sm:$0xf0]  ;;  %v6949_v27 = vld [vmem:[%s10354_s9 + $0x5c8] sm:$0xf] }
  0xa2   : > { %v9094_v43 = vld [vmem:[%s10354_s9 + $0x21c] sm:$0xf0]  ;;  %v9170_v58 = vld [vmem:[%s10354_s9 + $0x484] sm:$0xf]  ;;  %v9215_v28 = vld [vmem:[%s10354_s9 + $0x5e4] sm:$0xf0] }
  0xa3   : > { %v6717_v44 = vld [vmem:[%s10354_s9 + $0x400] sm:$0xf]  ;;  %v6462_v56 = vor.u32 %v9094_v43, %v6461_v42  ;;  %1992 = vmatpush.bf16.msra.mxu0 %v6206_v52  ;;  %v6303_v42 = vld [vmem:[%s10354_s9 + $0xe0] sm:$0xf0] }
  0xa4   : > { %v9158_v46 = vld [vmem:[%s10354_s9 + $0x41c] sm:$0xf0]  ;;  %v9114_v43 = vld [vmem:[%s10354_s9 + $0x2c4] sm:$0xf]  ;;  %v6306_v50 = vor.u32 %v9050_v41, %v6303_v42  ;;  %v6405_v41 = vld [vmem:[%s10354_s9 + $0x188] sm:$0xf] }
  0xa5   : > { %v6973_v47 = vld [vmem:[%s10354_s9 + $0x600] sm:$0xf]  ;;  %v6718_v57 = vor.u32 %v9158_v46, %v6717_v44  ;;  %2005 = vmatpush.bf16.msra.mxu1 %v6462_v56  ;;  %v7106_v44 = vor.u32 %v9250_v32, %v7103_v33  ;;  %v9178_v46 = vld [vmem:[%s10354_s9 + $0x4c4] sm:$0xf]  ;;  %v6562_v51 = vor.u32 %v9114_v43, %v6559_v45  ;;  %v9279_v32 = vld [vmem:[%s10354_s9 + $0x7e4] sm:$0xf0] }
  0xa6   : > { %v9222_v48 = vld [vmem:[%s10354_s9 + $0x61c] sm:$0xf0]  ;;  %v6783_v59 = vld [vmem:[%s10354_s9 + $0x4a0] sm:$0xf0]  ;;  %v9079_v42 = vld [vmem:[%s10354_s9 + $0x1a4] sm:$0xf0] }
  0xa7   : > { %v6974_v60 = vor.u32 %v9222_v48, %v6973_v47  ;;  %2018 = vmatpush.bf16.msra.mxu2 %v6718_v57  ;;  %2037 = vmatpush.bf16.msrb.mxu0 %v6434_v61  ;;  %v10478_v35 = vld [vmem:[#allocation1] sm:$0xff]  ;;  %v10483_v38 = vld [vmem:[#allocation1 + $0x9] sm:$0xff]  ;;  %v6786_v0 = vor.u32 %v9170_v58, %v6783_v59 }
  0xa8   : > { %v6815_v47 = vld [vmem:[%s10354_s9 + $0x4e0] sm:$0xf0]  ;;  %1993 = vmatmul.bf16.vlgmr.msra.gmra.mxu0 %v10478_v35  ;;  %2006 = vmatmul.bf16.vlgmr.msra.gmra.mxu1 %v10483_v38  ;;  %v6661_v43 = vld [vmem:[%s10354_s9 + $0x388] sm:$0xf] }
  0xa9   : > { %2031 = vmatpush.bf16.msra.mxu3 %v6974_v60  ;;  %2050 = vmatpush.bf16.msrb.mxu1 %v6690_v62  ;;  %v9242_v48 = vld [vmem:[%s10354_s9 + $0x6c4] sm:$0xf]  ;;  %v6818_v52 = vor.u32 %v9178_v46, %v6815_v47  ;;  %v6274_v62 = vor.u32 %v9042_v53, %v6271_v54  ;;  %v9143_v45 = vld [vmem:[%s10354_s9 + $0x3a4] sm:$0xf0] }
  0xaa   : > { %2019 = vmatmul.bf16.vlgmr.msra.gmra.mxu2 %v10476_v34  ;;  %v7074_v56 = vor.u32 %v9242_v48, %v7071_v49  ;;  %v6527_v57 = vld [vmem:[%s10354_s9 + $0x2a0] sm:$0xf0]  ;;  %v6917_v46 = vld [vmem:[%s10354_s9 + $0x588] sm:$0xf] }
  0xab   : > { %2063 = vmatpush.bf16.msrb.mxu2 %v6946_v63  ;;  %2038 = vmatpush.bf16.msrb.mxu0 %v6402_v10  ;;  %v9234_v60 = vld [vmem:[%s10354_s9 + $0x684] sm:$0xf]  ;;  %v6530_v63 = vor.u32 %v9106_v55, %v6527_v57  ;;  %v9207_v47 = vld [vmem:[%s10354_s9 + $0x5a4] sm:$0xf0] }
  0xac   : > { %2032 = vmatmul.bf16.vlgmr.msra.gmra.mxu3 %v10481_v37  ;;  %v7039_v61 = vld [vmem:[%s10354_s9 + $0x6a0] sm:$0xf0]  ;;  %v7173_v48 = vld [vmem:[%s10354_s9 + $0x788] sm:$0xf] }
  0xad   : > { %2076 = vmatpush.bf16.msrb.mxu3 %v7202_v3  ;;  %2051 = vmatpush.bf16.msrb.mxu1 %v6658_v11  ;;  %v9034_v1 = vld [vmem:[%s10354_s9 + $0x44] sm:$0xf]  ;;  %v7042_v4 = vor.u32 %v9234_v60, %v7039_v61  ;;  %v9271_v49 = vld [vmem:[%s10354_s9 + $0x7a4] sm:$0xf0] }
  0xae   : > { %v6239_v2 = vld [vmem:[%s10354_s9 + $0x60] sm:$0xf0]  ;;  %v6373_v53 = vld [vmem:[%s10354_s9 + $0x148] sm:$0xf] }
  0xaf   : > { %2064 = vmatpush.bf16.msrb.mxu2 %v6914_v12  ;;  %2039 = vmatpush.bf16.msrb.mxu0 %v6370_v22  ;;  %v9098_v3 = vld [vmem:[%s10354_s9 + $0x244] sm:$0xf]  ;;  %v6242_v10 = vor.u32 %v9034_v1, %v6239_v2  ;;  %v6437_v22 = vld [vmem:[%s10354_s9 + $0x1c8] sm:$0xf] }
  0xb0   : > { %v6495_v5 = vld [vmem:[%s10354_s9 + $0x260] sm:$0xf0]  ;;  %v9071_v54 = vld [vmem:[%s10354_s9 + $0x164] sm:$0xf0] }
  0xb1   : > { %2077 = vmatpush.bf16.msrb.mxu3 %v7170_v16  ;;  %2052 = vmatpush.bf16.msrb.mxu1 %v6626_v24  ;;  %v9162_v6 = vld [vmem:[%s10354_s9 + $0x444] sm:$0xf]  ;;  %v6498_v13 = vor.u32 %v9098_v3, %v6495_v5  ;;  %v6693_v24 = vld [vmem:[%s10354_s9 + $0x3c8] sm:$0xf] }
  0xb2   : > { %v6751_v7 = vld [vmem:[%s10354_s9 + $0x460] sm:$0xf0]  ;;  %v6629_v55 = vld [vmem:[%s10354_s9 + $0x348] sm:$0xf] }
  0xb3   : > { %2065 = vmatpush.bf16.msrb.mxu2 %v6882_v25  ;;  %2040 = vmatpush.bf16.msrb.mxu0 %v6338_v36  ;;  %v9226_v8 = vld [vmem:[%s10354_s9 + $0x644] sm:$0xf]  ;;  %v6754_v14 = vor.u32 %v9162_v6, %v6751_v7  ;;  %v6438_v36 = vor.u32 %v9087_v23, %v6437_v22  ;;  %v9135_v57 = vld [vmem:[%s10354_s9 + $0x364] sm:$0xf0] }
  0xb4   : > { %v7007_v9 = vld [vmem:[%s10354_s9 + $0x660] sm:$0xf0]  ;;  %v6885_v58 = vld [vmem:[%s10354_s9 + $0x548] sm:$0xf] }
  0xb5   : > { %2078 = vmatpush.bf16.msrb.mxu3 %v7138_v29  ;;  %2053 = vmatpush.bf16.msrb.mxu1 %v6594_v39  ;;  %v9026_v11 = vld [vmem:[%s10354_s9 + $0x4] sm:$0xf]  ;;  %v7010_v18 = vor.u32 %v9226_v8, %v7007_v9  ;;  %v6694_v39 = vor.u32 %v9151_v26, %v6693_v24  ;;  %v9199_v59 = vld [vmem:[%s10354_s9 + $0x564] sm:$0xf0] }
  0xb6   : > { %v6207_v12 = vld [vmem:[%s10354_s9 + $0x20] sm:$0xf0]  ;;  %v7141_v60 = vld [vmem:[%s10354_s9 + $0x748] sm:$0xf] }
  0xb7   : > { %2066 = vmatpush.bf16.msrb.mxu2 %v6850_v40  ;;  %2041 = vmatpush.bf16.msrb.mxu0 %v6306_v50  ;;  %v9090_v15 = vld [vmem:[%s10354_s9 + $0x204] sm:$0xf]  ;;  %v6210_v25 = vor.u32 %v9026_v11, %v6207_v12  ;;  %v6950_v40 = vor.u32 %v9215_v28, %v6949_v27  ;;  %v6406_v50 = vor.u32 %v9079_v42, %v6405_v41  ;;  %v9263_v61 = vld [vmem:[%s10354_s9 + $0x764] sm:$0xf0] }
  0xb8   : > { %v6463_v16 = vld [vmem:[%s10354_s9 + $0x220] sm:$0xf0]  ;;  %v6341_v1 = vld [vmem:[%s10354_s9 + $0x108] sm:$0xf] }
  0xb9   : > { %2079 = vmatpush.bf16.msrb.mxu3 %v7106_v44  ;;  %2054 = vmatpush.bf16.msrb.mxu1 %v6562_v51  ;;  %v9154_v17 = vld [vmem:[%s10354_s9 + $0x404] sm:$0xf]  ;;  %v6466_v29 = vor.u32 %v9090_v15, %v6463_v16  ;;  %v7206_v44 = vor.u32 %v9279_v32, %v7205_v31  ;;  %v6662_v51 = vor.u32 %v9143_v45, %v6661_v43  ;;  %v9063_v2 = vld [vmem:[%s10354_s9 + $0x124] sm:$0xf0] }
  0xba   : > { %v6719_v19 = vld [vmem:[%s10354_s9 + $0x420] sm:$0xf0]  ;;  %v6597_v3 = vld [vmem:[%s10354_s9 + $0x308] sm:$0xf] }
  0xbb   : > { %2067 = vmatpush.bf16.msrb.mxu2 %v6818_v52  ;;  %2042 = vmatpush.bf16.msrb.mxu0 %v6274_v62  ;;  %v9218_v20 = vld [vmem:[%s10354_s9 + $0x604] sm:$0xf]  ;;  %v6722_v30 = vor.u32 %v9154_v17, %v6719_v19  ;;  %v6918_v52 = vor.u32 %v9207_v47, %v6917_v46  ;;  %v6374_v62 = vor.u32 %v9071_v54, %v6373_v53  ;;  %v9127_v5 = vld [vmem:[%s10354_s9 + $0x324] sm:$0xf0] }
  0xbc   : > { %v6975_v21 = vld [vmem:[%s10354_s9 + $0x620] sm:$0xf0]  ;;  %v6853_v6 = vld [vmem:[%s10354_s9 + $0x508] sm:$0xf]  ;;  %v6598_v11 = vor.u32 %v9127_v5, %v6597_v3  ;;  %v9211_v3 = vld [vmem:[%s10354_s9 + $0x5cc] sm:$0xf] }
  0xbd   : > { %2080 = vmatpush.bf16.msrb.mxu3 %v7074_v56  ;;  %2055 = vmatpush.bf16.msrb.mxu1 %v6530_v63  ;;  %v6978_v33 = vor.u32 %v9218_v20, %v6975_v21  ;;  %v7174_v56 = vor.u32 %v9271_v49, %v7173_v48  ;;  %v6630_v63 = vor.u32 %v9135_v57, %v6629_v55  ;;  %v9191_v7 = vld [vmem:[%s10354_s9 + $0x524] sm:$0xf0] }
  0xbe   : > { %v7109_v8 = vld [vmem:[%s10354_s9 + $0x708] sm:$0xf]  ;;  %v6854_v12 = vor.u32 %v9191_v7, %v6853_v6  ;;  %v9275_v7 = vld [vmem:[%s10354_s9 + $0x7cc] sm:$0xf] }
  0xbf   : > { %2068 = vmatpush.bf16.msrb.mxu2 %v6786_v0  ;;  %2043 = vmatpush.bf16.msrb.mxu0 %v6242_v10  ;;  %v6886_v0 = vor.u32 %v9199_v59, %v6885_v58  ;;  %v9255_v9 = vld [vmem:[%s10354_s9 + $0x724] sm:$0xf0]  ;;  %v6342_v10 = vor.u32 %v9063_v2, %v6341_v1  ;;  %v6695_v2 = vld [vmem:[%s10354_s9 + $0x3e8] sm:$0xf0] }
  0xc0   : > { %v6565_v15 = vld [vmem:[%s10354_s9 + $0x2c8] sm:$0xf]  ;;  %v7110_v16 = vor.u32 %v9255_v9, %v7109_v8  ;;  %v7207_v8 = vld [vmem:[%s10354_s9 + $0x7e8] sm:$0xf0] }
  0xc1   : > { %2081 = vmatpush.bf16.msrb.mxu3 %v7042_v4  ;;  %2056 = vmatpush.bf16.msrb.mxu1 %v6498_v13  ;;  %v7142_v4 = vor.u32 %v9263_v61, %v7141_v60  ;;  %v6309_v13 = vld [vmem:[%s10354_s9 + $0xc8] sm:$0xf] }
  0xc2   : > { %v9119_v17 = vld [vmem:[%s10354_s9 + $0x2e4] sm:$0xf0] }
  0xc3   : > { %2069 = vmatpush.bf16.msrb.mxu2 %v6754_v14  ;;  %2044 = vmatpush.bf16.msrb.mxu0 %v6210_v25  ;;  %v9055_v14 = vld [vmem:[%s10354_s9 + $0xe4] sm:$0xf0]  ;;  %v6566_v23 = vor.u32 %v9119_v17, %v6565_v15  ;;  %v9139_v15 = vld [vmem:[%s10354_s9 + $0x38c] sm:$0xf] }
  0xc4   : > { %v9183_v19 = vld [vmem:[%s10354_s9 + $0x4e4] sm:$0xf0]  ;;  %v6310_v22 = vor.u32 %v9055_v14, %v6309_v13  ;;  %v9075_v13 = vld [vmem:[%s10354_s9 + $0x18c] sm:$0xf] }
  0xc5   : > { %2082 = vmatpush.bf16.msrb.mxu3 %v7010_v18  ;;  %2057 = vmatpush.bf16.msrb.mxu1 %v6466_v29  ;;  %v6821_v18 = vld [vmem:[%s10354_s9 + $0x4c8] sm:$0xf]  ;;  %v6407_v14 = vld [vmem:[%s10354_s9 + $0x1a8] sm:$0xf0] }
  0xc6   : > { %2045 = vmatmul.bf16.vlgmr.msrb.gmra.mxu0 %v10478_v35  ;;  %v7077_v20 = vld [vmem:[%s10354_s9 + $0x6c8] sm:$0xf]  ;;  %v6822_v24 = vor.u32 %v9183_v19, %v6821_v18  ;;  %v6663_v17 = vld [vmem:[%s10354_s9 + $0x3a8] sm:$0xf0] }
  0xc7   : > { %2070 = vmatpush.bf16.msrb.mxu2 %v6722_v30  ;;  %2089 = vmatpush.bf16.msra.mxu0 %v6438_v36  ;;  %v9247_v21 = vld [vmem:[%s10354_s9 + $0x6e4] sm:$0xf0]  ;;  %v9203_v18 = vld [vmem:[%s10354_s9 + $0x58c] sm:$0xf] }
  0xc8   : > { %2058 = vmatmul.bf16.vlgmr.msrb.gmra.mxu1 %v10483_v38  ;;  %v6277_v25 = vld [vmem:[%s10354_s9 + $0x88] sm:$0xf]  ;;  %v7078_v28 = vor.u32 %v9247_v21, %v7077_v20  ;;  %v6919_v19 = vld [vmem:[%s10354_s9 + $0x5a8] sm:$0xf0] }
  0xc9   : > { %2083 = vmatpush.bf16.msrb.mxu3 %v6978_v33  ;;  %2102 = vmatpush.bf16.msra.mxu1 %v6694_v39  ;;  %v9047_v26 = vld [vmem:[%s10354_s9 + $0xa4] sm:$0xf0]  ;;  %v9267_v20 = vld [vmem:[%s10354_s9 + $0x78c] sm:$0xf] }
  0xca   : > { %2071 = vmatmul.bf16.vlgmr.msrb.gmra.mxu2 %v10476_v34  ;;  %v6533_v27 = vld [vmem:[%s10354_s9 + $0x288] sm:$0xf]  ;;  %v6278_v36 = vor.u32 %v9047_v26, %v6277_v25  ;;  %v7175_v21 = vld [vmem:[%s10354_s9 + $0x7a8] sm:$0xf0] }
  0xcb   : > { %2115 = vmatpush.bf16.msra.mxu2 %v6950_v40  ;;  %2090 = vmatpush.bf16.msra.mxu0 %v6406_v50  ;;  %v9111_v29 = vld [vmem:[%s10354_s9 + $0x2a4] sm:$0xf0]  ;;  %v9067_v25 = vld [vmem:[%s10354_s9 + $0x14c] sm:$0xf] }
  0xcc   : > { %2084 = vmatmul.bf16.vlgmr.msrb.gmra.mxu3 %v10481_v37  ;;  %v6789_v30 = vld [vmem:[%s10354_s9 + $0x488] sm:$0xf]  ;;  %v6534_v39 = vor.u32 %v9111_v29, %v6533_v27  ;;  %v6375_v26 = vld [vmem:[%s10354_s9 + $0x168] sm:$0xf0] }
  0xcd   : > { %2128 = vmatpush.bf16.msra.mxu3 %v7206_v44  ;;  %2103 = vmatpush.bf16.msra.mxu1 %v6662_v51  ;;  %v9175_v31 = vld [vmem:[%s10354_s9 + $0x4a4] sm:$0xf0]  ;;  %v9131_v27 = vld [vmem:[%s10354_s9 + $0x34c] sm:$0xf] }
  0xce   : > { %v7045_v32 = vld [vmem:[%s10354_s9 + $0x688] sm:$0xf]  ;;  %v6790_v40 = vor.u32 %v9175_v31, %v6789_v30  ;;  %v6631_v29 = vld [vmem:[%s10354_s9 + $0x368] sm:$0xf0] }
  0xcf   : > { %2116 = vmatpush.bf16.msra.mxu2 %v6918_v52  ;;  %2091 = vmatpush.bf16.msra.mxu0 %v6374_v62  ;;  %v9239_v33 = vld [vmem:[%s10354_s9 + $0x6a4] sm:$0xf0]  ;;  %v9083_v62 = vld [vmem:[%s10354_s9 + $0x1cc] sm:$0xf] }
  0xd0   : > { %v6245_v41 = vld [vmem:[%s10354_s9 + $0x48] sm:$0xf]  ;;  %v7046_v44 = vor.u32 %v9239_v33, %v7045_v32  ;;  %v9195_v30 = vld [vmem:[%s10354_s9 + $0x54c] sm:$0xf] }
  0xd1   : > { %2129 = vmatpush.bf16.msra.mxu3 %v7174_v56  ;;  %2104 = vmatpush.bf16.msra.mxu1 %v6630_v63  ;;  %v9039_v42 = vld [vmem:[%s10354_s9 + $0x64] sm:$0xf0]  ;;  %v6439_v63 = vld [vmem:[%s10354_s9 + $0x1e8] sm:$0xf0] }
  0xd2   : > { %v6501_v43 = vld [vmem:[%s10354_s9 + $0x248] sm:$0xf]  ;;  %v6246_v50 = vor.u32 %v9039_v42, %v6245_v41  ;;  %v6887_v31 = vld [vmem:[%s10354_s9 + $0x568] sm:$0xf0] }
  0xd3   : > { %2117 = vmatpush.bf16.msra.mxu2 %v6886_v0  ;;  %2092 = vmatpush.bf16.msra.mxu0 %v6342_v10  ;;  %v9103_v45 = vld [vmem:[%s10354_s9 + $0x264] sm:$0xf0]  ;;  %v9147_v0 = vld [vmem:[%s10354_s9 + $0x3cc] sm:$0xf]  ;;  %v6442_v10 = vor.u32 %v9083_v62, %v6439_v63 }
  0xd4   : > { %v6757_v46 = vld [vmem:[%s10354_s9 + $0x448] sm:$0xf]  ;;  %v6502_v53 = vor.u32 %v9103_v45, %v6501_v43  ;;  %v9259_v32 = vld [vmem:[%s10354_s9 + $0x74c] sm:$0xf] }
  0xd5   : > { %2130 = vmatpush.bf16.msra.mxu3 %v7142_v4  ;;  %2105 = vmatpush.bf16.msra.mxu1 %v6598_v11  ;;  %v9167_v47 = vld [vmem:[%s10354_s9 + $0x464] sm:$0xf0]  ;;  %v6951_v4 = vld [vmem:[%s10354_s9 + $0x5e8] sm:$0xf0]  ;;  %v6698_v11 = vor.u32 %v9147_v0, %v6695_v2 }
  0xd6   : > { %v7013_v48 = vld [vmem:[%s10354_s9 + $0x648] sm:$0xf]  ;;  %v6758_v54 = vor.u32 %v9167_v47, %v6757_v46  ;;  %v7143_v33 = vld [vmem:[%s10354_s9 + $0x768] sm:$0xf0] }
  0xd7   : > { %2118 = vmatpush.bf16.msra.mxu2 %v6854_v12  ;;  %2093 = vmatpush.bf16.msra.mxu0 %v6310_v22  ;;  %v9231_v49 = vld [vmem:[%s10354_s9 + $0x664] sm:$0xf0]  ;;  %v6954_v12 = vor.u32 %v9211_v3, %v6951_v4  ;;  %v6410_v22 = vor.u32 %v9075_v13, %v6407_v14  ;;  %v9059_v41 = vld [vmem:[%s10354_s9 + $0x10c] sm:$0xf] }
  0xd8   : > { %v6213_v51 = vld [vmem:[%s10354_s9 + $0x8] sm:$0xf]  ;;  %v7014_v58 = vor.u32 %v9231_v49, %v7013_v48  ;;  %v6343_v42 = vld [vmem:[%s10354_s9 + $0x128] sm:$0xf0] }
  0xd9   : > { %2131 = vmatpush.bf16.msra.mxu3 %v7110_v16  ;;  %2106 = vmatpush.bf16.msra.mxu1 %v6566_v23  ;;  %v9031_v52 = vld [vmem:[%s10354_s9 + $0x24] sm:$0xf0]  ;;  %v7210_v16 = vor.u32 %v9275_v7, %v7207_v8  ;;  %v6666_v23 = vor.u32 %v9139_v15, %v6663_v17  ;;  %v9123_v43 = vld [vmem:[%s10354_s9 + $0x30c] sm:$0xf] }
  0xda   : > { %v6469_v55 = vld [vmem:[%s10354_s9 + $0x208] sm:$0xf]  ;;  %v6214_v1 = vor.u32 %v9031_v52, %v6213_v51  ;;  %v6599_v45 = vld [vmem:[%s10354_s9 + $0x328] sm:$0xf0] }
  0xdb   : > { %2119 = vmatpush.bf16.msra.mxu2 %v6822_v24  ;;  %2094 = vmatpush.bf16.msra.mxu0 %v6278_v36  ;;  %v9095_v56 = vld [vmem:[%s10354_s9 + $0x224] sm:$0xf0]  ;;  %v6922_v24 = vor.u32 %v9203_v18, %v6919_v19  ;;  %v6378_v36 = vor.u32 %v9067_v25, %v6375_v26  ;;  %v9187_v46 = vld [vmem:[%s10354_s9 + $0x50c] sm:$0xf]  ;;  %v6602_v51 = vor.u32 %v9123_v43, %v6599_v45  ;;  %v6957_v43 = vld [vmem:[%s10354_s9 + $0x5d0] sm:$0xf] }
  0xdc   : > { %v6725_v57 = vld [vmem:[%s10354_s9 + $0x408] sm:$0xf]  ;;  %v6470_v5 = vor.u32 %v9095_v56, %v6469_v55  ;;  %v6855_v47 = vld [vmem:[%s10354_s9 + $0x528] sm:$0xf0] }
  0xdd   : > { %2132 = vmatpush.bf16.msra.mxu3 %v7078_v28  ;;  %2107 = vmatpush.bf16.msra.mxu1 %v6534_v39  ;;  %v9159_v59 = vld [vmem:[%s10354_s9 + $0x424] sm:$0xf0]  ;;  %v7178_v28 = vor.u32 %v9267_v20, %v7175_v21  ;;  %v6634_v39 = vor.u32 %v9131_v27, %v6631_v29  ;;  %v9251_v48 = vld [vmem:[%s10354_s9 + $0x70c] sm:$0xf]  ;;  %v6858_v52 = vor.u32 %v9187_v46, %v6855_v47  ;;  %v7213_v47 = vld [vmem:[%s10354_s9 + $0x7d0] sm:$0xf] }
  0xde   : > { %v6981_v60 = vld [vmem:[%s10354_s9 + $0x608] sm:$0xf]  ;;  %v6726_v6 = vor.u32 %v9159_v59, %v6725_v57  ;;  %v7111_v49 = vld [vmem:[%s10354_s9 + $0x728] sm:$0xf0] }
  0xdf   : > { %2120 = vmatpush.bf16.msra.mxu2 %v6790_v40  ;;  %v9223_v61 = vld [vmem:[%s10354_s9 + $0x624] sm:$0xf0]  ;;  %2095 = vmatpush.bf16.msra.mxu0 %v6246_v50  ;;  %v6890_v40 = vor.u32 %v9195_v30, %v6887_v31  ;;  %v6346_v50 = vor.u32 %v9059_v41, %v6343_v42  ;;  %v9115_v55 = vld [vmem:[%s10354_s9 + $0x2cc] sm:$0xf]  ;;  %v7114_v56 = vor.u32 %v9251_v48, %v7111_v49  ;;  %v9152_v42 = vld [vmem:[%s10354_s9 + $0x3ec] sm:$0xf0] }
  0xe0   : > { %v6982_v9 = vor.u32 %v9223_v61, %v6981_v60  ;;  %v6567_v57 = vld [vmem:[%s10354_s9 + $0x2e8] sm:$0xf0]  ;;  %v9280_v48 = vld [vmem:[%s10354_s9 + $0x7ec] sm:$0xf0] }
  0xe1   : > { %2133 = vmatpush.bf16.msra.mxu3 %v7046_v44  ;;  %2108 = vmatpush.bf16.msra.mxu1 %v6502_v53  ;;  %v7146_v44 = vor.u32 %v9259_v32, %v7143_v33  ;;  %v9051_v53 = vld [vmem:[%s10354_s9 + $0xcc] sm:$0xf]  ;;  %v6570_v63 = vor.u32 %v9115_v55, %v6567_v57  ;;  %v6669_v55 = vld [vmem:[%s10354_s9 + $0x390] sm:$0xf] }
  0xe2   : > { %v6823_v59 = vld [vmem:[%s10354_s9 + $0x4e8] sm:$0xf0]  ;;  %v9144_v57 = vld [vmem:[%s10354_s9 + $0x3ac] sm:$0xf0] }
  0xe3   : > { %2121 = vmatpush.bf16.msra.mxu2 %v6758_v54  ;;  %2096 = vmatpush.bf16.msra.mxu0 %v6214_v1  ;;  %v6311_v54 = vld [vmem:[%s10354_s9 + $0xe8] sm:$0xf0] }
  0xe4   : > { %v9243_v60 = vld [vmem:[%s10354_s9 + $0x6cc] sm:$0xf]  ;;  %v6314_v62 = vor.u32 %v9051_v53, %v6311_v54  ;;  %v6413_v53 = vld [vmem:[%s10354_s9 + $0x190] sm:$0xf] }
  0xe5   : > { %2134 = vmatpush.bf16.msra.mxu3 %v7014_v58  ;;  %2109 = vmatpush.bf16.msra.mxu1 %v6470_v5  ;;  %v9179_v58 = vld [vmem:[%s10354_s9 + $0x4cc] sm:$0xf]  ;;  %v9080_v54 = vld [vmem:[%s10354_s9 + $0x1ac] sm:$0xf0] }
  0xe6   : > { %2097 = vmatmul.bf16.vlgmr.msra.gmra.mxu0 %v10478_v35  ;;  %v7079_v61 = vld [vmem:[%s10354_s9 + $0x6e8] sm:$0xf0]  ;;  %v6826_v0 = vor.u32 %v9179_v58, %v6823_v59  ;;  %v6925_v58 = vld [vmem:[%s10354_s9 + $0x590] sm:$0xf] }
  0xe7   : > { %2122 = vmatpush.bf16.msra.mxu2 %v6726_v6  ;;  %2141 = vmatpush.bf16.msrb.mxu0 %v6442_v10  ;;  %v9043_v1 = vld [vmem:[%s10354_s9 + $0x8c] sm:$0xf]  ;;  %v7082_v4 = vor.u32 %v9243_v60, %v7079_v61  ;;  %v9208_v59 = vld [vmem:[%s10354_s9 + $0x5ac] sm:$0xf0] }
  0xe8   : > { %2110 = vmatmul.bf16.vlgmr.msra.gmra.mxu1 %v10483_v38  ;;  %v6279_v2 = vld [vmem:[%s10354_s9 + $0xa8] sm:$0xf0]  ;;  %v7181_v60 = vld [vmem:[%s10354_s9 + $0x790] sm:$0xf] }
  0xe9   : > { %2135 = vmatpush.bf16.msra.mxu3 %v6982_v9  ;;  %2154 = vmatpush.bf16.msrb.mxu1 %v6698_v11  ;;  %v9107_v3 = vld [vmem:[%s10354_s9 + $0x28c] sm:$0xf]  ;;  %v6282_v10 = vor.u32 %v9043_v1, %v6279_v2  ;;  %v9272_v61 = vld [vmem:[%s10354_s9 + $0x7ac] sm:$0xf0] }
  0xea   : > { %2123 = vmatmul.bf16.vlgmr.msra.gmra.mxu2 %v10476_v34  ;;  %v6535_v5 = vld [vmem:[%s10354_s9 + $0x2a8] sm:$0xf0]  ;;  %v6381_v1 = vld [vmem:[%s10354_s9 + $0x150] sm:$0xf] }
  0xeb   : > { %2167 = vmatpush.bf16.msrb.mxu2 %v6954_v12  ;;  %2142 = vmatpush.bf16.msrb.mxu0 %v6410_v22  ;;  %v9171_v6 = vld [vmem:[%s10354_s9 + $0x48c] sm:$0xf]  ;;  %v6538_v11 = vor.u32 %v9107_v3, %v6535_v5  ;;  %v9072_v2 = vld [vmem:[%s10354_s9 + $0x16c] sm:$0xf0] }
  0xec   : > { %2136 = vmatmul.bf16.vlgmr.msra.gmra.mxu3 %v10481_v37  ;;  %v6791_v7 = vld [vmem:[%s10354_s9 + $0x4a8] sm:$0xf0]  ;;  %v6637_v3 = vld [vmem:[%s10354_s9 + $0x350] sm:$0xf] }
  0xed   : > { %2180 = vmatpush.bf16.msrb.mxu3 %v7210_v16  ;;  %2155 = vmatpush.bf16.msrb.mxu1 %v6666_v23  ;;  %v9235_v8 = vld [vmem:[%s10354_s9 + $0x68c] sm:$0xf]  ;;  %v6794_v12 = vor.u32 %v9171_v6, %v6791_v7  ;;  %v9136_v5 = vld [vmem:[%s10354_s9 + $0x36c] sm:$0xf0] }
  0xee   : > { %v7047_v9 = vld [vmem:[%s10354_s9 + $0x6a8] sm:$0xf0]  ;;  %v6893_v6 = vld [vmem:[%s10354_s9 + $0x550] sm:$0xf] }
  0xef   : > { %2168 = vmatpush.bf16.msrb.mxu2 %v6922_v24  ;;  %2143 = vmatpush.bf16.msrb.mxu0 %v6378_v36  ;;  %v9035_v13 = vld [vmem:[%s10354_s9 + $0x4c] sm:$0xf]  ;;  %v7050_v16 = vor.u32 %v9235_v8, %v7047_v9  ;;  %v6445_v36 = vld [vmem:[%s10354_s9 + $0x1d0] sm:$0xf] }
  0xf0   : > { %v6247_v14 = vld [vmem:[%s10354_s9 + $0x68] sm:$0xf0]  ;;  %v9200_v7 = vld [vmem:[%s10354_s9 + $0x56c] sm:$0xf0] }
  0xf1   : > { %2181 = vmatpush.bf16.msrb.mxu3 %v7178_v28  ;;  %2156 = vmatpush.bf16.msrb.mxu1 %v6634_v39  ;;  %v9099_v15 = vld [vmem:[%s10354_s9 + $0x24c] sm:$0xf]  ;;  %v6250_v22 = vor.u32 %v9035_v13, %v6247_v14  ;;  %v9088_v39 = vld [vmem:[%s10354_s9 + $0x1ec] sm:$0xf0] }
  0xf2   : > { %v6503_v17 = vld [vmem:[%s10354_s9 + $0x268] sm:$0xf0]  ;;  %v7149_v8 = vld [vmem:[%s10354_s9 + $0x750] sm:$0xf] }
  0xf3   : > { %2169 = vmatpush.bf16.msrb.mxu2 %v6890_v40  ;;  %2144 = vmatpush.bf16.msrb.mxu0 %v6346_v50  ;;  %v9163_v18 = vld [vmem:[%s10354_s9 + $0x44c] sm:$0xf]  ;;  %v6506_v25 = vor.u32 %v9099_v15, %v6503_v17  ;;  %v6701_v40 = vld [vmem:[%s10354_s9 + $0x3d0] sm:$0xf]  ;;  %v6446_v50 = vor.u32 %v9088_v39, %v6445_v36 }
  0xf4   : > { %v6759_v19 = vld [vmem:[%s10354_s9 + $0x468] sm:$0xf0]  ;;  %v9264_v9 = vld [vmem:[%s10354_s9 + $0x76c] sm:$0xf0] }
  0xf5   : > { %2182 = vmatpush.bf16.msrb.mxu3 %v7146_v44  ;;  %2157 = vmatpush.bf16.msrb.mxu1 %v6602_v51  ;;  %v9227_v20 = vld [vmem:[%s10354_s9 + $0x64c] sm:$0xf]  ;;  %v6762_v26 = vor.u32 %v9163_v18, %v6759_v19  ;;  %v9216_v44 = vld [vmem:[%s10354_s9 + $0x5ec] sm:$0xf0]  ;;  %v6702_v51 = vor.u32 %v9152_v42, %v6701_v40 }
  0xf6   : > { %v7015_v21 = vld [vmem:[%s10354_s9 + $0x668] sm:$0xf0]  ;;  %v6605_v13 = vld [vmem:[%s10354_s9 + $0x310] sm:$0xf] }
  0xf7   : > { %2170 = vmatpush.bf16.msrb.mxu2 %v6858_v52  ;;  %2145 = vmatpush.bf16.msrb.mxu0 %v6314_v62  ;;  %v9027_v23 = vld [vmem:[%s10354_s9 + $0xc] sm:$0xf]  ;;  %v7018_v30 = vor.u32 %v9227_v20, %v7015_v21  ;;  %v6958_v52 = vor.u32 %v9216_v44, %v6957_v43  ;;  %v6414_v62 = vor.u32 %v9080_v54, %v6413_v53  ;;  %v9128_v14 = vld [vmem:[%s10354_s9 + $0x32c] sm:$0xf0] }
  0xf8   : > { %v6215_v24 = vld [vmem:[%s10354_s9 + $0x28] sm:$0xf0]  ;;  %v6861_v15 = vld [vmem:[%s10354_s9 + $0x510] sm:$0xf]  ;;  %v6606_v19 = vor.u32 %v9128_v14, %v6605_v13  ;;  %v9276_v13 = vld [vmem:[%s10354_s9 + $0x7d4] sm:$0xf] }
  0xf9   : > { %2183 = vmatpush.bf16.msrb.mxu3 %v7114_v56  ;;  %2158 = vmatpush.bf16.msrb.mxu1 %v6570_v63  ;;  %v9091_v27 = vld [vmem:[%s10354_s9 + $0x20c] sm:$0xf]  ;;  %v6218_v41 = vor.u32 %v9027_v23, %v6215_v24  ;;  %v7214_v56 = vor.u32 %v9280_v48, %v7213_v47  ;;  %v6670_v63 = vor.u32 %v9144_v57, %v6669_v55  ;;  %v9256_v17 = vld [vmem:[%s10354_s9 + $0x72c] sm:$0xf0] }
  0xfa   : > { %v6471_v28 = vld [vmem:[%s10354_s9 + $0x228] sm:$0xf0]  ;;  %v6317_v21 = vld [vmem:[%s10354_s9 + $0xd0] sm:$0xf] }
  0xfb   : > { %2171 = vmatpush.bf16.msrb.mxu2 %v6826_v0  ;;  %2146 = vmatpush.bf16.msrb.mxu0 %v6282_v10  ;;  %v9155_v29 = vld [vmem:[%s10354_s9 + $0x40c] sm:$0xf]  ;;  %v6474_v45 = vor.u32 %v9091_v27, %v6471_v28  ;;  %v6926_v0 = vor.u32 %v9208_v59, %v6925_v58  ;;  %v6638_v10 = vor.u32 %v9136_v5, %v6637_v3  ;;  %v6573_v23 = vld [vmem:[%s10354_s9 + $0x2d0] sm:$0xf] }
  0xfc   : > { %v6727_v31 = vld [vmem:[%s10354_s9 + $0x428] sm:$0xf0]  ;;  %v9184_v27 = vld [vmem:[%s10354_s9 + $0x4ec] sm:$0xf0] }
  0xfd   : > { %2184 = vmatpush.bf16.msrb.mxu3 %v7082_v4  ;;  %2159 = vmatpush.bf16.msrb.mxu1 %v6538_v11  ;;  %v9219_v32 = vld [vmem:[%s10354_s9 + $0x60c] sm:$0xf]  ;;  %v6730_v46 = vor.u32 %v9155_v29, %v6727_v31  ;;  %v7182_v4 = vor.u32 %v9272_v61, %v7181_v60  ;;  %v6894_v11 = vor.u32 %v9200_v7, %v6893_v6  ;;  %v7085_v28 = vld [vmem:[%s10354_s9 + $0x6d0] sm:$0xf]  ;;  %v9084_v6 = vld [vmem:[%s10354_s9 + $0x1d4] sm:$0xf] }
  0xfe   : > { %v6983_v33 = vld [vmem:[%s10354_s9 + $0x628] sm:$0xf0]  ;;  %v9248_v29 = vld [vmem:[%s10354_s9 + $0x6ec] sm:$0xf0]  ;;  %v6447_v7 = vld [vmem:[%s10354_s9 + $0x1f0] sm:$0xf0] }
  0xff   : > { %2172 = vmatpush.bf16.msrb.mxu2 %v6794_v12  ;;  %2147 = vmatpush.bf16.msrb.mxu0 %v6250_v22  ;;  %v6986_v49 = vor.u32 %v9219_v32, %v6983_v33  ;;  %v6349_v12 = vld [vmem:[%s10354_s9 + $0x110] sm:$0xf]  ;;  %v7086_v40 = vor.u32 %v9248_v29, %v7085_v28  ;;  %v9068_v29 = vld [vmem:[%s10354_s9 + $0x154] sm:$0xf] }
 0x100   : > { %v9056_v22 = vld [vmem:[%s10354_s9 + $0xec] sm:$0xf0] }
 0x101   : > { %2185 = vmatpush.bf16.msrb.mxu3 %v7050_v16  ;;  %2160 = vmatpush.bf16.msrb.mxu1 %v6506_v25  ;;  %v9192_v16 = vld [vmem:[%s10354_s9 + $0x52c] sm:$0xf0] }
 0x102   : > { %v6862_v20 = vor.u32 %v9192_v16, %v6861_v15  ;;  %v9120_v25 = vld [vmem:[%s10354_s9 + $0x2ec] sm:$0xf0]  ;;  %v6450_v15 = vor.u32 %v9084_v6, %v6447_v7 }
 0x103   : > { %2173 = vmatpush.bf16.msrb.mxu2 %v6762_v26  ;;  %2148 = vmatpush.bf16.msrb.mxu0 %v6218_v41  ;;  %v6829_v26 = vld [vmem:[%s10354_s9 + $0x4d0] sm:$0xf]  ;;  %v6574_v31 = vor.u32 %v9120_v25, %v6573_v23  ;;  %v6927_v23 = vld [vmem:[%s10354_s9 + $0x5b0] sm:$0xf0] }
 0x104   : > { %v6830_v32 = vor.u32 %v9184_v27, %v6829_v26  ;;  %v6285_v33 = vld [vmem:[%s10354_s9 + $0x90] sm:$0xf]  ;;  %v7183_v25 = vld [vmem:[%s10354_s9 + $0x7b0] sm:$0xf0] }
 0x105   : > { %2186 = vmatpush.bf16.msrb.mxu3 %v7018_v30  ;;  %2161 = vmatpush.bf16.msrb.mxu1 %v6474_v45  ;;  %v6318_v30 = vor.u32 %v9056_v22, %v6317_v21  ;;  %v9048_v36 = vld [vmem:[%s10354_s9 + $0xac] sm:$0xf0]  ;;  %v6671_v21 = vld [vmem:[%s10354_s9 + $0x3b0] sm:$0xf0] }
 0x106   : > { %2149 = vmatmul.bf16.vlgmr.msrb.gmra.mxu0 %v10478_v35  ;;  %v7150_v35 = vor.u32 %v9264_v9, %v7149_v8  ;;  %v6541_v39 = vld [vmem:[%s10354_s9 + $0x290] sm:$0xf]  ;;  %v9148_v8 = vld [vmem:[%s10354_s9 + $0x3d4] sm:$0xf] }
 0x107   : > { %2174 = vmatpush.bf16.msrb.mxu2 %v6730_v46  ;;  %2193 = vmatpush.bf16.msra.mxu0 %v6446_v50  ;;  %v9112_v41 = vld [vmem:[%s10354_s9 + $0x2ac] sm:$0xf0]  ;;  %v6286_v46 = vor.u32 %v9048_v36, %v6285_v33  ;;  %v9204_v22 = vld [vmem:[%s10354_s9 + $0x594] sm:$0xf] }
 0x108   : > { %2162 = vmatmul.bf16.vlgmr.msrb.gmra.mxu1 %v10483_v38  ;;  %v7117_v38 = vld [vmem:[%s10354_s9 + $0x710] sm:$0xf]  ;;  %v6542_v47 = vor.u32 %v9112_v41, %v6541_v39  ;;  %v6930_v28 = vor.u32 %v9204_v22, %v6927_v23  ;;  %v6639_v33 = vld [vmem:[%s10354_s9 + $0x370] sm:$0xf0] }
 0x109   : > { %2187 = vmatpush.bf16.msrb.mxu3 %v6986_v49  ;;  %2206 = vmatpush.bf16.msra.mxu1 %v6702_v51  ;;  %v7118_v24 = vor.u32 %v9256_v17, %v7117_v38  ;;  %v6797_v42 = vld [vmem:[%s10354_s9 + $0x490] sm:$0xf]  ;;  %v9076_v17 = vld [vmem:[%s10354_s9 + $0x194] sm:$0xf] }
 0x10a   : > { %2175 = vmatmul.bf16.vlgmr.msrb.gmra.mxu2 %v10476_v34  ;;  %v6382_v34 = vor.u32 %v9072_v2, %v6381_v1  ;;  %v9176_v43 = vld [vmem:[%s10354_s9 + $0x4ac] sm:$0xf0]  ;;  %v9196_v36 = vld [vmem:[%s10354_s9 + $0x554] sm:$0xf] }
 0x10b   : > { %2219 = vmatpush.bf16.msra.mxu2 %v6958_v52  ;;  %2194 = vmatpush.bf16.msra.mxu0 %v6414_v62  ;;  %v7053_v44 = vld [vmem:[%s10354_s9 + $0x690] sm:$0xf]  ;;  %v6798_v48 = vor.u32 %v9176_v43, %v6797_v42  ;;  %v6895_v39 = vld [vmem:[%s10354_s9 + $0x570] sm:$0xf0] }
 0x10c   : > { %2188 = vmatmul.bf16.vlgmr.msrb.gmra.mxu3 %v10481_v37  ;;  %v9064_v37 = vld [vmem:[%s10354_s9 + $0x12c] sm:$0xf0]  ;;  %v9260_v41 = vld [vmem:[%s10354_s9 + $0x754] sm:$0xf] }
 0x10d   : > { %2232 = vmatpush.bf16.msra.mxu3 %v7214_v56  ;;  %2207 = vmatpush.bf16.msra.mxu1 %v6670_v63  ;;  %v6350_v18 = vor.u32 %v9064_v37, %v6349_v12  ;;  %v9240_v45 = vld [vmem:[%s10354_s9 + $0x6ac] sm:$0xf0]  ;;  %v7151_v42 = vld [vmem:[%s10354_s9 + $0x770] sm:$0xf0] }
 0x10e   : > { %v6253_v49 = vld [vmem:[%s10354_s9 + $0x50] sm:$0xf]  ;;  %v7054_v52 = vor.u32 %v9240_v45, %v7053_v44  ;;  %v10751_v43 = vld [vmem:[#allocation1 + $0x1b] sm:$0xff] }
 0x10f   : > { %2220 = vmatpush.bf16.msra.mxu2 %v6926_v0  ;;  %2195 = vmatpush.bf16.msra.mxu0 %v6382_v34  ;;  %v9040_v50 = vld [vmem:[%s10354_s9 + $0x6c] sm:$0xf0]  ;;  %v6703_v34 = vld [vmem:[%s10354_s9 + $0x3f0] sm:$0xf0]  ;;  %v10754_v44 = vld [vmem:[#allocation1] sm:$0xff] }
 0x110   : > { %v6509_v51 = vld [vmem:[%s10354_s9 + $0x250] sm:$0xf]  ;;  %v6254_v58 = vor.u32 %v9040_v50, %v6253_v49  ;;  %v6706_v16 = vor.u32 %v9148_v8, %v6703_v34  ;;  %v9060_v49 = vld [vmem:[%s10354_s9 + $0x114] sm:$0xf] }
 0x111   : > { %2233 = vmatpush.bf16.msra.mxu3 %v7182_v4  ;;  %2208 = vmatpush.bf16.msra.mxu1 %v6638_v10  ;;  %v9104_v53 = vld [vmem:[%s10354_s9 + $0x26c] sm:$0xf0]  ;;  %v9212_v10 = vld [vmem:[%s10354_s9 + $0x5d4] sm:$0xf] }
 0x112   : > { %v6765_v54 = vld [vmem:[%s10354_s9 + $0x450] sm:$0xf]  ;;  %v6510_v61 = vor.u32 %v9104_v53, %v6509_v51  ;;  %v6351_v50 = vld [vmem:[%s10354_s9 + $0x130] sm:$0xf0] }
 0x113   : > { %2221 = vmatpush.bf16.msra.mxu2 %v6894_v11  ;;  %2196 = vmatpush.bf16.msra.mxu0 %v6350_v18  ;;  %v9168_v55 = vld [vmem:[%s10354_s9 + $0x46c] sm:$0xf0]  ;;  %v6959_v11 = vld [vmem:[%s10354_s9 + $0x5f0] sm:$0xf0] }
 0x114   : > { %v7021_v56 = vld [vmem:[%s10354_s9 + $0x650] sm:$0xf]  ;;  %v6766_v62 = vor.u32 %v9168_v55, %v6765_v54  ;;  %v6962_v38 = vor.u32 %v9212_v10, %v6959_v11  ;;  %v6415_v18 = vld [vmem:[%s10354_s9 + $0x1b0] sm:$0xf0] }
 0x115   : > { %2234 = vmatpush.bf16.msra.mxu3 %v7150_v35  ;;  %2209 = vmatpush.bf16.msra.mxu1 %v6606_v19  ;;  %v9232_v57 = vld [vmem:[%s10354_s9 + $0x66c] sm:$0xf0]  ;;  %v7215_v35 = vld [vmem:[%s10354_s9 + $0x7f0] sm:$0xf0]  ;;  %v6418_v26 = vor.u32 %v9076_v17, %v6415_v18 }
 0x116   : > { %v6221_v59 = vld [vmem:[%s10354_s9 + $0x10] sm:$0xf]  ;;  %v7022_v2 = vor.u32 %v9232_v57, %v7021_v56  ;;  %v9140_v19 = vld [vmem:[%s10354_s9 + $0x394] sm:$0xf] }
 0x117   : > { %2222 = vmatpush.bf16.msra.mxu2 %v6862_v20  ;;  %2197 = vmatpush.bf16.msra.mxu0 %v6318_v30  ;;  %v9032_v60 = vld [vmem:[%s10354_s9 + $0x2c] sm:$0xf0]  ;;  %v7218_v20 = vor.u32 %v9276_v13, %v7215_v35  ;;  %v6674_v27 = vor.u32 %v9140_v19, %v6671_v21  ;;  %v6383_v30 = vld [vmem:[%s10354_s9 + $0x170] sm:$0xf0] }
 0x118   : > { %v6477_v63 = vld [vmem:[%s10354_s9 + $0x210] sm:$0xf]  ;;  %v6222_v9 = vor.u32 %v9032_v60, %v6221_v59  ;;  %v6386_v45 = vor.u32 %v9068_v29, %v6383_v30  ;;  %v9124_v51 = vld [vmem:[%s10354_s9 + $0x314] sm:$0xf] }
 0x119   : > { %2235 = vmatpush.bf16.msra.mxu3 %v7118_v24  ;;  %2210 = vmatpush.bf16.msra.mxu1 %v6574_v31  ;;  %v9096_v0 = vld [vmem:[%s10354_s9 + $0x22c] sm:$0xf0]  ;;  %v9268_v24 = vld [vmem:[%s10354_s9 + $0x794] sm:$0xf] }
 0x11a   : > { %v6733_v1 = vld [vmem:[%s10354_s9 + $0x410] sm:$0xf]  ;;  %v6478_v12 = vor.u32 %v9096_v0, %v6477_v63  ;;  %v9132_v31 = vld [vmem:[%s10354_s9 + $0x354] sm:$0xf] }
 0x11b   : > { %2223 = vmatpush.bf16.msra.mxu2 %v6830_v32  ;;  %2198 = vmatpush.bf16.msra.mxu0 %v6286_v46  ;;  %v9160_v3 = vld [vmem:[%s10354_s9 + $0x42c] sm:$0xf0]  ;;  %v7186_v32 = vor.u32 %v9268_v24, %v7183_v25  ;;  %v10757_v46 = vld [vmem:[#allocation1 + $0x9] sm:$0xff]  ;;  %v6607_v53 = vld [vmem:[%s10354_s9 + $0x330] sm:$0xf0] }
 0x11c   : > { %v6989_v4 = vld [vmem:[%s10354_s9 + $0x610] sm:$0xf]  ;;  %v6734_v37 = vor.u32 %v9160_v3, %v6733_v1  ;;  %v9188_v54 = vld [vmem:[%s10354_s9 + $0x514] sm:$0xf]  ;;  %v6610_v59 = vor.u32 %v9124_v51, %v6607_v53  ;;  %v9089_v53 = vld [vmem:[%s10354_s9 + $0x1f4] sm:$0xf0] }
 0x11d   : > { %2236 = vmatpush.bf16.msra.mxu3 %v7086_v40  ;;  %2211 = vmatpush.bf16.msra.mxu1 %v6542_v47  ;;  %v9224_v5 = vld [vmem:[%s10354_s9 + $0x62c] sm:$0xf0]  ;;  %v6642_v47 = vor.u32 %v9132_v31, %v6639_v33  ;;  %v6863_v55 = vld [vmem:[%s10354_s9 + $0x530] sm:$0xf0] }
 0x11e   : > { %v6990_v14 = vor.u32 %v9224_v5, %v6989_v4  ;;  %v10746_v40 = vld [vmem:[#allocation1 + $0x12] sm:$0xff]  ;;  %v9252_v56 = vld [vmem:[%s10354_s9 + $0x714] sm:$0xf]  ;;  %v6866_v60 = vor.u32 %v9188_v54, %v6863_v55  ;;  %v6709_v54 = vld [vmem:[%s10354_s9 + $0x3d8] sm:$0xf] }
 0x11f   : > { %2224 = vmatpush.bf16.msra.mxu2 %v6798_v48  ;;  %2199 = vmatpush.bf16.msra.mxu0 %v6254_v58  ;;  %v6898_v48 = vor.u32 %v9196_v36, %v6895_v39  ;;  %v7119_v57 = vld [vmem:[%s10354_s9 + $0x730] sm:$0xf0]  ;;  %v6354_v58 = vor.u32 %v9060_v49, %v6351_v50 }
 0x120   : > { %v9116_v63 = vld [vmem:[%s10354_s9 + $0x2d4] sm:$0xf]  ;;  %v7122_v0 = vor.u32 %v9252_v56, %v7119_v57 }
 0x121   : > { %2237 = vmatpush.bf16.msra.mxu3 %v7054_v52  ;;  %2212 = vmatpush.bf16.msra.mxu1 %v6510_v61  ;;  %v7154_v52 = vor.u32 %v9260_v41, %v7151_v42  ;;  %v9052_v61 = vld [vmem:[%s10354_s9 + $0xd4] sm:$0xf] }
 0x122   : > { %v6575_v1 = vld [vmem:[%s10354_s9 + $0x2f0] sm:$0xf0] }
 0x123   : > { %2225 = vmatpush.bf16.msra.mxu2 %v6766_v62  ;;  %2200 = vmatpush.bf16.msra.mxu0 %v6222_v9  ;;  %v6319_v62 = vld [vmem:[%s10354_s9 + $0xf0] sm:$0xf0]  ;;  %v6578_v7 = vor.u32 %v9116_v63, %v6575_v1  ;;  %v9281_v1 = vld [vmem:[%s10354_s9 + $0x7f4] sm:$0xf0] }
 0x124   : > { %v6831_v3 = vld [vmem:[%s10354_s9 + $0x4f0] sm:$0xf0]  ;;  %v6322_v6 = vor.u32 %v9052_v61, %v6319_v62 }
 0x125   : > { %2238 = vmatpush.bf16.msra.mxu3 %v7022_v2  ;;  %2213 = vmatpush.bf16.msra.mxu1 %v6478_v12  ;;  %v9180_v2 = vld [vmem:[%s10354_s9 + $0x4d4] sm:$0xf] }
 0x126   : > { %2201 = vmatmul.bf16.vlgmr.msra.gmra.mxu0 %v10754_v44  ;;  %v9244_v4 = vld [vmem:[%s10354_s9 + $0x6d4] sm:$0xf]  ;;  %v6834_v8 = vor.u32 %v9180_v2, %v6831_v3 }
 0x127   : > { %2226 = vmatpush.bf16.msra.mxu2 %v6734_v37  ;;  %2245 = vmatpush.bf16.msrb.mxu0 %v6450_v15  ;;  %v7087_v5 = vld [vmem:[%s10354_s9 + $0x6f0] sm:$0xf0]  ;;  %v1994_v15 = vpop.f32.mrf.mxu0 }
 0x128   : > { %2214 = vmatmul.bf16.vlgmr.msra.gmra.mxu1 %v10757_v46  ;;  %v9044_v9 = vld [vmem:[%s10354_s9 + $0x94] sm:$0xf]  ;;  %v7090_v11 = vor.u32 %v9244_v4, %v7087_v5 }
 0x129   : > { %2239 = vmatpush.bf16.msra.mxu3 %v6990_v14  ;;  %2258 = vmatpush.bf16.msrb.mxu1 %v6706_v16  ;;  %v6287_v34 = vld [vmem:[%s10354_s9 + $0xb0] sm:$0xf0] }
 0x12a   : > { %2227 = vmatmul.bf16.vlgmr.msra.gmra.mxu2 %v10746_v40  ;;  %v9108_v10 = vld [vmem:[%s10354_s9 + $0x294] sm:$0xf]  ;;  %v6290_v16 = vor.u32 %v9044_v9, %v6287_v34 }
 0x12b   : > { %2271 = vmatpush.bf16.msrb.mxu2 %v6962_v38  ;;  %2246 = vmatpush.bf16.msrb.mxu0 %v6418_v26  ;;  %v6543_v12 = vld [vmem:[%s10354_s9 + $0x2b0] sm:$0xf0]  ;;  %v2007_v38 = vpop.f32.mrf.mxu1 }
 0x12c   : > { %2240 = vmatmul.bf16.vlgmr.msra.gmra.mxu3 %v10751_v43  ;;  %v9172_v37 = vld [vmem:[%s10354_s9 + $0x494] sm:$0xf]  ;;  %v6546_v17 = vor.u32 %v9108_v10, %v6543_v12  ;;  %v2008_v22 = vadd.f32 %v2007_v38, %v1994_v15  ;;  %v9145_v10 = vld [vmem:[%s10354_s9 + $0x3b4] sm:$0xf0] }
 0x12d   : > { %2284 = vmatpush.bf16.msrb.mxu3 %v7218_v20  ;;  %2259 = vmatpush.bf16.msrb.mxu1 %v6674_v27  ;;  %v6799_v13 = vld [vmem:[%s10354_s9 + $0x4b0] sm:$0xf0]  ;;  %v2020_v29 = vpop.f32.mrf.mxu2  ;;  %v9209_v12 = vld [vmem:[%s10354_s9 + $0x5b4] sm:$0xf0] }
 0x12e   : > { %v9236_v35 = vld [vmem:[%s10354_s9 + $0x694] sm:$0xf]  ;;  %v6802_v18 = vor.u32 %v9172_v37, %v6799_v13  ;;  %v2021_v33 = vadd.f32 %v2020_v29, %v2008_v22  ;;  %v7189_v37 = vld [vmem:[%s10354_s9 + $0x798] sm:$0xf] }
 0x12f   : > { %2272 = vmatpush.bf16.msrb.mxu2 %v6930_v28  ;;  %2247 = vmatpush.bf16.msrb.mxu0 %v6386_v45  ;;  %v7055_v14 = vld [vmem:[%s10354_s9 + $0x6b0] sm:$0xf0]  ;;  %v2033_v51 = vpop.f32.mrf.mxu3  ;;  %v1996_v56 = vpop.f32.mrf.mxu0  ;;  %v9273_v13 = vld [vmem:[%s10354_s9 + $0x7b4] sm:$0xf0] }
 0x130   : > { %v9036_v19 = vld [vmem:[%s10354_s9 + $0x54] sm:$0xf]  ;;  %v7058_v23 = vor.u32 %v9236_v35, %v7055_v14  ;;  %v10803_v55 = vadd.f32 %v2033_v51, %v2021_v33  ;;  %v6389_v38 = vld [vmem:[%s10354_s9 + $0x158] sm:$0xf] }
 0x131   : > { %2285 = vmatpush.bf16.msrb.mxu3 %v7186_v32  ;;  %2260 = vmatpush.bf16.msrb.mxu1 %v6642_v47  ;;  %v6255_v20 = vld [vmem:[%s10354_s9 + $0x70] sm:$0xf0]  ;;  %v9201_v22 = vld [vmem:[%s10354_s9 + $0x574] sm:$0xf0] }
 0x132   : > { %v9100_v21 = vld [vmem:[%s10354_s9 + $0x254] sm:$0xf]  ;;  %v6258_v30 = vor.u32 %v9036_v19, %v6255_v20  ;;  %v7190_v19 = vor.u32 %v9273_v13, %v7189_v37  ;;  %v9137_v20 = vld [vmem:[%s10354_s9 + $0x374] sm:$0xf0] }
 0x133   : > { %2273 = vmatpush.bf16.msrb.mxu2 %v6898_v48  ;;  %2248 = vmatpush.bf16.msrb.mxu0 %v6354_v58  ;;  %v6511_v24 = vld [vmem:[%s10354_s9 + $0x270] sm:$0xf0]  ;;  %v9153_v58 = vld [vmem:[%s10354_s9 + $0x3f4] sm:$0xf0]  ;;  %v2009_v61 = vpop.f32.mrf.mxu1 }
 0x134   : > { %v9164_v25 = vld [vmem:[%s10354_s9 + $0x454] sm:$0xf]  ;;  %v6514_v36 = vor.u32 %v9100_v21, %v6511_v24  ;;  %v6710_v4 = vor.u32 %v9153_v58, %v6709_v54  ;;  %v6901_v21 = vld [vmem:[%s10354_s9 + $0x558] sm:$0xf] }
 0x135   : > { %2286 = vmatpush.bf16.msrb.mxu3 %v7154_v52  ;;  %2261 = vmatpush.bf16.msrb.mxu1 %v6610_v59  ;;  %v6767_v26 = vld [vmem:[%s10354_s9 + $0x470] sm:$0xf0]  ;;  %v6453_v52 = vld [vmem:[%s10354_s9 + $0x1d8] sm:$0xf]  ;;  %v2022_v9 = vpop.f32.mrf.mxu2 }
 0x136   : > { %v9228_v27 = vld [vmem:[%s10354_s9 + $0x654] sm:$0xf]  ;;  %v6770_v39 = vor.u32 %v9164_v25, %v6767_v26  ;;  %v6965_v59 = vld [vmem:[%s10354_s9 + $0x5d8] sm:$0xf]  ;;  %v6454_v3 = vor.u32 %v9089_v53, %v6453_v52 }
 0x137   : > { %2274 = vmatpush.bf16.msrb.mxu2 %v6866_v60  ;;  %2249 = vmatpush.bf16.msrb.mxu0 %v6322_v6  ;;  %v7023_v28 = vld [vmem:[%s10354_s9 + $0x670] sm:$0xf0]  ;;  %v9217_v60 = vld [vmem:[%s10354_s9 + $0x5f4] sm:$0xf0]  ;;  %v2035_v14 = vpop.f32.mrf.mxu3 }
 0x138   : > { %v9028_v31 = vld [vmem:[%s10354_s9 + $0x14] sm:$0xf]  ;;  %v7026_v47 = vor.u32 %v9228_v27, %v7023_v28  ;;  %v6966_v5 = vor.u32 %v9217_v60, %v6965_v59  ;;  %v6421_v6 = vld [vmem:[%s10354_s9 + $0x198] sm:$0xf]  ;;  %v6902_v27 = vor.u32 %v9201_v22, %v6901_v21 }
 0x139   : > { %2287 = vmatpush.bf16.msrb.mxu3 %v7122_v0  ;;  %2262 = vmatpush.bf16.msrb.mxu1 %v6578_v7  ;;  %v6223_v32 = vld [vmem:[%s10354_s9 + $0x30] sm:$0xf0]  ;;  %v7221_v0 = vld [vmem:[%s10354_s9 + $0x7d8] sm:$0xf] }
 0x13a   : > { %v9092_v41 = vld [vmem:[%s10354_s9 + $0x214] sm:$0xf]  ;;  %v6226_v57 = vor.u32 %v9028_v31, %v6223_v32  ;;  %v9081_v7 = vld [vmem:[%s10354_s9 + $0x1b4] sm:$0xf0]  ;;  %v7222_v34 = vor.u32 %v9281_v1, %v7221_v0 }
 0x13b   : > { %2275 = vmatpush.bf16.msrb.mxu2 %v6834_v8  ;;  %2250 = vmatpush.bf16.msrb.mxu0 %v6290_v16  ;;  %v6479_v42 = vld [vmem:[%s10354_s9 + $0x230] sm:$0xf0]  ;;  %v6677_v8 = vld [vmem:[%s10354_s9 + $0x398] sm:$0xf]  ;;  %v6422_v35 = vor.u32 %v9081_v7, %v6421_v6 }
 0x13c   : > { %v9156_v45 = vld [vmem:[%s10354_s9 + $0x414] sm:$0xf]  ;;  %v6482_v62 = vor.u32 %v9092_v41, %v6479_v42  ;;  %v6678_v15 = vor.u32 %v9145_v10, %v6677_v8  ;;  %v9265_v24 = vld [vmem:[%s10354_s9 + $0x774] sm:$0xf0] }
 0x13d   : > { %2288 = vmatpush.bf16.msrb.mxu3 %v7090_v11  ;;  %2263 = vmatpush.bf16.msrb.mxu1 %v6546_v17  ;;  %v6735_v48 = vld [vmem:[%s10354_s9 + $0x430] sm:$0xf0]  ;;  %v6933_v11 = vld [vmem:[%s10354_s9 + $0x598] sm:$0xf] }
 0x13e   : > { %v9220_v49 = vld [vmem:[%s10354_s9 + $0x614] sm:$0xf]  ;;  %v6738_v63 = vor.u32 %v9156_v45, %v6735_v48  ;;  %v6934_v16 = vor.u32 %v9209_v12, %v6933_v11  ;;  %v9073_v17 = vld [vmem:[%s10354_s9 + $0x174] sm:$0xf0] }
 0x13f   : > { %2276 = vmatpush.bf16.msrb.mxu2 %v6802_v18  ;;  %v6991_v50 = vld [vmem:[%s10354_s9 + $0x630] sm:$0xf0]  ;;  %2251 = vmatpush.bf16.msrb.mxu0 %v6258_v30  ;;  %v6645_v18 = vld [vmem:[%s10354_s9 + $0x358] sm:$0xf]  ;;  %v6390_v25 = vor.u32 %v9073_v17, %v6389_v38 }
 0x140   : > { %v6994_v2 = vor.u32 %v9220_v49, %v6991_v50  ;;  %v6646_v26 = vor.u32 %v9137_v20, %v6645_v18  ;;  %v6357_v28 = vld [vmem:[%s10354_s9 + $0x118] sm:$0xf] }
 0x141   : > { %2289 = vmatpush.bf16.msrb.mxu3 %v7058_v23  ;;  %2264 = vmatpush.bf16.msrb.mxu1 %v6514_v36  ;;  %v7157_v23 = vld [vmem:[%s10354_s9 + $0x758] sm:$0xf] }
 0x142   : > { %v9065_v29 = vld [vmem:[%s10354_s9 + $0x134] sm:$0xf0]  ;;  %v7158_v31 = vor.u32 %v9265_v24, %v7157_v23 }
 0x143   : > { %2277 = vmatpush.bf16.msrb.mxu2 %v6770_v39  ;;  %2252 = vmatpush.bf16.msrb.mxu0 %v6226_v57  ;;  %v6613_v30 = vld [vmem:[%s10354_s9 + $0x318] sm:$0xf]  ;;  %v6358_v42 = vor.u32 %v9065_v29, %v6357_v28  ;;  %v10838_v45 = vpop.f32.mrf.mxu0 }
 0x144   : > { %v9129_v32 = vld [vmem:[%s10354_s9 + $0x334] sm:$0xf0] }
 0x145   : > { %2290 = vmatpush.bf16.msrb.mxu3 %v7026_v47  ;;  %2265 = vmatpush.bf16.msrb.mxu1 %v6482_v62  ;;  %v6869_v33 = vld [vmem:[%s10354_s9 + $0x518] sm:$0xf]  ;;  %v6614_v47 = vor.u32 %v9129_v32, %v6613_v30  ;;  %v10840_v49 = vpop.f32.mrf.mxu1 }
 0x146   : > { %2253 = vmatmul.bf16.vlgmr.msrb.gmra.mxu0 %v10754_v44  ;;  %v9193_v36 = vld [vmem:[%s10354_s9 + $0x534] sm:$0xf0] }
 0x147   : > { %2278 = vmatpush.bf16.msrb.mxu2 %v6738_v63  ;;  %2297 = vmatpush.bf16.msra.mxu0 %v6454_v3  ;;  %v7125_v39 = vld [vmem:[%s10354_s9 + $0x718] sm:$0xf]  ;;  %v6870_v48 = vor.u32 %v9193_v36, %v6869_v33  ;;  %v9085_v36 = vld [vmem:[%s10354_s9 + $0x1dc] sm:$0xf] }
 0x148   : > { %2266 = vmatmul.bf16.vlgmr.msrb.gmra.mxu1 %v10757_v46  ;;  %v9257_v41 = vld [vmem:[%s10354_s9 + $0x734] sm:$0xf0] }
 0x149   : > { %2291 = vmatpush.bf16.msrb.mxu3 %v6994_v2  ;;  %2310 = vmatpush.bf16.msra.mxu1 %v6710_v4  ;;  %v6325_v50 = vld [vmem:[%s10354_s9 + $0xd8] sm:$0xf]  ;;  %v7126_v53 = vor.u32 %v9257_v41, %v7125_v39  ;;  %v6455_v39 = vld [vmem:[%s10354_s9 + $0x1f8] sm:$0xf0] }
 0x14a   : > { %2279 = vmatmul.bf16.vlgmr.msrb.gmra.mxu2 %v10746_v40  ;;  %v9057_v51 = vld [vmem:[%s10354_s9 + $0xf4] sm:$0xf0]  ;;  %v9149_v41 = vld [vmem:[%s10354_s9 + $0x3dc] sm:$0xf] }
 0x14b   : > { %2323 = vmatpush.bf16.msra.mxu2 %v6966_v5  ;;  %2298 = vmatpush.bf16.msra.mxu0 %v6422_v35  ;;  %v6581_v52 = vld [vmem:[%s10354_s9 + $0x2d8] sm:$0xf]  ;;  %v6326_v60 = vor.u32 %v9057_v51, %v6325_v50  ;;  %v2048_v10 = vpop.f32.mrf.mxu0  ;;  %v6967_v50 = vld [vmem:[%s10354_s9 + $0x5f8] sm:$0xf0] }
 0x14c   : > { %2292 = vmatmul.bf16.vlgmr.msrb.gmra.mxu3 %v10751_v43  ;;  %v9121_v54 = vld [vmem:[%s10354_s9 + $0x2f4] sm:$0xf0]  ;;  %v6391_v10 = vld [vmem:[%s10354_s9 + $0x178] sm:$0xf0] }
 0x14d   : > { %2336 = vmatpush.bf16.msra.mxu3 %v7222_v34  ;;  %2311 = vmatpush.bf16.msra.mxu1 %v6678_v15  ;;  %v6837_v56 = vld [vmem:[%s10354_s9 + $0x4d8] sm:$0xf]  ;;  %v6582_v61 = vor.u32 %v9121_v54, %v6581_v52  ;;  %v10850_v63 = vpop.f32.mrf.mxu2  ;;  %v2061_v14 = vpop.f32.mrf.mxu1  ;;  %v7223_v54 = vld [vmem:[%s10354_s9 + $0x7f8] sm:$0xf0] }
 0x14e   : > { %v9185_v57 = vld [vmem:[%s10354_s9 + $0x4f4] sm:$0xf0]  ;;  %v9261_v14 = vld [vmem:[%s10354_s9 + $0x75c] sm:$0xf] }
 0x14f   : > { %2324 = vmatpush.bf16.msra.mxu2 %v6934_v16  ;;  %2299 = vmatpush.bf16.msra.mxu0 %v6390_v25  ;;  %v7093_v58 = vld [vmem:[%s10354_s9 + $0x6d8] sm:$0xf]  ;;  %v6838_v62 = vor.u32 %v9185_v57, %v6837_v56  ;;  %v10855_v4 = vpop.f32.mrf.mxu3  ;;  %v6458_v57 = vor.u32 %v9085_v36, %v6455_v39 }
 0x150   : > { %v9249_v59 = vld [vmem:[%s10354_s9 + $0x6f4] sm:$0xf0] }
 0x151   : > { %2337 = vmatpush.bf16.msra.mxu3 %v7190_v19  ;;  %2312 = vmatpush.bf16.msra.mxu1 %v6646_v26  ;;  %v6293_v0 = vld [vmem:[%s10354_s9 + $0x98] sm:$0xf]  ;;  %v7094_v3 = vor.u32 %v9249_v59, %v7093_v58 }
 0x152   : > { %v9049_v1 = vld [vmem:[%s10354_s9 + $0xb4] sm:$0xf0] }
 0x153   : > { %2325 = vmatpush.bf16.msra.mxu2 %v6902_v27  ;;  %2300 = vmatpush.bf16.msra.mxu0 %v6358_v42  ;;  %v6549_v2 = vld [vmem:[%s10354_s9 + $0x298] sm:$0xf]  ;;  %v6294_v34 = vor.u32 %v9049_v1, %v6293_v0  ;;  %v6679_v1 = vld [vmem:[%s10354_s9 + $0x3b8] sm:$0xf0] }
 0x154   : > { %v9113_v5 = vld [vmem:[%s10354_s9 + $0x2b4] sm:$0xf0] }
 0x155   : > { %2338 = vmatpush.bf16.msra.mxu3 %v7158_v31  ;;  %2313 = vmatpush.bf16.msra.mxu1 %v6614_v47  ;;  %v6805_v6 = vld [vmem:[%s10354_s9 + $0x498] sm:$0xf]  ;;  %v6550_v11 = vor.u32 %v9113_v5, %v6549_v2  ;;  %v2074_v28 = vpop.f32.mrf.mxu2  ;;  %v6711_v47 = vld [vmem:[%s10354_s9 + $0x3f8] sm:$0xf0] }
 0x156   : > { %v9177_v7 = vld [vmem:[%s10354_s9 + $0x4b4] sm:$0xf0]  ;;  %v6714_v58 = vor.u32 %v9149_v41, %v6711_v47  ;;  %v9205_v2 = vld [vmem:[%s10354_s9 + $0x59c] sm:$0xf] }
 0x157   : > { %2326 = vmatpush.bf16.msra.mxu2 %v6870_v48  ;;  %v7061_v8 = vld [vmem:[%s10354_s9 + $0x698] sm:$0xf]  ;;  %2301 = vmatpush.bf16.msra.mxu0 %v6326_v60  ;;  %v6806_v12 = vor.u32 %v9177_v7, %v6805_v6  ;;  %v2087_v33 = vpop.f32.mrf.mxu3  ;;  %v9213_v48 = vld [vmem:[%s10354_s9 + $0x5dc] sm:$0xf] }
 0x158   : > { %v9241_v9 = vld [vmem:[%s10354_s9 + $0x6b4] sm:$0xf0]  ;;  %v6970_v59 = vor.u32 %v9213_v48, %v6967_v50  ;;  %v9077_v60 = vld [vmem:[%s10354_s9 + $0x19c] sm:$0xf] }
 0x159   : > { %2339 = vmatpush.bf16.msra.mxu3 %v7126_v53  ;;  %2314 = vmatpush.bf16.msra.mxu1 %v6582_v61  ;;  %v6261_v37 = vld [vmem:[%s10354_s9 + $0x58] sm:$0xf]  ;;  %v7062_v15 = vor.u32 %v9241_v9, %v7061_v8  ;;  %v9277_v53 = vld [vmem:[%s10354_s9 + $0x7dc] sm:$0xf] }
 0x15a   : > { %v9041_v13 = vld [vmem:[%s10354_s9 + $0x74] sm:$0xf0]  ;;  %v6423_v61 = vld [vmem:[%s10354_s9 + $0x1b8] sm:$0xf0]  ;;  %v7226_v0 = vor.u32 %v9277_v53, %v7223_v54 }
 0x15b   : > { %2327 = vmatpush.bf16.msra.mxu2 %v6838_v62  ;;  %v6517_v35 = vld [vmem:[%s10354_s9 + $0x258] sm:$0xf]  ;;  %2302 = vmatpush.bf16.msra.mxu0 %v6294_v34  ;;  %v6262_v20 = vor.u32 %v9041_v13, %v6261_v37  ;;  %v9141_v62 = vld [vmem:[%s10354_s9 + $0x39c] sm:$0xf]  ;;  %v6426_v7 = vor.u32 %v9077_v60, %v6423_v61 }
 0x15c   : > { %v9105_v16 = vld [vmem:[%s10354_s9 + $0x274] sm:$0xf0]  ;;  %v9269_v5 = vld [vmem:[%s10354_s9 + $0x79c] sm:$0xf]  ;;  %v6682_v8 = vor.u32 %v9141_v62, %v6679_v1 }
 0x15d   : > { %2340 = vmatpush.bf16.msra.mxu3 %v7094_v3  ;;  %v6773_v38 = vld [vmem:[%s10354_s9 + $0x458] sm:$0xf]  ;;  %2315 = vmatpush.bf16.msra.mxu1 %v6550_v11  ;;  %v6518_v23 = vor.u32 %v9105_v16, %v6517_v35  ;;  %v6935_v3 = vld [vmem:[%s10354_s9 + $0x5b8] sm:$0xf0] }
 0x15e   : > { %v9169_v17 = vld [vmem:[%s10354_s9 + $0x474] sm:$0xf0]  ;;  %v7191_v6 = vld [vmem:[%s10354_s9 + $0x7b8] sm:$0xf0]  ;;  %v6938_v9 = vor.u32 %v9205_v2, %v6935_v3 }
 0x15f   : > { %v7029_v18 = vld [vmem:[%s10354_s9 + $0x658] sm:$0xf]  ;;  %2328 = vmatpush.bf16.msra.mxu2 %v6806_v12  ;;  %v6774_v24 = vor.u32 %v9169_v17, %v6773_v38  ;;  %2303 = vmatpush.bf16.msra.mxu0 %v6262_v20  ;;  %v9069_v34 = vld [vmem:[%s10354_s9 + $0x15c] sm:$0xf]  ;;  %v7194_v12 = vor.u32 %v9269_v5, %v7191_v6 }
 0x160   : > { %v9233_v19 = vld [vmem:[%s10354_s9 + $0x674] sm:$0xf0]  ;;  %v9133_v11 = vld [vmem:[%s10354_s9 + $0x35c] sm:$0xf]  ;;  %v6394_v16 = vor.u32 %v9069_v34, %v6391_v10 }
 0x161   : > { %v6229_v21 = vld [vmem:[%s10354_s9 + $0x18] sm:$0xf]  ;;  %2341 = vmatpush.bf16.msra.mxu3 %v7062_v15  ;;  %v7030_v29 = vor.u32 %v9233_v19, %v7029_v18  ;;  %2316 = vmatpush.bf16.msra.mxu1 %v6518_v23  ;;  %v6647_v37 = vld [vmem:[%s10354_s9 + $0x378] sm:$0xf0] }
 0x162   : > { %v9033_v22 = vld [vmem:[%s10354_s9 + $0x34] sm:$0xf0]  ;;  %v9197_v13 = vld [vmem:[%s10354_s9 + $0x55c] sm:$0xf]  ;;  %v6650_v38 = vor.u32 %v9133_v11, %v6647_v37 }
 0x163   : > { %v6485_v25 = vld [vmem:[%s10354_s9 + $0x218] sm:$0xf]  ;;  %v6230_v42 = vor.u32 %v9033_v22, %v6229_v21  ;;  %2329 = vmatpush.bf16.msra.mxu2 %v6774_v24  ;;  %v6903_v35 = vld [vmem:[%s10354_s9 + $0x578] sm:$0xf0]  ;;  %v10914_v28 = vpop.f32.mrf.mxu0 }
 0x164   : > { %v9097_v26 = vld [vmem:[%s10354_s9 + $0x234] sm:$0xf0]  ;;  %v7159_v15 = vld [vmem:[%s10354_s9 + $0x778] sm:$0xf0]  ;;  %v6906_v17 = vor.u32 %v9197_v13, %v6903_v35 }
 0x165   : > { %v6741_v27 = vld [vmem:[%s10354_s9 + $0x418] sm:$0xf]  ;;  %v6486_v51 = vor.u32 %v9097_v26, %v6485_v25  ;;  %2342 = vmatpush.bf16.msra.mxu3 %v7030_v29  ;;  %2304 = vmatpush.bf16.msra.mxu0 %v6230_v42  ;;  %v9061_v18 = vld [vmem:[%s10354_s9 + $0x11c] sm:$0xf]  ;;  %v7162_v21 = vor.u32 %v9261_v14, %v7159_v15  ;;  %v10919_v36 = vpop.f32.mrf.mxu1 }
 0x166   : > { %v9161_v30 = vld [vmem:[%s10354_s9 + $0x434] sm:$0xf0]  ;;  %v6359_v19 = vld [vmem:[%s10354_s9 + $0x138] sm:$0xf0] }
 0x167   : > { %v6997_v31 = vld [vmem:[%s10354_s9 + $0x618] sm:$0xf]  ;;  %v6742_v52 = vor.u32 %v9161_v30, %v6741_v27  ;;  %2317 = vmatpush.bf16.msra.mxu1 %v6486_v51  ;;  %v9125_v20 = vld [vmem:[%s10354_s9 + $0x31c] sm:$0xf]  ;;  %v6362_v27 = vor.u32 %v9061_v18, %v6359_v19 }
 0x168   : > { %v9225_v32 = vld [vmem:[%s10354_s9 + $0x634] sm:$0xf0]  ;;  %2305 = vmatmul.bf16.vlgmr.msra.gmra.mxu0 %v10754_v44  ;;  %v6615_v22 = vld [vmem:[%s10354_s9 + $0x338] sm:$0xf0] }
 0x169   : > { %v6998_v56 = vor.u32 %v9225_v32, %v6997_v31  ;;  %2330 = vmatpush.bf16.msra.mxu2 %v6742_v52  ;;  %2349 = vmatpush.bf16.msrb.mxu0 %v6458_v57  ;;  %v9189_v23 = vld [vmem:[%s10354_s9 + $0x51c] sm:$0xf]  ;;  %v6618_v29 = vor.u32 %v9125_v20, %v6615_v22 }
 0x16a   : > { %2318 = vmatmul.bf16.vlgmr.msra.gmra.mxu1 %v10757_v46  ;;  %v6871_v24 = vld [vmem:[%s10354_s9 + $0x538] sm:$0xf0] }
 0x16b   : > { %2343 = vmatpush.bf16.msra.mxu3 %v6998_v56  ;;  %2362 = vmatpush.bf16.msrb.mxu1 %v6714_v58  ;;  %v9253_v25 = vld [vmem:[%s10354_s9 + $0x71c] sm:$0xf]  ;;  %v6874_v30 = vor.u32 %v9189_v23, %v6871_v24  ;;  %v2100_v5 = vpop.f32.mrf.mxu0 }
 0x16c   : > { %2331 = vmatmul.bf16.vlgmr.msra.gmra.mxu2 %v10746_v40  ;;  %v7127_v26 = vld [vmem:[%s10354_s9 + $0x738] sm:$0xf0] }
 0x16d   : > { %2375 = vmatpush.bf16.msrb.mxu2 %v6970_v59  ;;  %2350 = vmatpush.bf16.msrb.mxu0 %v6426_v7  ;;  %v9053_v31 = vld [vmem:[%s10354_s9 + $0xdc] sm:$0xf]  ;;  %v7130_v39 = vor.u32 %v9253_v25, %v7127_v26  ;;  %v10929_v58 = vpop.f32.mrf.mxu2  ;;  %v2113_v10 = vpop.f32.mrf.mxu1 }
 0x16e   : > { %2344 = vmatmul.bf16.vlgmr.msra.gmra.mxu3 %v10751_v43  ;;  %v6327_v32 = vld [vmem:[%s10354_s9 + $0xf8] sm:$0xf0] }
 0x16f   : > { %2388 = vmatpush.bf16.msrb.mxu3 %v7226_v0  ;;  %2363 = vmatpush.bf16.msrb.mxu1 %v6682_v8  ;;  %v9117_v33 = vld [vmem:[%s10354_s9 + $0x2dc] sm:$0xf]  ;;  %v6330_v51 = vor.u32 %v9053_v31, %v6327_v32  ;;  %v10934_v0 = vpop.f32.mrf.mxu3 }
 0x170   : > { %v6583_v41 = vld [vmem:[%s10354_s9 + $0x2f8] sm:$0xf0] }
 0x171   : > { %2376 = vmatpush.bf16.msrb.mxu2 %v6938_v9  ;;  %2351 = vmatpush.bf16.msrb.mxu0 %v6394_v16  ;;  %v9181_v42 = vld [vmem:[%s10354_s9 + $0x4dc] sm:$0xf]  ;;  %v6586_v52 = vor.u32 %v9117_v33, %v6583_v41  ;;  %v2060_v33 = vadd.f32 %v10840_v49, %v10838_v45 }
 0x172   : > { %v6839_v47 = vld [vmem:[%s10354_s9 + $0x4f8] sm:$0xf0] }
 0x173   : > { %2389 = vmatpush.bf16.msrb.mxu3 %v7194_v12  ;;  %2364 = vmatpush.bf16.msrb.mxu1 %v6650_v38  ;;  %v9245_v48 = vld [vmem:[%s10354_s9 + $0x6dc] sm:$0xf]  ;;  %v6842_v53 = vor.u32 %v9181_v42, %v6839_v47  ;;  %v2073_v41 = vadd.f32 %v10850_v63, %v2060_v33 }
 0x174   : > { %v7095_v50 = vld [vmem:[%s10354_s9 + $0x6f8] sm:$0xf0] }
 0x175   : > { %2377 = vmatpush.bf16.msrb.mxu2 %v6906_v17  ;;  %2352 = vmatpush.bf16.msrb.mxu0 %v6362_v27  ;;  %v9045_v54 = vld [vmem:[%s10354_s9 + $0x9c] sm:$0xf]  ;;  %v7098_v59 = vor.u32 %v9245_v48, %v7095_v50  ;;  %v2126_v20 = vpop.f32.mrf.mxu2 }
 0x176   : > { %v6295_v56 = vld [vmem:[%s10354_s9 + $0xb8] sm:$0xf0] }
 0x177   : > { %2390 = vmatpush.bf16.msrb.mxu3 %v7162_v21  ;;  %2365 = vmatpush.bf16.msrb.mxu1 %v6618_v29  ;;  %v9109_v57 = vld [vmem:[%s10354_s9 + $0x29c] sm:$0xf]  ;;  %v6298_v3 = vor.u32 %v9045_v54, %v6295_v56  ;;  %v2139_v25 = vpop.f32.mrf.mxu3 }
 0x178   : > { %v6551_v60 = vld [vmem:[%s10354_s9 + $0x2b8] sm:$0xf0] }
 0x179   : > { %2378 = vmatpush.bf16.msrb.mxu2 %v6874_v30  ;;  %v9173_v61 = vld [vmem:[%s10354_s9 + $0x49c] sm:$0xf]  ;;  %2353 = vmatpush.bf16.msrb.mxu0 %v6330_v51  ;;  %v6554_v6 = vor.u32 %v9109_v57, %v6551_v60 }
 0x17a   : > { %v6807_v62 = vld [vmem:[%s10354_s9 + $0x4b8] sm:$0xf0] }
 0x17b   : > { %2391 = vmatpush.bf16.msrb.mxu3 %v7130_v39  ;;  %v9237_v1 = vld [vmem:[%s10354_s9 + $0x69c] sm:$0xf]  ;;  %2366 = vmatpush.bf16.msrb.mxu1 %v6586_v52  ;;  %v6810_v7 = vor.u32 %v9173_v61, %v6807_v62  ;;  %v2112_v39 = vadd.f32 %v10919_v36, %v10914_v28  ;;  %v436_v36 = vld [vmem:[#allocation2] sm:$0xff] }
 0x17c   : > { %v7063_v2 = vld [vmem:[%s10354_s9 + $0x6b8] sm:$0xf0] }
 0x17d   : > { %2379 = vmatpush.bf16.msrb.mxu2 %v6842_v53  ;;  %v9037_v8 = vld [vmem:[%s10354_s9 + $0x5c] sm:$0xf]  ;;  %v7066_v11 = vor.u32 %v9237_v1, %v7063_v2  ;;  %2354 = vmatpush.bf16.msrb.mxu0 %v6298_v3  ;;  %v2125_v48 = vadd.f32 %v10929_v58, %v2112_v39 }
 0x17e   : > { %v6263_v9 = vld [vmem:[%s10354_s9 + $0x78] sm:$0xf0] }
 0x17f   : > { %v9101_v34 = vld [vmem:[%s10354_s9 + $0x25c] sm:$0xf]  ;;  %2392 = vmatpush.bf16.msrb.mxu3 %v7098_v59  ;;  %v6266_v15 = vor.u32 %v9037_v8, %v6263_v9  ;;  %2367 = vmatpush.bf16.msrb.mxu1 %v6554_v6 }
 0x180   : > { %v6519_v12 = vld [vmem:[%s10354_s9 + $0x278] sm:$0xf0] }
 0x181   : > { %v9165_v37 = vld [vmem:[%s10354_s9 + $0x45c] sm:$0xf]  ;;  %2380 = vmatpush.bf16.msrb.mxu2 %v6810_v7  ;;  %v6522_v16 = vor.u32 %v9101_v34, %v6519_v12  ;;  %2355 = vmatpush.bf16.msrb.mxu0 %v6266_v15 }
 0x182   : > { %v6775_v13 = vld [vmem:[%s10354_s9 + $0x478] sm:$0xf0] }
 0x183   : > { %v9229_v35 = vld [vmem:[%s10354_s9 + $0x65c] sm:$0xf]  ;;  %v6778_v38 = vor.u32 %v9165_v37, %v6775_v13  ;;  %2393 = vmatpush.bf16.msrb.mxu3 %v7066_v11  ;;  %2368 = vmatpush.bf16.msrb.mxu1 %v6522_v16  ;;  %v2150_v42 = vpop.f32.mrf.mxu0 }
 0x184   : > { %v7031_v14 = vld [vmem:[%s10354_s9 + $0x678] sm:$0xf0] }
 0x185   : > { %v9029_v17 = vld [vmem:[%s10354_s9 + $0x1c] sm:$0xf]  ;;  %v7034_v21 = vor.u32 %v9229_v35, %v7031_v14  ;;  %2381 = vmatpush.bf16.msrb.mxu2 %v6778_v38  ;;  %v2163_v47 = vpop.f32.mrf.mxu1 }
 0x186   : > { %v6231_v18 = vld [vmem:[%s10354_s9 + $0x38] sm:$0xf0]  ;;  %v2164_v50 = vadd.f32 %v2163_v47, %v2150_v42 }
 0x187   : > { %v9093_v19 = vld [vmem:[%s10354_s9 + $0x21c] sm:$0xf]  ;;  %v6234_v29 = vor.u32 %v9029_v17, %v6231_v18  ;;  %2394 = vmatpush.bf16.msrb.mxu3 %v7034_v21 }
 0x188   : > { %v6487_v22 = vld [vmem:[%s10354_s9 + $0x238] sm:$0xf0] }
 0x189   : > { %v9157_v23 = vld [vmem:[%s10354_s9 + $0x41c] sm:$0xf]  ;;  %v6490_v30 = vor.u32 %v9093_v19, %v6487_v22  ;;  %2356 = vmatpush.bf16.msrb.mxu0 %v6234_v29 }
 0x18a   : > { %v6743_v24 = vld [vmem:[%s10354_s9 + $0x438] sm:$0xf0] }
 0x18b   : > { %v9221_v26 = vld [vmem:[%s10354_s9 + $0x61c] sm:$0xf]  ;;  %v6746_v31 = vor.u32 %v9157_v23, %v6743_v24  ;;  %2369 = vmatpush.bf16.msrb.mxu1 %v6490_v30  ;;  %v2152_v45 = vpop.f32.mrf.mxu0 }
 0x18c   : > { %v6999_v27 = vld [vmem:[%s10354_s9 + $0x638] sm:$0xf0]  ;;  %2357 = vmatmul.bf16.vlgmr.msrb.gmra.mxu0 %v10754_v44  ;;  %v2086_v44 = vadd.f32 %v10855_v4, %v2073_v41 }
 0x18d   : > { %v7002_v32 = vor.u32 %v9221_v26, %v6999_v27  ;;  %2382 = vmatpush.bf16.msrb.mxu2 %v6746_v31  ;;  %v2165_v49 = vpop.f32.mrf.mxu1 }
 0x18e   : > { %2370 = vmatmul.bf16.vlgmr.msrb.gmra.mxu1 %v10757_v46  ;;  %v2176_v46 = vpop.f32.mrf.mxu2  ;;  %v2409_v52 = vrot.slane %v2086_v44, 6 }
 0x18f   : > { %2395 = vmatpush.bf16.msrb.mxu3 %v7002_v32  ;;  %v2177_v51 = vadd.f32 %v2176_v46, %v2164_v50  ;;  %v437_v50 = vld [vmem:[#allocation2 + $0x8] sm:$0xff] }
 0x190   : > { %2383 = vmatmul.bf16.vlgmr.msrb.gmra.mxu2 %v10746_v40  ;;  %v2138_v40 = vadd.f32 %v10934_v0, %v2125_v48  ;;  %v2416_v54 = vsel %vm2415_vm3, %v10803_v55, %v2409_v52 }
 0x192   : > { %2396 = vmatmul.bf16.vlgmr.msrb.gmra.mxu3 %v10751_v43  ;;  %v2189_v43 = vpop.f32.mrf.mxu3  ;;  %v2410_v28 = vrot.slane %v2138_v40, 4 }
 0x193   : > { %v2190_v53 = vadd.f32 %v2189_v43, %v2177_v51 }
 0x195   : > { %v2411_v63 = vrot.slane %v2190_v53, 2 }
 0x196   : > { %v2178_v57 = vpop.f32.mrf.mxu2 }
 0x197   : > { %v2418_v4 = vsel %vm2417_vm4, %v2410_v28, %v2411_v63 }
 0x198   : > { %v2420_v56 = vsel %vm2419_vm5, %v2416_v54, %v2418_v4 }
 0x199   : > { %v2426_v58 = vadd.f32 %v2420_v56, %v436_v36 }
 0x19a   : > { %v2191_v59 = vpop.f32.mrf.mxu3 }
 0x19b   : > { %2428 = vst [vmem:[#allocation2] sm:$0xff] %v2426_v58 }
 0x1a3   : > { %v2202_v60 = vpop.f32.mrf.mxu0 }
 0x1a5   : > { %v2215_v61 = vpop.f32.mrf.mxu1 }
 0x1a6   : > { %v2216_v62 = vadd.f32 %v2215_v61, %v2202_v60 }
 0x1ab   : > { %v2204_v5 = vpop.f32.mrf.mxu0 }
 0x1ad   : > { %v2228_v0 = vpop.f32.mrf.mxu2  ;;  %v2217_v6 = vpop.f32.mrf.mxu1 }
 0x1ae   : > { %v2229_v1 = vadd.f32 %v2228_v0, %v2216_v62 }
 0x1af   : > { %v2241_v2 = vpop.f32.mrf.mxu3 }
 0x1b0   : > { %v2242_v3 = vadd.f32 %v2241_v2, %v2229_v1 }
 0x1b5   : > { %v2230_v7 = vpop.f32.mrf.mxu2 }
 0x1b7   : > { %v2243_v8 = vpop.f32.mrf.mxu3 }
 0x1c3   : > { %v2254_v55 = vpop.f32.mrf.mxu0 }
 0x1c5   : > { %v2267_v9 = vpop.f32.mrf.mxu1 }
 0x1c6   : > { %v2268_v20 = vadd.f32 %v2267_v9, %v2254_v55 }
 0x1cb   : > { %v2256_v11 = vpop.f32.mrf.mxu0 }
 0x1cd   : > { %v2280_v34 = vpop.f32.mrf.mxu2  ;;  %v2269_v12 = vpop.f32.mrf.mxu1 }
 0x1ce   : > { %v2281_v24 = vadd.f32 %v2280_v34, %v2268_v20 }
 0x1cf   : > { %v2293_v10 = vpop.f32.mrf.mxu3 }
 0x1d0   : > { %v2294_v27 = vadd.f32 %v2293_v10, %v2281_v24 }
 0x1d2   : > { %v2412_v41 = vrot.slane %v2294_v27, 6 }
 0x1d4   : > { %v2421_v44 = vsel %vm2415_vm3, %v2242_v3, %v2412_v41 }
 0x1d5   : > { %v2282_v37 = vpop.f32.mrf.mxu2 }
 0x1d7   : > { %v2295_v13 = vpop.f32.mrf.mxu3 }
 0x1e5   : > { %v2306_v35 = vpop.f32.mrf.mxu0 }
 0x1e7   : > { %v2319_v14 = vpop.f32.mrf.mxu1 }
 0x1e8   : > { %v2320_v21 = vadd.f32 %v2319_v14, %v2306_v35 }
 0x1ed   : > { %v2308_v38 = vpop.f32.mrf.mxu0 }
 0x1ef   : > { %v2332_v15 = vpop.f32.mrf.mxu2  ;;  %v2321_v17 = vpop.f32.mrf.mxu1 }
 0x1f0   : > { %v2333_v25 = vadd.f32 %v2332_v15, %v2320_v21 }
 0x1f1   : > { %v2345_v16 = vpop.f32.mrf.mxu3 }
 0x1f2   : > { %v2346_v30 = vadd.f32 %v2345_v16, %v2333_v25 }
 0x1f4   : > { %v2413_v47 = vrot.slane %v2346_v30, 4 }
 0x1f7   : > { %v2334_v18 = vpop.f32.mrf.mxu2 }
 0x1f9   : > { %v2347_v19 = vpop.f32.mrf.mxu3 }
 0x209   : > { %v2358_v22 = vpop.f32.mrf.mxu0 }
 0x20b   : > { %v2371_v23 = vpop.f32.mrf.mxu1 }
 0x20c   : > { %v2372_v26 = vadd.f32 %v2371_v23, %v2358_v22 }
 0x211   : > { %v2360_v33 = vpop.f32.mrf.mxu0 }
 0x213   : > { %v2384_v29 = vpop.f32.mrf.mxu2  ;;  %v2373_v39 = vpop.f32.mrf.mxu1 }
 0x214   : > { %v2385_v31 = vadd.f32 %v2384_v29, %v2372_v26 }
 0x215   : > { %v2397_v32 = vpop.f32.mrf.mxu3 }
 0x216   : > { %v2398_v42 = vadd.f32 %v2397_v32, %v2385_v31 }
 0x218   : > { %v2414_v48 = vrot.slane %v2398_v42, 2 }
 0x21a   : > { %v2422_v46 = vsel %vm2417_vm4, %v2413_v47, %v2414_v48  ;;  %2433 = sbr.rel (%p7227_p1) target bundleno = 1290 (0x50a), region = 84 }
 0x21b   : > { %v2423_v40 = vsel %vm2419_vm5, %v2421_v44, %v2422_v46  ;;  %v2386_v51 = vpop.f32.mrf.mxu2 }
 0x21c   : > { %v2427_v43 = vadd.f32 %v2423_v40, %v437_v50 }
 0x21d   : > { %v2399_v52 = vpop.f32.mrf.mxu3 }
 0x21e   : > { %2429 = vst [vmem:[#allocation2 + $0x8] sm:$0xff] %v2427_v43 }
 0x21f   : > { %v7454_v53 = vld [vmem:[#allocation9 + $0x1c0] sm:$0xf] }
 0x220   : > { %v9342_v45 = vld [vmem:[#allocation9 + $0x1dc] sm:$0xf0] }
 0x221   : > { %v7710_v49 = vld [vmem:[#allocation9 + $0x3c0] sm:$0xf]  ;;  %v7455_v28 = vor.u32 %v9342_v45, %v7454_v53 }
 0x222   : > { %v9406_v63 = vld [vmem:[#allocation9 + $0x3dc] sm:$0xf0] }
 0x223   : > { %v7966_v36 = vld [vmem:[#allocation9 + $0x5c0] sm:$0xf]  ;;  %v7711_v4 = vor.u32 %v9406_v63, %v7710_v49  ;;  %4755 = vmatpush.bf16.msra.mxu0 %v7455_v28 }
 0x224   : > { %v9470_v54 = vld [vmem:[#allocation9 + $0x5dc] sm:$0xf0] }
 0x225   : > { %v7967_v56 = vor.u32 %v9470_v54, %v7966_v36  ;;  %v8222_v57 = vld [vmem:[#allocation9 + $0x7c0] sm:$0xf]  ;;  %4768 = vmatpush.bf16.msra.mxu1 %v7711_v4 }
 0x226   : > { %v9534_v58 = vld [vmem:[#allocation9 + $0x7dc] sm:$0xf0] }
 0x227   : > { %v7422_v59 = vld [vmem:[#allocation9 + $0x180] sm:$0xf]  ;;  %v8223_v60 = vor.u32 %v9534_v58, %v8222_v57  ;;  %4781 = vmatpush.bf16.msra.mxu2 %v7967_v56 }
 0x228   : > { %v9334_v61 = vld [vmem:[#allocation9 + $0x19c] sm:$0xf0] }
 0x229   : > { %v7678_v62 = vld [vmem:[#allocation9 + $0x380] sm:$0xf]  ;;  %v7423_v1 = vor.u32 %v9334_v61, %v7422_v59  ;;  %4794 = vmatpush.bf16.msra.mxu3 %v8223_v60 }
 0x22a   : > { %v9398_v0 = vld [vmem:[#allocation9 + $0x39c] sm:$0xf0] }
 0x22b   : > { %v7679_v2 = vor.u32 %v9398_v0, %v7678_v62  ;;  %v7934_v3 = vld [vmem:[#allocation9 + $0x580] sm:$0xf]  ;;  %4756 = vmatpush.bf16.msra.mxu0 %v7423_v1 }
 0x22c   : > { %v9462_v5 = vld [vmem:[#allocation9 + $0x59c] sm:$0xf0] }
 0x22d   : > { %v8190_v6 = vld [vmem:[#allocation9 + $0x780] sm:$0xf]  ;;  %v7935_v7 = vor.u32 %v9462_v5, %v7934_v3  ;;  %4769 = vmatpush.bf16.msra.mxu1 %v7679_v2 }
 0x22e   : > { %v9526_v8 = vld [vmem:[#allocation9 + $0x79c] sm:$0xf0] }
 0x22f   : > { %v7390_v55 = vld [vmem:[#allocation9 + $0x140] sm:$0xf]  ;;  %v8191_v34 = vor.u32 %v9526_v8, %v8190_v6  ;;  %4782 = vmatpush.bf16.msra.mxu2 %v7935_v7 }
 0x230   : > { %v9326_v9 = vld [vmem:[#allocation9 + $0x15c] sm:$0xf0] }
 0x231   : > { %v7646_v10 = vld [vmem:[#allocation9 + $0x340] sm:$0xf]  ;;  %v7391_v37 = vor.u32 %v9326_v9, %v7390_v55  ;;  %4795 = vmatpush.bf16.msra.mxu3 %v8191_v34 }
 0x232   : > { %v9390_v11 = vld [vmem:[#allocation9 + $0x35c] sm:$0xf0] }
 0x233   : > { %v7902_v12 = vld [vmem:[#allocation9 + $0x540] sm:$0xf]  ;;  %v7647_v15 = vor.u32 %v9390_v11, %v7646_v10  ;;  %4757 = vmatpush.bf16.msra.mxu0 %v7391_v37 }
 0x234   : > { %v9454_v13 = vld [vmem:[#allocation9 + $0x55c] sm:$0xf0] }
 0x235   : > { %v8158_v35 = vld [vmem:[#allocation9 + $0x740] sm:$0xf]  ;;  %v7903_v16 = vor.u32 %v9454_v13, %v7902_v12  ;;  %4770 = vmatpush.bf16.msra.mxu1 %v7647_v15  ;;  %v9338_v15 = vld [vmem:[#allocation9 + $0x1c4] sm:$0xf] }
 0x236   : > { %v9518_v14 = vld [vmem:[#allocation9 + $0x75c] sm:$0xf0] }
 0x237   : > { %v7358_v38 = vld [vmem:[#allocation9 + $0x100] sm:$0xf]  ;;  %v8159_v19 = vor.u32 %v9518_v14, %v8158_v35  ;;  %4783 = vmatpush.bf16.msra.mxu2 %v7903_v16  ;;  %v7456_v16 = vld [vmem:[#allocation9 + $0x1e0] sm:$0xf0] }
 0x238   : > { %v9318_v17 = vld [vmem:[#allocation9 + $0x11c] sm:$0xf0] }
 0x239   : > { %v7614_v18 = vld [vmem:[#allocation9 + $0x300] sm:$0xf]  ;;  %v7359_v25 = vor.u32 %v9318_v17, %v7358_v38  ;;  %4796 = vmatpush.bf16.msra.mxu3 %v8159_v19  ;;  %v7712_v19 = vld [vmem:[#allocation9 + $0x3e0] sm:$0xf0] }
 0x23a   : > { %v9382_v20 = vld [vmem:[#allocation9 + $0x31c] sm:$0xf0] }
 0x23b   : > { %v7870_v21 = vld [vmem:[#allocation9 + $0x500] sm:$0xf]  ;;  %v7615_v26 = vor.u32 %v9382_v20, %v7614_v18  ;;  %4758 = vmatpush.bf16.msra.mxu0 %v7359_v25  ;;  %v9402_v18 = vld [vmem:[#allocation9 + $0x3c4] sm:$0xf] }
 0x23c   : > { %v9446_v22 = vld [vmem:[#allocation9 + $0x51c] sm:$0xf0] }
 0x23d   : > { %v8126_v23 = vld [vmem:[#allocation9 + $0x700] sm:$0xf]  ;;  %v7871_v27 = vor.u32 %v9446_v22, %v7870_v21  ;;  %4771 = vmatpush.bf16.msra.mxu1 %v7615_v26 }
 0x23e   : > { %v9510_v24 = vld [vmem:[#allocation9 + $0x71c] sm:$0xf0] }
 0x23f   : > { %v7326_v29 = vld [vmem:[#allocation9 + $0xc0] sm:$0xf]  ;;  %v8127_v32 = vor.u32 %v9510_v24, %v8126_v23  ;;  %4784 = vmatpush.bf16.msra.mxu2 %v7871_v27  ;;  %v7459_v23 = vor.u32 %v9338_v15, %v7456_v16  ;;  %v7715_v27 = vor.u32 %v9402_v18, %v7712_v19  ;;  %v9298_v18 = vld [vmem:[#allocation9 + $0x84] sm:$0xf] }
 0x240   : > { %v9310_v30 = vld [vmem:[#allocation9 + $0xdc] sm:$0xf0]  ;;  %v7296_v19 = vld [vmem:[#allocation9 + $0xa0] sm:$0xf0] }
 0x241   : > { %v7582_v31 = vld [vmem:[#allocation9 + $0x2c0] sm:$0xf]  ;;  %v7327_v48 = vor.u32 %v9310_v30, %v7326_v29  ;;  %4797 = vmatpush.bf16.msra.mxu3 %v8127_v32  ;;  %v9330_v30 = vld [vmem:[#allocation9 + $0x184] sm:$0xf] }
 0x242   : > { %v9374_v33 = vld [vmem:[#allocation9 + $0x2dc] sm:$0xf0]  ;;  %v9394_v32 = vld [vmem:[#allocation9 + $0x384] sm:$0xf] }
 0x243   : > { %v7838_v39 = vld [vmem:[#allocation9 + $0x4c0] sm:$0xf]  ;;  %v7583_v50 = vor.u32 %v9374_v33, %v7582_v31  ;;  %4759 = vmatpush.bf16.msra.mxu0 %v7327_v48  ;;  %v7424_v31 = vld [vmem:[#allocation9 + $0x1a0] sm:$0xf0] }
 0x244   : > { %v9438_v41 = vld [vmem:[#allocation9 + $0x4dc] sm:$0xf0]  ;;  %v7680_v33 = vld [vmem:[#allocation9 + $0x3a0] sm:$0xf0] }
 0x245   : > { %v8094_v42 = vld [vmem:[#allocation9 + $0x6c0] sm:$0xf]  ;;  %v7839_v44 = vor.u32 %v9438_v41, %v7838_v39  ;;  %4772 = vmatpush.bf16.msra.mxu1 %v7583_v50 }
 0x246   : > { %v9502_v47 = vld [vmem:[#allocation9 + $0x6dc] sm:$0xf0] }
 0x247   : > { %v7294_v46 = vld [vmem:[#allocation9 + $0x80] sm:$0xf]  ;;  %v8095_v43 = vor.u32 %v9502_v47, %v8094_v42  ;;  %4785 = vmatpush.bf16.msra.mxu2 %v7839_v44  ;;  %v7427_v42 = vor.u32 %v9330_v30, %v7424_v31  ;;  %v7683_v44 = vor.u32 %v9394_v32, %v7680_v33  ;;  %v9290_v31 = vld [vmem:[#allocation9 + $0x44] sm:$0xf] }
 0x248   : > { %v9302_v40 = vld [vmem:[#allocation9 + $0x9c] sm:$0xf0]  ;;  %v7264_v32 = vld [vmem:[#allocation9 + $0x60] sm:$0xf0] }
 0x249   : > { %v7550_v51 = vld [vmem:[#allocation9 + $0x280] sm:$0xf]  ;;  %v7295_v63 = vor.u32 %v9302_v40, %v7294_v46  ;;  %4798 = vmatpush.bf16.msra.mxu3 %v8095_v43  ;;  %v9322_v40 = vld [vmem:[#allocation9 + $0x144] sm:$0xf] }
 0x24a   : > { %v9366_v52 = vld [vmem:[#allocation9 + $0x29c] sm:$0xf0]  ;;  %v9386_v43 = vld [vmem:[#allocation9 + $0x344] sm:$0xf] }
 0x24b   : > { %v7806_v53 = vld [vmem:[#allocation9 + $0x480] sm:$0xf]  ;;  %v7551_v36 = vor.u32 %v9366_v52, %v7550_v51  ;;  %4760 = vmatpush.bf16.msra.mxu0 %v7295_v63  ;;  %v7392_v51 = vld [vmem:[#allocation9 + $0x160] sm:$0xf0] }
 0x24c   : > { %v9430_v45 = vld [vmem:[#allocation9 + $0x49c] sm:$0xf0]  ;;  %v7648_v52 = vld [vmem:[#allocation9 + $0x360] sm:$0xf0]  ;;  %v7395_v63 = vor.u32 %v9322_v40, %v7392_v51 }
 0x24d   : > { %v8062_v49 = vld [vmem:[#allocation9 + $0x680] sm:$0xf]  ;;  %v7807_v54 = vor.u32 %v9430_v45, %v7806_v53  ;;  %4773 = vmatpush.bf16.msra.mxu1 %v7551_v36  ;;  %v9354_v33 = vld [vmem:[#allocation9 + $0x244] sm:$0xf] }
 0x24e   : > { %v9494_v28 = vld [vmem:[#allocation9 + $0x69c] sm:$0xf0]  ;;  %v9282_v40 = vld [vmem:[#allocation9 + $0x4] sm:$0xf] }
 0x24f   : > { %v7262_v4 = vld [vmem:[#allocation9 + $0x40] sm:$0xf]  ;;  %v8063_v58 = vor.u32 %v9494_v28, %v8062_v49  ;;  %4786 = vmatpush.bf16.msra.mxu2 %v7807_v54  ;;  %v2436_v49 = vld [vmem:[#allocation6] sm:$0x3f] }
 0x250   : > { %v9294_v56 = vld [vmem:[#allocation9 + $0x5c] sm:$0xf0]  ;;  %2822 = vst [vmem:[#allocation1] ss:$9 sm:$0xff] %v2436_v49  ;;  %v7968_v49 = vld [vmem:[#allocation9 + $0x5e0] sm:$0xf0] }
 0x251   : > { %v7518_v57 = vld [vmem:[#allocation9 + $0x240] sm:$0xf]  ;;  %v7263_v1 = vor.u32 %v9294_v56, %v7262_v4  ;;  %4799 = vmatpush.bf16.msra.mxu3 %v8063_v58  ;;  %v7651_v4 = vor.u32 %v9386_v43, %v7648_v52  ;;  %v7360_v58 = vld [vmem:[#allocation9 + $0x120] sm:$0xf0] }
 0x252   : > { %v9358_v59 = vld [vmem:[#allocation9 + $0x25c] sm:$0xf0]  ;;  %v7232_v43 = vld [vmem:[#allocation9 + $0x20] sm:$0xf0] }
 0x253   : > { %v7774_v60 = vld [vmem:[#allocation9 + $0x440] sm:$0xf]  ;;  %v7519_v5 = vor.u32 %v9358_v59, %v7518_v57  ;;  %4761 = vmatpush.bf16.msra.mxu0 %v7263_v1  ;;  %v9314_v57 = vld [vmem:[#allocation9 + $0x104] sm:$0xf] }
 0x254   : > { %v9422_v61 = vld [vmem:[#allocation9 + $0x45c] sm:$0xf0]  ;;  %v9378_v59 = vld [vmem:[#allocation9 + $0x304] sm:$0xf] }
 0x255   : > { %v8030_v62 = vld [vmem:[#allocation9 + $0x640] sm:$0xf]  ;;  %v7775_v6 = vor.u32 %v9422_v61, %v7774_v60  ;;  %4774 = vmatpush.bf16.msra.mxu1 %v7519_v5  ;;  %v7616_v60 = vld [vmem:[#allocation9 + $0x320] sm:$0xf0] }
 0x256   : > { %v9486_v0 = vld [vmem:[#allocation9 + $0x65c] sm:$0xf0]  ;;  %v7619_v5 = vor.u32 %v9378_v59, %v7616_v60  ;;  %v9346_v52 = vld [vmem:[#allocation9 + $0x204] sm:$0xf] }
 0x257   : > { %v7230_v2 = vld [vmem:[#allocation9] sm:$0xf]  ;;  %v8031_v9 = vor.u32 %v9486_v0, %v8030_v62  ;;  %4787 = vmatpush.bf16.msra.mxu2 %v7775_v6  ;;  %v7363_v0 = vor.u32 %v9314_v57, %v7360_v58  ;;  %v10980_v16 = vld [vmem:[#allocation1 + $0x1b] sm:$0xff]  ;;  %v7235_v57 = vor.u32 %v9282_v40, %v7232_v43  ;;  %v9658_v58 = vld [vmem:[#allocation9 + $0xbc4] sm:$0xf] }
 0x258   : > { %v9286_v3 = vld [vmem:[#allocation9 + $0x1c] sm:$0xf0]  ;;  %v8736_v59 = vld [vmem:[#allocation9 + $0xbe0] sm:$0xf0] }
 0x259   : > { %v7486_v7 = vld [vmem:[#allocation9 + $0x200] sm:$0xf]  ;;  %v7231_v35 = vor.u32 %v9286_v3, %v7230_v2  ;;  %4800 = vmatpush.bf16.msra.mxu3 %v8031_v9  ;;  %v7584_v9 = vld [vmem:[#allocation9 + $0x2e0] sm:$0xf0] }
 0x25a   : > { %v9350_v8 = vld [vmem:[#allocation9 + $0x21c] sm:$0xf0]  ;;  %v9498_v40 = vld [vmem:[#allocation9 + $0x6c4] sm:$0xf] }
 0x25b   : > { %v7742_v55 = vld [vmem:[#allocation9 + $0x400] sm:$0xf]  ;;  %v7487_v38 = vor.u32 %v9350_v8, %v7486_v7  ;;  %4762 = vmatpush.bf16.msra.mxu0 %v7231_v35  ;;  %v9306_v7 = vld [vmem:[#allocation9 + $0xc4] sm:$0xf] }
 0x25c   : > { %v9414_v34 = vld [vmem:[#allocation9 + $0x41c] sm:$0xf0]  ;;  %v7328_v8 = vld [vmem:[#allocation9 + $0xe0] sm:$0xf0] }
 0x25d   : > { %v7998_v10 = vld [vmem:[#allocation9 + $0x600] sm:$0xf]  ;;  %v7743_v17 = vor.u32 %v9414_v34, %v7742_v55  ;;  %4775 = vmatpush.bf16.msra.mxu1 %v7487_v38  ;;  %v9370_v55 = vld [vmem:[#allocation9 + $0x2c4] sm:$0xf]  ;;  %v7331_v35 = vor.u32 %v9306_v7, %v7328_v8 }
 0x25e   : > { %v9478_v11 = vld [vmem:[#allocation9 + $0x61c] sm:$0xf0]  ;;  %v7587_v38 = vor.u32 %v9370_v55, %v7584_v9  ;;  %v9586_v7 = vld [vmem:[#allocation9 + $0x984] sm:$0xf] }
 0x25f   : > { %v8478_v12 = vld [vmem:[#allocation9 + $0x9c0] sm:$0xf]  ;;  %v7999_v20 = vor.u32 %v9478_v11, %v7998_v10  ;;  %4788 = vmatpush.bf16.msra.mxu2 %v7743_v17  ;;  %v8448_v8 = vld [vmem:[#allocation9 + $0x9a0] sm:$0xf0] }
 0x260   : > { %v9598_v37 = vld [vmem:[#allocation9 + $0x9dc] sm:$0xf0]  ;;  %v9650_v55 = vld [vmem:[#allocation9 + $0xb84] sm:$0xf] }
 0x261   : > { %v8734_v13 = vld [vmem:[#allocation9 + $0xbc0] sm:$0xf]  ;;  %v8479_v21 = vor.u32 %v9598_v37, %v8478_v12  ;;  %4801 = vmatpush.bf16.msra.mxu3 %v7999_v20  ;;  %v10976_v12 = vld [vmem:[#allocation1 + $0x12] sm:$0xff]  ;;  %v9362_v20 = vld [vmem:[#allocation9 + $0x284] sm:$0xf] }
 0x262   : > { %v9662_v14 = vld [vmem:[#allocation9 + $0xbdc] sm:$0xf0]  ;;  %4789 = vmatmul.bf16.vlgmr.msra.gmra.mxu2 %v10976_v12  ;;  %v8704_v9 = vld [vmem:[#allocation9 + $0xba0] sm:$0xf0] }
 0x263   : > { %v8735_v22 = vor.u32 %v9662_v14, %v8734_v13  ;;  %v8446_v24 = vld [vmem:[#allocation9 + $0x980] sm:$0xf]  ;;  %4807 = vmatpush.bf16.msrb.mxu0 %v8479_v21  ;;  %4833 = vmatpush.bf16.msrb.mxu2 %v7459_v23  ;;  %v7552_v21 = vld [vmem:[#allocation9 + $0x2a0] sm:$0xf0] }
 0x264   : > { %v9590_v25 = vld [vmem:[#allocation9 + $0x99c] sm:$0xf0]  ;;  %4802 = vmatmul.bf16.vlgmr.msra.gmra.mxu3 %v10980_v16  ;;  %v8096_v43 = vld [vmem:[#allocation9 + $0x6e0] sm:$0xf0] }
 0x265   : > { %v8702_v26 = vld [vmem:[#allocation9 + $0xb80] sm:$0xf]  ;;  %v8447_v39 = vor.u32 %v9590_v25, %v8446_v24  ;;  %4820 = vmatpush.bf16.msrb.mxu1 %v8735_v22  ;;  %4846 = vmatpush.bf16.msrb.mxu3 %v7715_v27  ;;  %v7299_v24 = vor.u32 %v9298_v18, %v7296_v19  ;;  %v8707_v18 = vor.u32 %v9650_v55, %v8704_v9  ;;  %v8160_v19 = vld [vmem:[#allocation9 + $0x760] sm:$0xf0] }
 0x266   : > { %v9654_v29 = vld [vmem:[#allocation9 + $0xb9c] sm:$0xf0]  ;;  %v9546_v55 = vld [vmem:[#allocation9 + $0x844] sm:$0xf] }
 0x267   : > { %v8703_v41 = vor.u32 %v9654_v29, %v8702_v26  ;;  %v8414_v47 = vld [vmem:[#allocation9 + $0x940] sm:$0xf]  ;;  %4808 = vmatpush.bf16.msrb.mxu0 %v8447_v39  ;;  %4834 = vmatpush.bf16.msrb.mxu2 %v7427_v42  ;;  %v7555_v29 = vor.u32 %v9362_v20, %v7552_v21  ;;  %v7520_v39 = vld [vmem:[#allocation9 + $0x260] sm:$0xf0] }
 0x268   : > { %v9582_v48 = vld [vmem:[#allocation9 + $0x95c] sm:$0xf0]  ;;  %v7523_v51 = vor.u32 %v9354_v33, %v7520_v39  ;;  %v9578_v20 = vld [vmem:[#allocation9 + $0x944] sm:$0xf] }
 0x269   : > { %v8670_v50 = vld [vmem:[#allocation9 + $0xb40] sm:$0xf]  ;;  %v8415_v53 = vor.u32 %v9582_v48, %v8414_v47  ;;  %4821 = vmatpush.bf16.msrb.mxu1 %v8703_v41  ;;  %4847 = vmatpush.bf16.msrb.mxu3 %v7683_v44  ;;  %v8416_v21 = vld [vmem:[#allocation9 + $0x960] sm:$0xf0] }
 0x26a   : > { %v9646_v46 = vld [vmem:[#allocation9 + $0xb5c] sm:$0xf0]  ;;  %v9570_v33 = vld [vmem:[#allocation9 + $0x904] sm:$0xf] }
 0x26b   : > { %v8382_v45 = vld [vmem:[#allocation9 + $0x900] sm:$0xf]  ;;  %v8671_v28 = vor.u32 %v9646_v46, %v8670_v50  ;;  %4809 = vmatpush.bf16.msrb.mxu0 %v8415_v53  ;;  %4835 = vmatpush.bf16.msrb.mxu2 %v7395_v63  ;;  %v7267_v50 = vor.u32 %v9290_v31, %v7264_v32  ;;  %v7488_v53 = vld [vmem:[#allocation9 + $0x220] sm:$0xf0] }
 0x26c   : > { %v9574_v36 = vld [vmem:[#allocation9 + $0x91c] sm:$0xf0]  ;;  %v7491_v60 = vor.u32 %v9346_v52, %v7488_v53  ;;  %v8128_v32 = vld [vmem:[#allocation9 + $0x720] sm:$0xf0] }
 0x26d   : > { %v8638_v54 = vld [vmem:[#allocation9 + $0xb00] sm:$0xf]  ;;  %v8383_v61 = vor.u32 %v9574_v36, %v8382_v45  ;;  %4822 = vmatpush.bf16.msrb.mxu1 %v8671_v28  ;;  %4848 = vmatpush.bf16.msrb.mxu3 %v7651_v4  ;;  %v9466_v45 = vld [vmem:[#allocation9 + $0x5c4] sm:$0xf] }
 0x26e   : > { %v9638_v56 = vld [vmem:[#allocation9 + $0xb1c] sm:$0xf0]  ;;  %v9530_v28 = vld [vmem:[#allocation9 + $0x7c4] sm:$0xf] }
 0x26f   : > { %v8639_v62 = vor.u32 %v9638_v56, %v8638_v54  ;;  %v8350_v1 = vld [vmem:[#allocation9 + $0x8c0] sm:$0xf]  ;;  %4810 = vmatpush.bf16.msrb.mxu0 %v8383_v61  ;;  %4836 = vmatpush.bf16.msrb.mxu2 %v7363_v0  ;;  %v8224_v36 = vld [vmem:[#allocation9 + $0x7e0] sm:$0xf0]  ;;  %v7971_v61 = vor.u32 %v9466_v45, %v7968_v49 }
 0x270   : > { %v9566_v2 = vld [vmem:[#allocation9 + $0x8dc] sm:$0xf0]  ;;  %v9594_v54 = vld [vmem:[#allocation9 + $0x9c4] sm:$0xf] }
 0x271   : > { %v8606_v3 = vld [vmem:[#allocation9 + $0xac0] sm:$0xf]  ;;  %v8351_v10 = vor.u32 %v9566_v2, %v8350_v1  ;;  %4823 = vmatpush.bf16.msrb.mxu1 %v8639_v62  ;;  %4849 = vmatpush.bf16.msrb.mxu3 %v7619_v5  ;;  %v8480_v4 = vld [vmem:[#allocation9 + $0x9e0] sm:$0xf0]  ;;  %v8227_v62 = vor.u32 %v9530_v28, %v8224_v36  ;;  %v8739_v5 = vor.u32 %v9658_v58, %v8736_v59 }
 0x272   : > { %v9630_v6 = vld [vmem:[#allocation9 + $0xadc] sm:$0xf0]  ;;  %v8483_v0 = vor.u32 %v9594_v54, %v8480_v4  ;;  %v9458_v1 = vld [vmem:[#allocation9 + $0x584] sm:$0xf] }
 0x273   : > { %v8318_v34 = vld [vmem:[#allocation9 + $0x880] sm:$0xf]  ;;  %v8607_v13 = vor.u32 %v9630_v6, %v8606_v3  ;;  %4811 = vmatpush.bf16.msrb.mxu0 %v8351_v10  ;;  %4837 = vmatpush.bf16.msrb.mxu2 %v7331_v35  ;;  %v7936_v2 = vld [vmem:[#allocation9 + $0x5a0] sm:$0xf0] }
 0x274   : > { %v10974_v11 = vld [vmem:[#allocation1] sm:$0xff]  ;;  %v10978_v37 = vld [vmem:[#allocation1 + $0x9] sm:$0xff]  ;;  %v7939_v10 = vor.u32 %v9458_v1, %v7936_v2 }
 0x275   : > { %v9558_v14 = vld [vmem:[#allocation9 + $0x89c] sm:$0xf0]  ;;  %4763 = vmatmul.bf16.vlgmr.msra.gmra.mxu0 %v10974_v11  ;;  %4776 = vmatmul.bf16.vlgmr.msra.gmra.mxu1 %v10978_v37  ;;  %v9522_v3 = vld [vmem:[#allocation9 + $0x784] sm:$0xf] }
 0x276   : > { %v8574_v15 = vld [vmem:[#allocation9 + $0xa80] sm:$0xf]  ;;  %v8319_v22 = vor.u32 %v9558_v14, %v8318_v34  ;;  %4824 = vmatpush.bf16.msrb.mxu1 %v8607_v13  ;;  %4850 = vmatpush.bf16.msrb.mxu3 %v7587_v38  ;;  %v8192_v6 = vld [vmem:[#allocation9 + $0x7a0] sm:$0xf0]  ;;  %v8451_v14 = vor.u32 %v9586_v7, %v8448_v8 }
 0x277   : > { %v9622_v17 = vld [vmem:[#allocation9 + $0xa9c] sm:$0xf0]  ;;  %4838 = vmatpush.bf16.msrb.mxu2 %v7299_v24  ;;  %v10988_v13 = vld [vmem:[#allocation1 + $0x2d] sm:$0xff]  ;;  %v8195_v35 = vor.u32 %v9522_v3, %v8192_v6 }
 0x278   : > { %v8575_v23 = vor.u32 %v9622_v17, %v8574_v15  ;;  %v8286_v25 = vld [vmem:[#allocation9 + $0x840] sm:$0xf]  ;;  %4812 = vmatpush.bf16.msrb.mxu0 %v8319_v22  ;;  %v9450_v15 = vld [vmem:[#allocation9 + $0x544] sm:$0xf] }
 0x279   : > { %v9550_v26 = vld [vmem:[#allocation9 + $0x85c] sm:$0xf0]  ;;  %v7904_v38 = vld [vmem:[#allocation9 + $0x560] sm:$0xf0] }
 0x27a   : > { %v8542_v27 = vld [vmem:[#allocation9 + $0xa40] sm:$0xf]  ;;  %v8287_v41 = vor.u32 %v9550_v26, %v8286_v25  ;;  %4825 = vmatpush.bf16.msrb.mxu1 %v8575_v23  ;;  %4851 = vmatpush.bf16.msrb.mxu3 %v7555_v29  ;;  %v9514_v17 = vld [vmem:[#allocation9 + $0x744] sm:$0xf]  ;;  %v7907_v24 = vor.u32 %v9450_v15, %v7904_v38  ;;  %v8419_v26 = vor.u32 %v9578_v20, %v8416_v21 }
 0x27b   : > { %v9614_v30 = vld [vmem:[#allocation9 + $0xa5c] sm:$0xf0]  ;;  %4839 = vmatpush.bf16.msrb.mxu2 %v7267_v50  ;;  %v9642_v22 = vld [vmem:[#allocation9 + $0xb44] sm:$0xf]  ;;  %v8163_v25 = vor.u32 %v9514_v17, %v8160_v19 }
 0x27c   : > { %v8254_v42 = vld [vmem:[#allocation9 + $0x800] sm:$0xf]  ;;  %v8543_v48 = vor.u32 %v9614_v30, %v8542_v27  ;;  %4813 = vmatpush.bf16.msrb.mxu0 %v8287_v41  ;;  %v8672_v23 = vld [vmem:[#allocation9 + $0xb60] sm:$0xf0] }
 0x27d   : > { %v9542_v47 = vld [vmem:[#allocation9 + $0x81c] sm:$0xf0]  ;;  %v9442_v27 = vld [vmem:[#allocation9 + $0x504] sm:$0xf]  ;;  %v8675_v31 = vor.u32 %v9642_v22, %v8672_v23 }
 0x27e   : > { %v8510_v44 = vld [vmem:[#allocation9 + $0xa00] sm:$0xf]  ;;  %v8255_v63 = vor.u32 %v9542_v47, %v8254_v42  ;;  %4826 = vmatpush.bf16.msrb.mxu1 %v8543_v48  ;;  %4852 = vmatpush.bf16.msrb.mxu3 %v7523_v51  ;;  %v7872_v29 = vld [vmem:[#allocation9 + $0x520] sm:$0xf0] }
 0x27f   : > { %v9606_v46 = vld [vmem:[#allocation9 + $0xa1c] sm:$0xf0]  ;;  %4840 = vmatpush.bf16.msrb.mxu2 %v7235_v57  ;;  %v9506_v30 = vld [vmem:[#allocation9 + $0x704] sm:$0xf]  ;;  %v7875_v47 = vor.u32 %v9442_v27, %v7872_v29  ;;  %v9343_v27 = vld [vmem:[#allocation9 + $0x1e4] sm:$0xf0] }
 0x280   : > { %v8511_v56 = vor.u32 %v9606_v46, %v8510_v44  ;;  %4814 = vmatpush.bf16.msrb.mxu0 %v8255_v63  ;;  %v10986_v34 = vld [vmem:[#allocation1 + $0x24] sm:$0xff]  ;;  %v8131_v48 = vor.u32 %v9506_v30, %v8128_v32  ;;  %v8099_v63 = vor.u32 %v9498_v40, %v8096_v43  ;;  %v7718_v29 = vld [vmem:[#allocation9 + $0x3c8] sm:$0xf] }
 0x281   : > { %v8384_v39 = vld [vmem:[#allocation9 + $0x920] sm:$0xf0]  ;;  %v7974_v32 = vld [vmem:[#allocation9 + $0x5c8] sm:$0xf] }
 0x282   : > { %4827 = vmatpush.bf16.msrb.mxu1 %v8511_v56  ;;  %4853 = vmatpush.bf16.msrb.mxu3 %v7491_v60  ;;  %v9634_v41 = vld [vmem:[#allocation9 + $0xb04] sm:$0xf]  ;;  %v8387_v50 = vor.u32 %v9570_v33, %v8384_v39  ;;  %v9471_v33 = vld [vmem:[#allocation9 + $0x5e4] sm:$0xf0] }
 0x283   : > { %4885 = vmatpush.bf16.msra.mxu2 %v8483_v0  ;;  %v8640_v42 = vld [vmem:[#allocation9 + $0xb20] sm:$0xf0]  ;;  %v7430_v40 = vld [vmem:[#allocation9 + $0x188] sm:$0xf] }
 0x284   : > { %4859 = vmatpush.bf16.msra.mxu0 %v7971_v61  ;;  %4841 = vmatmul.bf16.vlgmr.msrb.gmra.mxu2 %v10974_v11  ;;  %v9434_v44 = vld [vmem:[#allocation9 + $0x4c4] sm:$0xf]  ;;  %v8643_v51 = vor.u32 %v9634_v41, %v8640_v42  ;;  %v8230_v42 = vld [vmem:[#allocation9 + $0x7c8] sm:$0xf] }
 0x285   : > { %4815 = vmatmul.bf16.vlgmr.msrb.gmra.mxu0 %v10986_v34  ;;  %4828 = vmatmul.bf16.vlgmr.msrb.gmra.mxu1 %v10988_v13  ;;  %v7840_v46 = vld [vmem:[#allocation9 + $0x4e0] sm:$0xf0]  ;;  %v7686_v43 = vld [vmem:[#allocation9 + $0x388] sm:$0xf] }
 0x286   : > { %4872 = vmatpush.bf16.msra.mxu1 %v8227_v62  ;;  %4898 = vmatpush.bf16.msra.mxu3 %v8739_v5  ;;  %v9562_v52 = vld [vmem:[#allocation9 + $0x8c4] sm:$0xf]  ;;  %v7843_v28 = vor.u32 %v9434_v44, %v7840_v46  ;;  %v7975_v46 = vor.u32 %v9471_v33, %v7974_v32  ;;  %v7302_v32 = vld [vmem:[#allocation9 + $0x88] sm:$0xf] }
 0x287   : > { %4854 = vmatmul.bf16.vlgmr.msrb.gmra.mxu3 %v10978_v37  ;;  %4886 = vmatpush.bf16.msra.mxu2 %v8451_v14  ;;  %v8352_v53 = vld [vmem:[#allocation9 + $0x8e0] sm:$0xf0]  ;;  %v9303_v33 = vld [vmem:[#allocation9 + $0xa4] sm:$0xf0] }
 0x288   : > { %4860 = vmatpush.bf16.msra.mxu0 %v7939_v10  ;;  %v9626_v45 = vld [vmem:[#allocation9 + $0xac4] sm:$0xf]  ;;  %v8355_v36 = vor.u32 %v9562_v52, %v8352_v53  ;;  %v9399_v53 = vld [vmem:[#allocation9 + $0x3a4] sm:$0xf0] }
 0x289   : > { %v8608_v49 = vld [vmem:[#allocation9 + $0xae0] sm:$0xf0] }
 0x28a   : > { %4873 = vmatpush.bf16.msra.mxu1 %v8195_v35  ;;  %4899 = vmatpush.bf16.msra.mxu3 %v8707_v18  ;;  %v9426_v54 = vld [vmem:[#allocation9 + $0x484] sm:$0xf]  ;;  %v8611_v57 = vor.u32 %v9626_v45, %v8608_v49  ;;  %v7942_v45 = vld [vmem:[#allocation9 + $0x588] sm:$0xf] }
 0x28b   : > { %4887 = vmatpush.bf16.msra.mxu2 %v8419_v26  ;;  %v7808_v4 = vld [vmem:[#allocation9 + $0x4a0] sm:$0xf0]  ;;  %v7462_v26 = vld [vmem:[#allocation9 + $0x1c8] sm:$0xf] }
 0x28c   : > { %4861 = vmatpush.bf16.msra.mxu0 %v7907_v24  ;;  %v9490_v56 = vld [vmem:[#allocation9 + $0x684] sm:$0xf]  ;;  %v7811_v0 = vor.u32 %v9426_v54, %v7808_v4  ;;  %v9463_v49 = vld [vmem:[#allocation9 + $0x5a4] sm:$0xf0]  ;;  %v7687_v54 = vor.u32 %v9399_v53, %v7686_v43 }
 0x28d   : > { %v8064_v58 = vld [vmem:[#allocation9 + $0x6a0] sm:$0xf0]  ;;  %v7943_v4 = vor.u32 %v9463_v49, %v7942_v45  ;;  %v7270_v43 = vld [vmem:[#allocation9 + $0x48] sm:$0xf] }
 0x28e   : > { %4874 = vmatpush.bf16.msra.mxu1 %v8163_v25  ;;  %4900 = vmatpush.bf16.msra.mxu3 %v8675_v31  ;;  %v9554_v59 = vld [vmem:[#allocation9 + $0x884] sm:$0xf]  ;;  %v8067_v1 = vor.u32 %v9490_v56, %v8064_v58  ;;  %v9407_v31 = vld [vmem:[#allocation9 + $0x3e4] sm:$0xf0] }
 0x28f   : > { %4888 = vmatpush.bf16.msra.mxu2 %v8387_v50  ;;  %v8320_v60 = vld [vmem:[#allocation9 + $0x8a0] sm:$0xf0]  ;;  %v7463_v50 = vor.u32 %v9343_v27, %v7462_v26  ;;  %v7719_v44 = vor.u32 %v9407_v31, %v7718_v29  ;;  %v7398_v56 = vld [vmem:[#allocation9 + $0x148] sm:$0xf] }
 0x290   : > { %4862 = vmatpush.bf16.msra.mxu0 %v7875_v47  ;;  %v9618_v61 = vld [vmem:[#allocation9 + $0xa84] sm:$0xf]  ;;  %v8323_v2 = vor.u32 %v9554_v59, %v8320_v60  ;;  %v9535_v47 = vld [vmem:[#allocation9 + $0x7e4] sm:$0xf0] }
 0x291   : > { %v8576_v62 = vld [vmem:[#allocation9 + $0xaa0] sm:$0xf0]  ;;  %v8231_v52 = vor.u32 %v9535_v47, %v8230_v42  ;;  %v7654_v58 = vld [vmem:[#allocation9 + $0x348] sm:$0xf] }
 0x292   : > { %4875 = vmatpush.bf16.msra.mxu1 %v8131_v48  ;;  %4901 = vmatpush.bf16.msra.mxu3 %v8643_v51  ;;  %v9418_v3 = vld [vmem:[#allocation9 + $0x444] sm:$0xf]  ;;  %v8579_v7 = vor.u32 %v9618_v61, %v8576_v62  ;;  %v9335_v51 = vld [vmem:[#allocation9 + $0x1a4] sm:$0xf0] }
 0x293   : > { %4889 = vmatpush.bf16.msra.mxu2 %v8355_v36  ;;  %v7776_v5 = vld [vmem:[#allocation9 + $0x460] sm:$0xf0]  ;;  %v7431_v36 = vor.u32 %v9335_v51, %v7430_v40  ;;  %v9391_v60 = vld [vmem:[#allocation9 + $0x364] sm:$0xf0] }
 0x294   : > { %4863 = vmatpush.bf16.msra.mxu0 %v7843_v28  ;;  %v9482_v6 = vld [vmem:[#allocation9 + $0x644] sm:$0xf]  ;;  %v7779_v14 = vor.u32 %v9418_v3, %v7776_v5  ;;  %v8198_v28 = vld [vmem:[#allocation9 + $0x788] sm:$0xf]  ;;  %v7655_v3 = vor.u32 %v9391_v60, %v7654_v58 }
 0x295   : > { %v8032_v8 = vld [vmem:[#allocation9 + $0x660] sm:$0xf0]  ;;  %v7910_v61 = vld [vmem:[#allocation9 + $0x548] sm:$0xf] }
 0x296   : > { %4876 = vmatpush.bf16.msra.mxu1 %v8099_v63  ;;  %4902 = vmatpush.bf16.msra.mxu3 %v8611_v57  ;;  %v8288_v9 = vld [vmem:[#allocation9 + $0x860] sm:$0xf0]  ;;  %v8035_v17 = vor.u32 %v9482_v6, %v8032_v8  ;;  %v9527_v63 = vld [vmem:[#allocation9 + $0x7a4] sm:$0xf0] }
 0x297   : > { %v9610_v10 = vld [vmem:[#allocation9 + $0xa44] sm:$0xf]  ;;  %4890 = vmatpush.bf16.msra.mxu2 %v8323_v2  ;;  %v8291_v18 = vor.u32 %v9546_v55, %v8288_v9  ;;  %v9327_v57 = vld [vmem:[#allocation9 + $0x164] sm:$0xf0]  ;;  %v8199_v59 = vor.u32 %v9527_v63, %v8198_v28 }
 0x298   : > { %v8544_v35 = vld [vmem:[#allocation9 + $0xa60] sm:$0xf0]  ;;  %4864 = vmatpush.bf16.msra.mxu0 %v7811_v0  ;;  %v9455_v62 = vld [vmem:[#allocation9 + $0x564] sm:$0xf0]  ;;  %v7399_v2 = vor.u32 %v9327_v57, %v7398_v56 }
 0x299   : > { %v9410_v15 = vld [vmem:[#allocation9 + $0x404] sm:$0xf]  ;;  %v8547_v22 = vor.u32 %v9610_v10, %v8544_v35  ;;  %v8166_v0 = vld [vmem:[#allocation9 + $0x748] sm:$0xf]  ;;  %v7911_v5 = vor.u32 %v9455_v62, %v7910_v61 }
 0x29a   : > { %v7744_v38 = vld [vmem:[#allocation9 + $0x420] sm:$0xf0]  ;;  %4877 = vmatpush.bf16.msra.mxu1 %v8067_v1  ;;  %4903 = vmatpush.bf16.msra.mxu3 %v8579_v7  ;;  %v9519_v1 = vld [vmem:[#allocation9 + $0x764] sm:$0xf0] }
 0x29b   : > { %v9474_v19 = vld [vmem:[#allocation9 + $0x604] sm:$0xf]  ;;  %v7747_v30 = vor.u32 %v9410_v15, %v7744_v38  ;;  %4891 = vmatpush.bf16.msra.mxu2 %v8291_v18  ;;  %v7366_v6 = vld [vmem:[#allocation9 + $0x108] sm:$0xf]  ;;  %v8167_v55 = vor.u32 %v9519_v1, %v8166_v0 }
 0x29c   : > { %v8000_v20 = vld [vmem:[#allocation9 + $0x620] sm:$0xf0]  ;;  %4865 = vmatpush.bf16.msra.mxu0 %v7779_v14  ;;  %v9319_v7 = vld [vmem:[#allocation9 + $0x124] sm:$0xf0] }
 0x29d   : > { %v9538_v21 = vld [vmem:[#allocation9 + $0x804] sm:$0xf]  ;;  %v8003_v39 = vor.u32 %v9474_v19, %v8000_v20  ;;  %v7622_v8 = vld [vmem:[#allocation9 + $0x308] sm:$0xf]  ;;  %v7367_v38 = vor.u32 %v9319_v7, %v7366_v6 }
 0x29e   : > { %v8256_v23 = vld [vmem:[#allocation9 + $0x820] sm:$0xf0]  ;;  %4878 = vmatpush.bf16.msra.mxu1 %v8035_v17  ;;  %4904 = vmatpush.bf16.msra.mxu3 %v8547_v22  ;;  %v9383_v9 = vld [vmem:[#allocation9 + $0x324] sm:$0xf0] }
 0x29f   : > { %v9602_v24 = vld [vmem:[#allocation9 + $0xa04] sm:$0xf]  ;;  %v8259_v41 = vor.u32 %v9538_v21, %v8256_v23  ;;  %v7878_v10 = vld [vmem:[#allocation9 + $0x508] sm:$0xf]  ;;  %v7623_v17 = vor.u32 %v9383_v9, %v7622_v8  ;;  %v9339_v9 = vld [vmem:[#allocation9 + $0x1cc] sm:$0xf] }
 0x2a0   : > { %v8512_v25 = vld [vmem:[#allocation9 + $0xa20] sm:$0xf0]  ;;  %4866 = vmatpush.bf16.msra.mxu0 %v7747_v30  ;;  %v9447_v35 = vld [vmem:[#allocation9 + $0x524] sm:$0xf0] }
 0x2a1   : > { %v8515_v48 = vor.u32 %v9602_v24, %v8512_v25  ;;  %4892 = vmatpush.bf16.msra.mxu2 %v8259_v41  ;;  %v8134_v14 = vld [vmem:[#allocation9 + $0x708] sm:$0xf]  ;;  %v7879_v18 = vor.u32 %v9447_v35, %v7878_v10  ;;  %v7464_v10 = vld [vmem:[#allocation9 + $0x1e8] sm:$0xf0] }
 0x2a2   : > { %4879 = vmatpush.bf16.msra.mxu1 %v8003_v39  ;;  %v9511_v15 = vld [vmem:[#allocation9 + $0x724] sm:$0xf0] }
 0x2a3   : > { %4905 = vmatpush.bf16.msra.mxu3 %v8515_v48  ;;  %4867 = vmatmul.bf16.vlgmr.msra.gmra.mxu0 %v10976_v12  ;;  %v7334_v19 = vld [vmem:[#allocation9 + $0xc8] sm:$0xf]  ;;  %v8135_v22 = vor.u32 %v9511_v15, %v8134_v14  ;;  %v9403_v15 = vld [vmem:[#allocation9 + $0x3cc] sm:$0xf] }
 0x2a4   : > { %4911 = vmatpush.bf16.msrb.mxu0 %v7463_v50  ;;  %4893 = vmatmul.bf16.vlgmr.msra.gmra.mxu2 %v10986_v34  ;;  %v9311_v20 = vld [vmem:[#allocation9 + $0xe4] sm:$0xf0] }
 0x2a5   : > { %4937 = vmatpush.bf16.msrb.mxu2 %v7975_v46  ;;  %4880 = vmatmul.bf16.vlgmr.msra.gmra.mxu1 %v10980_v16  ;;  %v7590_v21 = vld [vmem:[#allocation9 + $0x2c8] sm:$0xf]  ;;  %v7335_v29 = vor.u32 %v9311_v20, %v7334_v19  ;;  %v7303_v46 = vor.u32 %v9303_v33, %v7302_v32  ;;  %v7467_v20 = vor.u32 %v9339_v9, %v7464_v10 }
 0x2a6   : > { %4924 = vmatpush.bf16.msrb.mxu1 %v7719_v44  ;;  %4906 = vmatmul.bf16.vlgmr.msra.gmra.mxu3 %v10988_v13  ;;  %v9375_v23 = vld [vmem:[#allocation9 + $0x2e4] sm:$0xf0] }
 0x2a7   : > { %4950 = vmatpush.bf16.msrb.mxu3 %v8231_v52  ;;  %v7846_v24 = vld [vmem:[#allocation9 + $0x4c8] sm:$0xf]  ;;  %v7591_v30 = vor.u32 %v9375_v23, %v7590_v21 }
 0x2a8   : > { %4912 = vmatpush.bf16.msrb.mxu0 %v7431_v36  ;;  %v9439_v25 = vld [vmem:[#allocation9 + $0x4e4] sm:$0xf0] }
 0x2a9   : > { %4938 = vmatpush.bf16.msrb.mxu2 %v7943_v4  ;;  %v8102_v26 = vld [vmem:[#allocation9 + $0x6c8] sm:$0xf]  ;;  %v7847_v31 = vor.u32 %v9439_v25, %v7846_v24 }
 0x2aa   : > { %4925 = vmatpush.bf16.msrb.mxu1 %v7687_v54  ;;  %v9503_v27 = vld [vmem:[#allocation9 + $0x6e4] sm:$0xf0] }
 0x2ab   : > { %4951 = vmatpush.bf16.msrb.mxu3 %v8199_v59  ;;  %v7558_v39 = vld [vmem:[#allocation9 + $0x288] sm:$0xf]  ;;  %v8103_v41 = vor.u32 %v9503_v27, %v8102_v26  ;;  %v9331_v26 = vld [vmem:[#allocation9 + $0x18c] sm:$0xf] }
 0x2ac   : > { %4913 = vmatpush.bf16.msrb.mxu0 %v7399_v2  ;;  %v9367_v42 = vld [vmem:[#allocation9 + $0x2a4] sm:$0xf0]  ;;  %v7432_v27 = vld [vmem:[#allocation9 + $0x1a8] sm:$0xf0] }
 0x2ad   : > { %4939 = vmatpush.bf16.msrb.mxu2 %v7911_v5  ;;  %v7814_v47 = vld [vmem:[#allocation9 + $0x488] sm:$0xf]  ;;  %v7559_v40 = vor.u32 %v9367_v42, %v7558_v39  ;;  %v7435_v33 = vor.u32 %v9331_v26, %v7432_v27  ;;  %v9291_v26 = vld [vmem:[#allocation9 + $0x4c] sm:$0xf] }
 0x2ae   : > { %4926 = vmatpush.bf16.msrb.mxu1 %v7655_v3  ;;  %v9431_v48 = vld [vmem:[#allocation9 + $0x4a4] sm:$0xf0]  ;;  %v7272_v27 = vld [vmem:[#allocation9 + $0x68] sm:$0xf0] }
 0x2af   : > { %4952 = vmatpush.bf16.msrb.mxu3 %v8167_v55  ;;  %v8070_v50 = vld [vmem:[#allocation9 + $0x688] sm:$0xf]  ;;  %v7815_v51 = vor.u32 %v9431_v48, %v7814_v47 }
 0x2b0   : > { %4914 = vmatpush.bf16.msrb.mxu0 %v7367_v38  ;;  %v9495_v44 = vld [vmem:[#allocation9 + $0x6a4] sm:$0xf0]  ;;  %v7720_v38 = vld [vmem:[#allocation9 + $0x3e8] sm:$0xf0] }
 0x2b1   : > { %4940 = vmatpush.bf16.msrb.mxu2 %v7879_v18  ;;  %v9295_v52 = vld [vmem:[#allocation9 + $0x64] sm:$0xf0]  ;;  %v8071_v45 = vor.u32 %v9495_v44, %v8070_v50  ;;  %v7723_v24 = vor.u32 %v9403_v15, %v7720_v38  ;;  %v9323_v50 = vld [vmem:[#allocation9 + $0x14c] sm:$0xf] }
 0x2b2   : > { %4927 = vmatpush.bf16.msrb.mxu1 %v7623_v17  ;;  %v7526_v53 = vld [vmem:[#allocation9 + $0x248] sm:$0xf]  ;;  %v7271_v4 = vor.u32 %v9295_v52, %v7270_v43  ;;  %v7400_v44 = vld [vmem:[#allocation9 + $0x168] sm:$0xf0] }
 0x2b3   : > { %4953 = vmatpush.bf16.msrb.mxu3 %v8135_v22  ;;  %v9359_v49 = vld [vmem:[#allocation9 + $0x264] sm:$0xf0]  ;;  %v7403_v52 = vor.u32 %v9323_v50, %v7400_v44  ;;  %v7304_v15 = vld [vmem:[#allocation9 + $0xa8] sm:$0xf0] }
 0x2b4   : > { %4915 = vmatpush.bf16.msrb.mxu0 %v7335_v29  ;;  %v7782_v28 = vld [vmem:[#allocation9 + $0x448] sm:$0xf]  ;;  %v7527_v58 = vor.u32 %v9359_v49, %v7526_v53  ;;  %v9395_v29 = vld [vmem:[#allocation9 + $0x38c] sm:$0xf] }
 0x2b5   : > { %4941 = vmatpush.bf16.msrb.mxu2 %v7847_v31  ;;  %v9423_v63 = vld [vmem:[#allocation9 + $0x464] sm:$0xf0]  ;;  %v9363_v38 = vld [vmem:[#allocation9 + $0x28c] sm:$0xf] }
 0x2b6   : > { %4928 = vmatpush.bf16.msrb.mxu1 %v7591_v30  ;;  %v8038_v36 = vld [vmem:[#allocation9 + $0x648] sm:$0xf]  ;;  %v7783_v59 = vor.u32 %v9423_v63, %v7782_v28  ;;  %v7688_v30 = vld [vmem:[#allocation9 + $0x3a8] sm:$0xf0] }
 0x2b7   : > { %4954 = vmatpush.bf16.msrb.mxu3 %v8103_v41  ;;  %v9487_v54 = vld [vmem:[#allocation9 + $0x664] sm:$0xf0]  ;;  %v7691_v47 = vor.u32 %v9395_v29, %v7688_v30  ;;  %v9355_v29 = vld [vmem:[#allocation9 + $0x24c] sm:$0xf] }
 0x2b8   : > { %4916 = vmatpush.bf16.msrb.mxu0 %v7303_v46  ;;  %v7238_v56 = vld [vmem:[#allocation9 + $0x8] sm:$0xf]  ;;  %v8039_v0 = vor.u32 %v9487_v54, %v8038_v36  ;;  %v9387_v46 = vld [vmem:[#allocation9 + $0x34c] sm:$0xf] }
 0x2b9   : > { %v9287_v57 = vld [vmem:[#allocation9 + $0x24] sm:$0xf0]  ;;  %4942 = vmatpush.bf16.msrb.mxu2 %v7815_v51  ;;  %v9315_v36 = vld [vmem:[#allocation9 + $0x10c] sm:$0xf] }
 0x2ba   : > { %4929 = vmatpush.bf16.msrb.mxu1 %v7559_v40  ;;  %v7494_v60 = vld [vmem:[#allocation9 + $0x208] sm:$0xf]  ;;  %v7239_v8 = vor.u32 %v9287_v57, %v7238_v56  ;;  %v7656_v40 = vld [vmem:[#allocation9 + $0x368] sm:$0xf0] }
 0x2bb   : > { %v9351_v61 = vld [vmem:[#allocation9 + $0x224] sm:$0xf0]  ;;  %4955 = vmatpush.bf16.msrb.mxu3 %v8071_v45  ;;  %v7659_v28 = vor.u32 %v9387_v46, %v7656_v40  ;;  %v7368_v54 = vld [vmem:[#allocation9 + $0x128] sm:$0xf0] }
 0x2bc   : > { %v7750_v62 = vld [vmem:[#allocation9 + $0x408] sm:$0xf]  ;;  %4917 = vmatpush.bf16.msrb.mxu0 %v7271_v4  ;;  %v7495_v35 = vor.u32 %v9351_v61, %v7494_v60  ;;  %v9379_v4 = vld [vmem:[#allocation9 + $0x30c] sm:$0xf] }
 0x2bd   : > { %v9415_v1 = vld [vmem:[#allocation9 + $0x424] sm:$0xf0]  ;;  %4943 = vmatpush.bf16.msrb.mxu2 %v7783_v59  ;;  %v7528_v30 = vld [vmem:[#allocation9 + $0x268] sm:$0xf0] }
 0x2be   : > { %v8006_v2 = vld [vmem:[#allocation9 + $0x608] sm:$0xf]  ;;  %4930 = vmatpush.bf16.msrb.mxu1 %v7527_v58  ;;  %v7751_v14 = vor.u32 %v9415_v1, %v7750_v62  ;;  %v7336_v1 = vld [vmem:[#allocation9 + $0xe8] sm:$0xf0]  ;;  %v7531_v50 = vor.u32 %v9355_v29, %v7528_v30 }
 0x2bf   : > { %v9479_v3 = vld [vmem:[#allocation9 + $0x624] sm:$0xf0]  ;;  %4956 = vmatpush.bf16.msrb.mxu3 %v8039_v0  ;;  %v9307_v0 = vld [vmem:[#allocation9 + $0xcc] sm:$0xf] }
 0x2c0   : > { %v8486_v5 = vld [vmem:[#allocation9 + $0x9c8] sm:$0xf]  ;;  %v8007_v17 = vor.u32 %v9479_v3, %v8006_v2  ;;  %4918 = vmatpush.bf16.msrb.mxu0 %v7239_v8  ;;  %v9371_v2 = vld [vmem:[#allocation9 + $0x2cc] sm:$0xf] }
 0x2c1   : > { %v9599_v6 = vld [vmem:[#allocation9 + $0x9e4] sm:$0xf0]  ;;  %4944 = vmatpush.bf16.msrb.mxu2 %v7751_v14  ;;  %v7592_v3 = vld [vmem:[#allocation9 + $0x2e8] sm:$0xf0] }
 0x2c2   : > { %v8742_v7 = vld [vmem:[#allocation9 + $0xbc8] sm:$0xf]  ;;  %v8487_v18 = vor.u32 %v9599_v6, %v8486_v5  ;;  %4931 = vmatpush.bf16.msrb.mxu1 %v7495_v35  ;;  %v7595_v10 = vor.u32 %v9371_v2, %v7592_v3  ;;  %v9299_v14 = vld [vmem:[#allocation9 + $0x8c] sm:$0xf] }
 0x2c3   : > { %v9663_v55 = vld [vmem:[#allocation9 + $0xbe4] sm:$0xf0]  ;;  %4957 = vmatpush.bf16.msrb.mxu3 %v8007_v17  ;;  %4919 = vmatmul.bf16.vlgmr.msrb.gmra.mxu0 %v10974_v11  ;;  %v7560_v17 = vld [vmem:[#allocation9 + $0x2a8] sm:$0xf0] }
 0x2c4   : > { %v8743_v19 = vor.u32 %v9663_v55, %v8742_v7  ;;  %v8454_v21 = vld [vmem:[#allocation9 + $0x988] sm:$0xf]  ;;  %4963 = vmatpush.bf16.msra.mxu0 %v8487_v18  ;;  %4945 = vmatmul.bf16.vlgmr.msrb.gmra.mxu2 %v10976_v12  ;;  %v7624_v12 = vld [vmem:[#allocation9 + $0x328] sm:$0xf0]  ;;  %v7339_v7 = vor.u32 %v9307_v0, %v7336_v1 }
 0x2c5   : > { %v9591_v22 = vld [vmem:[#allocation9 + $0x9a4] sm:$0xf0]  ;;  %4989 = vmatpush.bf16.msra.mxu2 %v7467_v20  ;;  %4932 = vmatmul.bf16.vlgmr.msrb.gmra.mxu1 %v10978_v37  ;;  %v7627_v61 = vor.u32 %v9379_v4, %v7624_v12  ;;  %v7307_v20 = vor.u32 %v9299_v14, %v7304_v15  ;;  %v7240_v44 = vld [vmem:[#allocation9 + $0x28] sm:$0xf0] }
 0x2c6   : > { %v8710_v23 = vld [vmem:[#allocation9 + $0xb88] sm:$0xf]  ;;  %v8455_v31 = vor.u32 %v9591_v22, %v8454_v21  ;;  %4976 = vmatpush.bf16.msra.mxu1 %v8743_v19  ;;  %4958 = vmatmul.bf16.vlgmr.msrb.gmra.mxu3 %v10980_v16  ;;  %v7371_v16 = vor.u32 %v9315_v36, %v7368_v54  ;;  %v9347_v46 = vld [vmem:[#allocation9 + $0x20c] sm:$0xf] }
 0x2c7   : > { %v9655_v25 = vld [vmem:[#allocation9 + $0xba4] sm:$0xf0]  ;;  %5002 = vmatpush.bf16.msra.mxu3 %v7723_v24  ;;  %v7563_v24 = vor.u32 %v9363_v38, %v7560_v17  ;;  %v7496_v40 = vld [vmem:[#allocation9 + $0x228] sm:$0xf0] }
 0x2c8   : > { %v8711_v32 = vor.u32 %v9655_v25, %v8710_v23  ;;  %v8422_v39 = vld [vmem:[#allocation9 + $0x948] sm:$0xf]  ;;  %4964 = vmatpush.bf16.msra.mxu0 %v8455_v31  ;;  %v9659_v54 = vld [vmem:[#allocation9 + $0xbcc] sm:$0xf]  ;;  %v7499_v12 = vor.u32 %v9347_v46, %v7496_v40 }
 0x2c9   : > { %v9583_v41 = vld [vmem:[#allocation9 + $0x964] sm:$0xf0]  ;;  %4990 = vmatpush.bf16.msra.mxu2 %v7435_v33  ;;  %v8744_v4 = vld [vmem:[#allocation9 + $0xbe8] sm:$0xf0] }
 0x2ca   : > { %v8678_v42 = vld [vmem:[#allocation9 + $0xb48] sm:$0xf]  ;;  %v8423_v51 = vor.u32 %v9583_v41, %v8422_v39  ;;  %4977 = vmatpush.bf16.msra.mxu1 %v8711_v32  ;;  %v7275_v41 = vor.u32 %v9291_v26, %v7272_v27  ;;  %v9587_v0 = vld [vmem:[#allocation9 + $0x98c] sm:$0xf] }
 0x2cb   : > { %v9647_v48 = vld [vmem:[#allocation9 + $0xb64] sm:$0xf0]  ;;  %5003 = vmatpush.bf16.msra.mxu3 %v7691_v47  ;;  %v8456_v1 = vld [vmem:[#allocation9 + $0x9a8] sm:$0xf0] }
 0x2cc   : > { %v8679_v43 = vor.u32 %v9647_v48, %v8678_v42  ;;  %v8390_v53 = vld [vmem:[#allocation9 + $0x908] sm:$0xf]  ;;  %4965 = vmatpush.bf16.msra.mxu0 %v8423_v51  ;;  %v9283_v48 = vld [vmem:[#allocation9 + $0xc] sm:$0xf] }
 0x2cd   : > { %v9575_v45 = vld [vmem:[#allocation9 + $0x924] sm:$0xf0]  ;;  %4991 = vmatpush.bf16.msra.mxu2 %v7403_v52  ;;  %v9467_v51 = vld [vmem:[#allocation9 + $0x5cc] sm:$0xf]  ;;  %v7243_v36 = vor.u32 %v9283_v48, %v7240_v44 }
 0x2ce   : > { %v8646_v49 = vld [vmem:[#allocation9 + $0xb08] sm:$0xf]  ;;  %v8391_v56 = vor.u32 %v9575_v45, %v8390_v53  ;;  %4978 = vmatpush.bf16.msra.mxu1 %v8679_v43  ;;  %v7976_v43 = vld [vmem:[#allocation9 + $0x5e8] sm:$0xf0] }
 0x2cf   : > { %v9639_v63 = vld [vmem:[#allocation9 + $0xb24] sm:$0xf0]  ;;  %5004 = vmatpush.bf16.msra.mxu3 %v7659_v28  ;;  %v9531_v52 = vld [vmem:[#allocation9 + $0x7cc] sm:$0xf] }
 0x2d0   : > { %v8647_v57 = vor.u32 %v9639_v63, %v8646_v49  ;;  %v8358_v58 = vld [vmem:[#allocation9 + $0x8c8] sm:$0xf]  ;;  %4966 = vmatpush.bf16.msra.mxu0 %v8391_v56  ;;  %v8232_v45 = vld [vmem:[#allocation9 + $0x7e8] sm:$0xf0]  ;;  %v7979_v56 = vor.u32 %v9467_v51, %v7976_v43 }
 0x2d1   : > { %v9567_v59 = vld [vmem:[#allocation9 + $0x8e4] sm:$0xf0]  ;;  %4992 = vmatpush.bf16.msra.mxu2 %v7371_v16  ;;  %v9595_v49 = vld [vmem:[#allocation9 + $0x9cc] sm:$0xf] }
 0x2d2   : > { %v8614_v60 = vld [vmem:[#allocation9 + $0xac8] sm:$0xf]  ;;  %v8359_v5 = vor.u32 %v9567_v59, %v8358_v58  ;;  %4979 = vmatpush.bf16.msra.mxu1 %v8647_v57  ;;  %v8488_v28 = vld [vmem:[#allocation9 + $0x9e8] sm:$0xf0]  ;;  %v8235_v57 = vor.u32 %v9531_v52, %v8232_v45 }
 0x2d3   : > { %v9631_v62 = vld [vmem:[#allocation9 + $0xae4] sm:$0xf0]  ;;  %5005 = vmatpush.bf16.msra.mxu3 %v7627_v61  ;;  %v8491_v16 = vor.u32 %v9595_v49, %v8488_v28  ;;  %v9459_v58 = vld [vmem:[#allocation9 + $0x58c] sm:$0xf]  ;;  %v8747_v61 = vor.u32 %v9659_v54, %v8744_v4 }
 0x2d4   : > { %v8615_v6 = vor.u32 %v9631_v62, %v8614_v60  ;;  %v8326_v8 = vld [vmem:[#allocation9 + $0x888] sm:$0xf]  ;;  %4967 = vmatpush.bf16.msra.mxu0 %v8359_v5  ;;  %v7944_v59 = vld [vmem:[#allocation9 + $0x5a8] sm:$0xf0] }
 0x2d5   : > { %v9559_v55 = vld [vmem:[#allocation9 + $0x8a4] sm:$0xf0]  ;;  %4993 = vmatpush.bf16.msra.mxu2 %v7339_v7  ;;  %v9523_v60 = vld [vmem:[#allocation9 + $0x78c] sm:$0xf]  ;;  %v7947_v5 = vor.u32 %v9459_v58, %v7944_v59  ;;  %v8459_v7 = vor.u32 %v9587_v0, %v8456_v1 }
 0x2d6   : > { %v8582_v9 = vld [vmem:[#allocation9 + $0xa88] sm:$0xf]  ;;  %v8327_v18 = vor.u32 %v9559_v55, %v8326_v8  ;;  %4980 = vmatpush.bf16.msra.mxu1 %v8615_v6  ;;  %v8200_v62 = vld [vmem:[#allocation9 + $0x7a8] sm:$0xf0] }
 0x2d7   : > { %v9623_v35 = vld [vmem:[#allocation9 + $0xaa4] sm:$0xf0]  ;;  %5006 = vmatpush.bf16.msra.mxu3 %v7595_v10  ;;  %v9651_v2 = vld [vmem:[#allocation9 + $0xb8c] sm:$0xf]  ;;  %v8203_v6 = vor.u32 %v9523_v60, %v8200_v62 }
 0x2d8   : > { %v8583_v19 = vor.u32 %v9623_v35, %v8582_v9  ;;  %v8294_v21 = vld [vmem:[#allocation9 + $0x848] sm:$0xf]  ;;  %4968 = vmatpush.bf16.msra.mxu0 %v8327_v18  ;;  %v8712_v3 = vld [vmem:[#allocation9 + $0xba8] sm:$0xf0] }
 0x2d9   : > { %v9551_v22 = vld [vmem:[#allocation9 + $0x864] sm:$0xf0]  ;;  %4994 = vmatpush.bf16.msra.mxu2 %v7307_v20  ;;  %v9451_v8 = vld [vmem:[#allocation9 + $0x54c] sm:$0xf]  ;;  %v8715_v10 = vor.u32 %v9651_v2, %v8712_v3 }
 0x2da   : > { %v8550_v23 = vld [vmem:[#allocation9 + $0xa48] sm:$0xf]  ;;  %v8295_v31 = vor.u32 %v9551_v22, %v8294_v21  ;;  %4981 = vmatpush.bf16.msra.mxu1 %v8583_v19  ;;  %v7912_v55 = vld [vmem:[#allocation9 + $0x568] sm:$0xf0] }
 0x2db   : > { %v9615_v25 = vld [vmem:[#allocation9 + $0xa64] sm:$0xf0]  ;;  %5007 = vmatpush.bf16.msra.mxu3 %v7563_v24  ;;  %v9515_v9 = vld [vmem:[#allocation9 + $0x74c] sm:$0xf]  ;;  %v7915_v18 = vor.u32 %v9451_v8, %v7912_v55 }
 0x2dc   : > { %v8262_v32 = vld [vmem:[#allocation9 + $0x808] sm:$0xf]  ;;  %v8551_v39 = vor.u32 %v9615_v25, %v8550_v23  ;;  %4969 = vmatpush.bf16.msra.mxu0 %v8295_v31  ;;  %v8168_v35 = vld [vmem:[#allocation9 + $0x768] sm:$0xf0] }
 0x2dd   : > { %v9543_v33 = vld [vmem:[#allocation9 + $0x824] sm:$0xf0]  ;;  %4995 = vmatpush.bf16.msra.mxu2 %v7275_v41  ;;  %v9579_v14 = vld [vmem:[#allocation9 + $0x94c] sm:$0xf]  ;;  %v8171_v19 = vor.u32 %v9515_v9, %v8168_v35 }
 0x2de   : > { %v8518_v42 = vld [vmem:[#allocation9 + $0xa08] sm:$0xf]  ;;  %v8263_v53 = vor.u32 %v9543_v33, %v8262_v32  ;;  %4982 = vmatpush.bf16.msra.mxu1 %v8551_v39  ;;  %v8424_v15 = vld [vmem:[#allocation9 + $0x968] sm:$0xf0] }
 0x2df   : > { %v9607_v47 = vld [vmem:[#allocation9 + $0xa24] sm:$0xf0]  ;;  %5008 = vmatpush.bf16.msra.mxu3 %v7531_v50  ;;  %v9643_v38 = vld [vmem:[#allocation9 + $0xb4c] sm:$0xf]  ;;  %v8427_v20 = vor.u32 %v9579_v14, %v8424_v15 }
 0x2e0   : > { %v8519_v63 = vor.u32 %v9607_v47, %v8518_v42  ;;  %4970 = vmatpush.bf16.msra.mxu0 %v8263_v53  ;;  %v8680_v17 = vld [vmem:[#allocation9 + $0xb68] sm:$0xf0] }
 0x2e1   : > { %4996 = vmatpush.bf16.msra.mxu2 %v7243_v36  ;;  %v9443_v21 = vld [vmem:[#allocation9 + $0x50c] sm:$0xf]  ;;  %v8683_v23 = vor.u32 %v9643_v38, %v8680_v17  ;;  %v7470_v17 = vld [vmem:[#allocation9 + $0x1d0] sm:$0xf] }
 0x2e2   : > { %4983 = vmatpush.bf16.msra.mxu1 %v8519_v63  ;;  %v7880_v22 = vld [vmem:[#allocation9 + $0x528] sm:$0xf0] }
 0x2e3   : > { %5009 = vmatpush.bf16.msra.mxu3 %v7499_v12  ;;  %4971 = vmatmul.bf16.vlgmr.msra.gmra.mxu0 %v10986_v34  ;;  %v9507_v34 = vld [vmem:[#allocation9 + $0x70c] sm:$0xf] }
 0x2e4   : > { %5015 = vmatpush.bf16.msrb.mxu0 %v7979_v56  ;;  %4997 = vmatmul.bf16.vlgmr.msra.gmra.mxu2 %v10974_v11  ;;  %v8136_v24 = vld [vmem:[#allocation9 + $0x728] sm:$0xf0]  ;;  %v7883_v11 = vor.u32 %v9443_v21, %v7880_v22  ;;  %v9408_v21 = vld [vmem:[#allocation9 + $0x3ec] sm:$0xf0] }
 0x2e5   : > { %5041 = vmatpush.bf16.msrb.mxu2 %v8491_v16  ;;  %4984 = vmatmul.bf16.vlgmr.msra.gmra.mxu1 %v10988_v13  ;;  %v9571_v25 = vld [vmem:[#allocation9 + $0x90c] sm:$0xf]  ;;  %v8139_v29 = vor.u32 %v9507_v34, %v8136_v24  ;;  %v7982_v22 = vld [vmem:[#allocation9 + $0x5d0] sm:$0xf] }
 0x2e6   : > { %5028 = vmatpush.bf16.msrb.mxu1 %v8235_v57  ;;  %5010 = vmatmul.bf16.vlgmr.msra.gmra.mxu3 %v10978_v37  ;;  %v8392_v26 = vld [vmem:[#allocation9 + $0x928] sm:$0xf0]  ;;  %v9472_v34 = vld [vmem:[#allocation9 + $0x5ec] sm:$0xf0] }
 0x2e7   : > { %5054 = vmatpush.bf16.msrb.mxu3 %v8747_v61  ;;  %v9635_v27 = vld [vmem:[#allocation9 + $0xb0c] sm:$0xf]  ;;  %v8395_v37 = vor.u32 %v9571_v25, %v8392_v26  ;;  %v8238_v25 = vld [vmem:[#allocation9 + $0x7d0] sm:$0xf] }
 0x2e8   : > { %5016 = vmatpush.bf16.msrb.mxu0 %v7947_v5  ;;  %v8648_v13 = vld [vmem:[#allocation9 + $0xb28] sm:$0xf0]  ;;  %v9536_v26 = vld [vmem:[#allocation9 + $0x7ec] sm:$0xf0] }
 0x2e9   : > { %5042 = vmatpush.bf16.msrb.mxu2 %v8459_v7  ;;  %v9435_v30 = vld [vmem:[#allocation9 + $0x4cc] sm:$0xf]  ;;  %v8651_v33 = vor.u32 %v9635_v27, %v8648_v13 }
 0x2ea   : > { %5029 = vmatpush.bf16.msrb.mxu1 %v8203_v6  ;;  %v7848_v31 = vld [vmem:[#allocation9 + $0x4e8] sm:$0xf0] }
 0x2eb   : > { %5055 = vmatpush.bf16.msrb.mxu3 %v8715_v10  ;;  %v9499_v32 = vld [vmem:[#allocation9 + $0x6cc] sm:$0xf]  ;;  %v7851_v50 = vor.u32 %v9435_v30, %v7848_v31  ;;  %v7438_v30 = vld [vmem:[#allocation9 + $0x190] sm:$0xf] }
 0x2ec   : > { %5017 = vmatpush.bf16.msrb.mxu0 %v7915_v18  ;;  %v8104_v39 = vld [vmem:[#allocation9 + $0x6e8] sm:$0xf0]  ;;  %v9344_v18 = vld [vmem:[#allocation9 + $0x1ec] sm:$0xf0] }
 0x2ed   : > { %5043 = vmatpush.bf16.msrb.mxu2 %v8427_v20  ;;  %v9563_v41 = vld [vmem:[#allocation9 + $0x8cc] sm:$0xf]  ;;  %v8107_v44 = vor.u32 %v9499_v32, %v8104_v39  ;;  %v7471_v13 = vor.u32 %v9344_v18, %v7470_v17  ;;  %v9336_v31 = vld [vmem:[#allocation9 + $0x1ac] sm:$0xf0] }
 0x2ee   : > { %5030 = vmatpush.bf16.msrb.mxu1 %v8171_v19  ;;  %v8360_v42 = vld [vmem:[#allocation9 + $0x8e8] sm:$0xf0]  ;;  %v7726_v19 = vld [vmem:[#allocation9 + $0x3d0] sm:$0xf] }
 0x2ef   : > { %5056 = vmatpush.bf16.msrb.mxu3 %v8683_v23  ;;  %v9627_v47 = vld [vmem:[#allocation9 + $0xacc] sm:$0xf]  ;;  %v8363_v46 = vor.u32 %v9563_v41, %v8360_v42  ;;  %v7694_v32 = vld [vmem:[#allocation9 + $0x390] sm:$0xf]  ;;  %v4803_v41 = vpop.f32.mrf.mxu3  ;;  %v8239_v42 = vor.u32 %v9536_v26, %v8238_v25 }
 0x2f0   : > { %v8616_v48 = vld [vmem:[#allocation9 + $0xae8] sm:$0xf0]  ;;  %5018 = vmatpush.bf16.msrb.mxu0 %v7883_v11  ;;  %v4790_v11 = vpop.f32.mrf.mxu2  ;;  %v8110_v26 = vld [vmem:[#allocation9 + $0x6d0] sm:$0xf] }
 0x2f1   : > { %5044 = vmatpush.bf16.msrb.mxu2 %v8395_v37  ;;  %v9427_v40 = vld [vmem:[#allocation9 + $0x48c] sm:$0xf]  ;;  %v8619_v52 = vor.u32 %v9627_v47, %v8616_v48  ;;  %v7983_v37 = vor.u32 %v9472_v34, %v7982_v22  ;;  %v9400_v47 = vld [vmem:[#allocation9 + $0x3ac] sm:$0xf0] }
 0x2f2   : > { %5031 = vmatpush.bf16.msrb.mxu1 %v8139_v29  ;;  %v7816_v51 = vld [vmem:[#allocation9 + $0x4a8] sm:$0xf0]  ;;  %v4764_v0 = vpop.f32.mrf.mxu0  ;;  %v4777_v5 = vpop.f32.mrf.mxu1  ;;  %v7727_v29 = vor.u32 %v9408_v21, %v7726_v19  ;;  %v7950_v48 = vld [vmem:[#allocation9 + $0x590] sm:$0xf] }
 0x2f3   : > { %v9491_v43 = vld [vmem:[#allocation9 + $0x68c] sm:$0xf]  ;;  %5057 = vmatpush.bf16.msrb.mxu3 %v8651_v33  ;;  %v7819_v36 = vor.u32 %v9427_v40, %v7816_v51  ;;  %v4778_v10 = vadd.f32 %v4777_v5, %v4764_v0  ;;  %v9528_v40 = vld [vmem:[#allocation9 + $0x7ac] sm:$0xf0] }
 0x2f4   : > { %v8072_v53 = vld [vmem:[#allocation9 + $0x6a8] sm:$0xf0]  ;;  %5019 = vmatpush.bf16.msrb.mxu0 %v7851_v50  ;;  %v9464_v50 = vld [vmem:[#allocation9 + $0x5ac] sm:$0xf0] }
 0x2f5   : > { %v9555_v45 = vld [vmem:[#allocation9 + $0x88c] sm:$0xf]  ;;  %5045 = vmatpush.bf16.msrb.mxu2 %v8363_v46  ;;  %v8075_v54 = vor.u32 %v9491_v43, %v8072_v53  ;;  %v4791_v33 = vadd.f32 %v4790_v11, %v4778_v10  ;;  %v8206_v46 = vld [vmem:[#allocation9 + $0x790] sm:$0xf]  ;;  %v7439_v43 = vor.u32 %v9336_v31, %v7438_v30  ;;  %v7951_v53 = vor.u32 %v9464_v50, %v7950_v48 }
 0x2f6   : > { %v8328_v49 = vld [vmem:[#allocation9 + $0x8a8] sm:$0xf0]  ;;  %5032 = vmatpush.bf16.msrb.mxu1 %v8107_v44  ;;  %v9512_v10 = vld [vmem:[#allocation9 + $0x72c] sm:$0xf0] }
 0x2f7   : > { %v9619_v28 = vld [vmem:[#allocation9 + $0xa8c] sm:$0xf]  ;;  %v8331_v4 = vor.u32 %v9555_v45, %v8328_v49  ;;  %5058 = vmatpush.bf16.msrb.mxu3 %v8619_v52  ;;  %v4804_v51 = vadd.f32 %v4803_v41, %v4791_v33  ;;  %v7695_v52 = vor.u32 %v9400_v47, %v7694_v32  ;;  %v7406_v45 = vld [vmem:[#allocation9 + $0x150] sm:$0xf]  ;;  %v4805_v5 = vpop.f32.mrf.mxu3 }
 0x2f8   : > { %v8584_v63 = vld [vmem:[#allocation9 + $0xaa8] sm:$0xf0]  ;;  %5020 = vmatpush.bf16.msrb.mxu0 %v7819_v36  ;;  %v9328_v49 = vld [vmem:[#allocation9 + $0x16c] sm:$0xf0]  ;;  %v8207_v36 = vor.u32 %v9528_v40, %v8206_v46 }
 0x2f9   : > { %v9419_v12 = vld [vmem:[#allocation9 + $0x44c] sm:$0xf]  ;;  %v8587_v16 = vor.u32 %v9619_v28, %v8584_v63  ;;  %5046 = vmatpush.bf16.msrb.mxu2 %v8331_v4  ;;  %v7662_v28 = vld [vmem:[#allocation9 + $0x350] sm:$0xf]  ;;  %v11006_v63 = vld [vmem:[#allocation1 + $0x24] sm:$0xff] }
 0x2fa   : > { %v7784_v56 = vld [vmem:[#allocation9 + $0x468] sm:$0xf0]  ;;  %5033 = vmatpush.bf16.msrb.mxu1 %v8075_v54  ;;  %v4766_v39 = vpop.f32.mrf.mxu0  ;;  %v4779_v44 = vpop.f32.mrf.mxu1  ;;  %v9392_v54 = vld [vmem:[#allocation9 + $0x36c] sm:$0xf0] }
 0x2fb   : > { %v9483_v57 = vld [vmem:[#allocation9 + $0x64c] sm:$0xf]  ;;  %v7787_v1 = vor.u32 %v9419_v12, %v7784_v56  ;;  %5059 = vmatpush.bf16.msrb.mxu3 %v8587_v16  ;;  %v7918_v4 = vld [vmem:[#allocation9 + $0x550] sm:$0xf] }
 0x2fc   : > { %v8040_v58 = vld [vmem:[#allocation9 + $0x668] sm:$0xf0]  ;;  %v9456_v12 = vld [vmem:[#allocation9 + $0x56c] sm:$0xf0] }
 0x2fd   : > { %v9547_v59 = vld [vmem:[#allocation9 + $0x84c] sm:$0xf]  ;;  %v8043_v6 = vor.u32 %v9483_v57, %v8040_v58  ;;  %5021 = vmatpush.bf16.msrb.mxu0 %v7787_v1  ;;  %v8174_v16 = vld [vmem:[#allocation9 + $0x750] sm:$0xf]  ;;  %v7919_v0 = vor.u32 %v9456_v12, %v7918_v4 }
 0x2fe   : > { %v8296_v60 = vld [vmem:[#allocation9 + $0x868] sm:$0xf0]  ;;  %v9520_v58 = vld [vmem:[#allocation9 + $0x76c] sm:$0xf0] }
 0x2ff   : > { %v9611_v61 = vld [vmem:[#allocation9 + $0xa4c] sm:$0xf]  ;;  %v8299_v7 = vor.u32 %v9547_v59, %v8296_v60  ;;  %5034 = vmatpush.bf16.msrb.mxu1 %v8043_v6  ;;  %v11015_v59 = vld [vmem:[#allocation1 + $0x1b] sm:$0xff]  ;;  %v7407_v60 = vor.u32 %v9328_v49, %v7406_v45  ;;  %v7374_v1 = vld [vmem:[#allocation9 + $0x110] sm:$0xf]  ;;  %v8175_v6 = vor.u32 %v9520_v58, %v8174_v16 }
 0x300   : > { %v8552_v62 = vld [vmem:[#allocation9 + $0xa68] sm:$0xf0]  ;;  %v7342_v19 = vld [vmem:[#allocation9 + $0xd0] sm:$0xf] }
 0x301   : > { %v9411_v2 = vld [vmem:[#allocation9 + $0x40c] sm:$0xf]  ;;  %v8555_v35 = vor.u32 %v9611_v61, %v8552_v62  ;;  %5047 = vmatpush.bf16.msrb.mxu2 %v8299_v7  ;;  %v4792_v61 = vpop.f32.mrf.mxu2  ;;  %v7663_v62 = vor.u32 %v9392_v54, %v7662_v28  ;;  %v9384_v7 = vld [vmem:[#allocation9 + $0x32c] sm:$0xf0] }
 0x302   : > { %v7752_v3 = vld [vmem:[#allocation9 + $0x428] sm:$0xf0]  ;;  %v7598_v21 = vld [vmem:[#allocation9 + $0x2d0] sm:$0xf] }
 0x303   : > { %v9475_v8 = vld [vmem:[#allocation9 + $0x60c] sm:$0xf]  ;;  %v7755_v20 = vor.u32 %v9411_v2, %v7752_v3  ;;  %5060 = vmatpush.bf16.msrb.mxu3 %v8555_v35  ;;  %v9320_v2 = vld [vmem:[#allocation9 + $0x12c] sm:$0xf0]  ;;  %v4816_v35 = vpop.f32.mrf.mxu0 }
 0x304   : > { %v8008_v55 = vld [vmem:[#allocation9 + $0x628] sm:$0xf0]  ;;  %v7630_v3 = vld [vmem:[#allocation9 + $0x310] sm:$0xf] }
 0x305   : > { %v9539_v9 = vld [vmem:[#allocation9 + $0x80c] sm:$0xf]  ;;  %v8011_v23 = vor.u32 %v9475_v8, %v8008_v55  ;;  %5022 = vmatpush.bf16.msrb.mxu0 %v7755_v20  ;;  %v7886_v8 = vld [vmem:[#allocation9 + $0x510] sm:$0xf]  ;;  %v7631_v17 = vor.u32 %v9384_v7, %v7630_v3 }
 0x306   : > { %v8264_v14 = vld [vmem:[#allocation9 + $0x828] sm:$0xf0]  ;;  %v9448_v55 = vld [vmem:[#allocation9 + $0x52c] sm:$0xf0] }
 0x307   : > { %v9603_v15 = vld [vmem:[#allocation9 + $0xa0c] sm:$0xf]  ;;  %v8267_v24 = vor.u32 %v9539_v9, %v8264_v14  ;;  %5035 = vmatpush.bf16.msrb.mxu1 %v8011_v23  ;;  %v8142_v9 = vld [vmem:[#allocation9 + $0x710] sm:$0xf]  ;;  %v7375_v14 = vor.u32 %v9320_v2, %v7374_v1  ;;  %v7887_v18 = vor.u32 %v9448_v55, %v7886_v8 }
 0x308   : > { %v8520_v38 = vld [vmem:[#allocation9 + $0xa28] sm:$0xf0]  ;;  %v9312_v20 = vld [vmem:[#allocation9 + $0xec] sm:$0xf0]  ;;  %v8143_v22 = vor.u32 %v9512_v10, %v8142_v9 }
 0x309   : > { %v8523_v27 = vor.u32 %v9603_v15, %v8520_v38  ;;  %5048 = vmatpush.bf16.msrb.mxu2 %v8267_v24  ;;  %5067 = vmatpush.bf16.msra.mxu0 %v7471_v13  ;;  %v11009_v56 = vld [vmem:[#allocation1 + $0x12] sm:$0xff]  ;;  %v4817_v15 = vadd.f32 %v4816_v35, %v4804_v51  ;;  %v4829_v38 = vpop.f32.mrf.mxu1  ;;  %v7343_v13 = vor.u32 %v9312_v20, %v7342_v19 }
 0x30a   : > { %5023 = vmatmul.bf16.vlgmr.msrb.gmra.mxu0 %v11009_v56  ;;  %v11012_v57 = vld [vmem:[#allocation1 + $0x2d] sm:$0xff]  ;;  %5036 = vmatmul.bf16.vlgmr.msrb.gmra.mxu1 %v11015_v59  ;;  %v9376_v34 = vld [vmem:[#allocation9 + $0x2ec] sm:$0xf0]  ;;  %v4855_v50 = vpop.f32.mrf.mxu3 }
 0x30b   : > { %5061 = vmatpush.bf16.msrb.mxu3 %v8523_v27  ;;  %5080 = vmatpush.bf16.msra.mxu1 %v7727_v29  ;;  %v7854_v23 = vld [vmem:[#allocation9 + $0x4d0] sm:$0xf]  ;;  %v11018_v25 = vadd.f32 %v4829_v38, %v4817_v15  ;;  %v7599_v11 = vor.u32 %v9376_v34, %v7598_v21  ;;  %v4818_v44 = vpop.f32.mrf.mxu0  ;;  %v9404_v21 = vld [vmem:[#allocation9 + $0x3d4] sm:$0xf] }
 0x30c   : > { %5049 = vmatmul.bf16.vlgmr.msrb.gmra.mxu2 %v11006_v63  ;;  %v9440_v24 = vld [vmem:[#allocation9 + $0x4ec] sm:$0xf0] }
 0x30d   : > { %5093 = vmatpush.bf16.msra.mxu2 %v7983_v37  ;;  %5068 = vmatpush.bf16.msra.mxu0 %v7439_v43  ;;  %v9504_v27 = vld [vmem:[#allocation9 + $0x6ec] sm:$0xf0]  ;;  %v7855_v29 = vor.u32 %v9440_v24, %v7854_v23 }
 0x30e   : > { %5062 = vmatmul.bf16.vlgmr.msrb.gmra.mxu3 %v11012_v57  ;;  %v7310_v37 = vld [vmem:[#allocation9 + $0x90] sm:$0xf]  ;;  %v8111_v32 = vor.u32 %v9504_v27, %v8110_v26 }
 0x30f   : > { %5106 = vmatpush.bf16.msra.mxu3 %v8239_v42  ;;  %5081 = vmatpush.bf16.msra.mxu1 %v7695_v52  ;;  %v9304_v30 = vld [vmem:[#allocation9 + $0xac] sm:$0xf0]  ;;  %v4842_v42 = vpop.f32.mrf.mxu2 }
 0x310   : > { %v7566_v31 = vld [vmem:[#allocation9 + $0x290] sm:$0xf]  ;;  %v7311_v46 = vor.u32 %v9304_v30, %v7310_v37  ;;  %v11020_v40 = vadd.f32 %v4855_v50, %v4842_v42  ;;  %v9332_v30 = vld [vmem:[#allocation9 + $0x194] sm:$0xf] }
 0x311   : > { %5094 = vmatpush.bf16.msra.mxu2 %v7951_v53  ;;  %5069 = vmatpush.bf16.msra.mxu0 %v7407_v60  ;;  %v9368_v33 = vld [vmem:[#allocation9 + $0x2ac] sm:$0xf0]  ;;  %v4831_v51 = vpop.f32.mrf.mxu1 }
 0x312   : > { %v7822_v39 = vld [vmem:[#allocation9 + $0x490] sm:$0xf]  ;;  %v7567_v43 = vor.u32 %v9368_v33, %v7566_v31  ;;  %v7440_v31 = vld [vmem:[#allocation9 + $0x1b0] sm:$0xf0] }
 0x313   : > { %5107 = vmatpush.bf16.msra.mxu3 %v8207_v36  ;;  %5082 = vmatpush.bf16.msra.mxu1 %v7663_v62  ;;  %v9432_v41 = vld [vmem:[#allocation9 + $0x4ac] sm:$0xf0]  ;;  %v7696_v33 = vld [vmem:[#allocation9 + $0x3b0] sm:$0xf0]  ;;  %v7443_v42 = vor.u32 %v9332_v30, %v7440_v31 }
 0x314   : > { %v8078_v47 = vld [vmem:[#allocation9 + $0x690] sm:$0xf]  ;;  %v7823_v52 = vor.u32 %v9432_v41, %v7822_v39  ;;  %v9324_v51 = vld [vmem:[#allocation9 + $0x154] sm:$0xf] }
 0x315   : > { %5095 = vmatpush.bf16.msra.mxu2 %v7919_v0  ;;  %5070 = vmatpush.bf16.msra.mxu0 %v7375_v14  ;;  %v9496_v48 = vld [vmem:[#allocation9 + $0x6ac] sm:$0xf0]  ;;  %v4857_v14 = vpop.f32.mrf.mxu3  ;;  %v9364_v30 = vld [vmem:[#allocation9 + $0x294] sm:$0xf] }
 0x316   : > { %v7278_v53 = vld [vmem:[#allocation9 + $0x50] sm:$0xf]  ;;  %v8079_v28 = vor.u32 %v9496_v48, %v8078_v47  ;;  %v7568_v31 = vld [vmem:[#allocation9 + $0x2b0] sm:$0xf0] }
 0x317   : > { %5108 = vmatpush.bf16.msra.mxu3 %v8175_v6  ;;  %5083 = vmatpush.bf16.msra.mxu1 %v7631_v17  ;;  %v9296_v45 = vld [vmem:[#allocation9 + $0x6c] sm:$0xf0]  ;;  %v4844_v55 = vpop.f32.mrf.mxu2  ;;  %v9340_v17 = vld [vmem:[#allocation9 + $0x1d4] sm:$0xf] }
 0x318   : > { %v7534_v49 = vld [vmem:[#allocation9 + $0x250] sm:$0xf]  ;;  %v7279_v58 = vor.u32 %v9296_v45, %v7278_v53  ;;  %v9388_v53 = vld [vmem:[#allocation9 + $0x354] sm:$0xf] }
 0x319   : > { %5096 = vmatpush.bf16.msra.mxu2 %v7887_v18  ;;  %5071 = vmatpush.bf16.msra.mxu0 %v7343_v13  ;;  %v9360_v36 = vld [vmem:[#allocation9 + $0x26c] sm:$0xf0]  ;;  %v7472_v18 = vld [vmem:[#allocation9 + $0x1f0] sm:$0xf0] }
 0x31a   : > { %v7790_v54 = vld [vmem:[#allocation9 + $0x450] sm:$0xf]  ;;  %v7535_v62 = vor.u32 %v9360_v36, %v7534_v49  ;;  %v7475_v26 = vor.u32 %v9340_v17, %v7472_v18  ;;  %v7664_v45 = vld [vmem:[#allocation9 + $0x370] sm:$0xf0]  ;;  %v11026_v49 = vld [vmem:[#allocation1 + $0x9] sm:$0xff] }
 0x31b   : > { %5109 = vmatpush.bf16.msra.mxu3 %v8143_v22  ;;  %5084 = vmatpush.bf16.msra.mxu1 %v7599_v11  ;;  %v9424_v4 = vld [vmem:[#allocation9 + $0x46c] sm:$0xf0]  ;;  %v7728_v22 = vld [vmem:[#allocation9 + $0x3f0] sm:$0xf0] }
 0x31c   : > { %v8046_v12 = vld [vmem:[#allocation9 + $0x650] sm:$0xf]  ;;  %v7791_v0 = vor.u32 %v9424_v4, %v7790_v54  ;;  %v9372_v18 = vld [vmem:[#allocation9 + $0x2d4] sm:$0xf] }
 0x31d   : > { %5097 = vmatpush.bf16.msra.mxu2 %v7855_v29  ;;  %v9488_v16 = vld [vmem:[#allocation9 + $0x66c] sm:$0xf0]  ;;  %5072 = vmatpush.bf16.msra.mxu0 %v7311_v46  ;;  %v7731_v29 = vor.u32 %v9404_v21, %v7728_v22 }
 0x31e   : > { %v7246_v60 = vld [vmem:[#allocation9 + $0x10] sm:$0xf]  ;;  %v8047_v5 = vor.u32 %v9488_v16, %v8046_v12 }
 0x31f   : > { %5110 = vmatpush.bf16.msra.mxu3 %v8111_v32  ;;  %v9288_v61 = vld [vmem:[#allocation9 + $0x2c] sm:$0xf0]  ;;  %5085 = vmatpush.bf16.msra.mxu1 %v7567_v43  ;;  %v9396_v32 = vld [vmem:[#allocation9 + $0x394] sm:$0xf] }
 0x320   : > { %v7502_v1 = vld [vmem:[#allocation9 + $0x210] sm:$0xf]  ;;  %v7247_v15 = vor.u32 %v9288_v61, %v7246_v60  ;;  %v7699_v44 = vor.u32 %v9396_v32, %v7696_v33  ;;  %v7408_v43 = vld [vmem:[#allocation9 + $0x170] sm:$0xf0] }
 0x321   : > { %5098 = vmatpush.bf16.msra.mxu2 %v7823_v52  ;;  %v9352_v2 = vld [vmem:[#allocation9 + $0x22c] sm:$0xf0]  ;;  %5073 = vmatpush.bf16.msra.mxu0 %v7279_v58  ;;  %v11022_v52 = vld [vmem:[#allocation1] sm:$0xff]  ;;  %v7411_v54 = vor.u32 %v9324_v51, %v7408_v43  ;;  %v7667_v58 = vor.u32 %v9388_v53, %v7664_v45  ;;  %v9316_v61 = vld [vmem:[#allocation9 + $0x114] sm:$0xf]  ;;  %v7571_v43 = vor.u32 %v9364_v30, %v7568_v31 }
 0x322   : > { %v7758_v3 = vld [vmem:[#allocation9 + $0x410] sm:$0xf]  ;;  %v7503_v19 = vor.u32 %v9352_v2, %v7502_v1  ;;  %v7632_v1 = vld [vmem:[#allocation9 + $0x330] sm:$0xf0] }
 0x323   : > { %5111 = vmatpush.bf16.msra.mxu3 %v8079_v28  ;;  %v9416_v6 = vld [vmem:[#allocation9 + $0x42c] sm:$0xf0]  ;;  %5086 = vmatpush.bf16.msra.mxu1 %v7535_v62  ;;  %v7376_v62 = vld [vmem:[#allocation9 + $0x130] sm:$0xf0] }
 0x324   : > { %v8014_v7 = vld [vmem:[#allocation9 + $0x610] sm:$0xf]  ;;  %v7759_v20 = vor.u32 %v9416_v6, %v7758_v3  ;;  %v4868_v3 = vpop.f32.mrf.mxu0  ;;  %v7379_v6 = vor.u32 %v9316_v61, %v7376_v62  ;;  %v9292_v53 = vld [vmem:[#allocation9 + $0x54] sm:$0xf] }
 0x325   : > { %v9480_v8 = vld [vmem:[#allocation9 + $0x62c] sm:$0xf0]  ;;  %5099 = vmatpush.bf16.msra.mxu2 %v7791_v0  ;;  %5074 = vmatpush.bf16.msra.mxu0 %v7247_v15  ;;  %v9380_v0 = vld [vmem:[#allocation9 + $0x314] sm:$0xf] }
 0x326   : > { %v8494_v9 = vld [vmem:[#allocation9 + $0x9d0] sm:$0xf]  ;;  %v8015_v34 = vor.u32 %v9480_v8, %v8014_v7  ;;  %v4869_v7 = vadd.f32 %v4868_v3, %v11020_v40  ;;  %v4881_v8 = vpop.f32.mrf.mxu1  ;;  %v9308_v15 = vld [vmem:[#allocation9 + $0xd4] sm:$0xf] }
 0x327   : > { %v9600_v10 = vld [vmem:[#allocation9 + $0x9ec] sm:$0xf0]  ;;  %5112 = vmatpush.bf16.msra.mxu3 %v8047_v5  ;;  %5087 = vmatpush.bf16.msra.mxu1 %v7503_v19  ;;  %v7600_v19 = vld [vmem:[#allocation9 + $0x2f0] sm:$0xf0] }
 0x328   : > { %v8750_v35 = vld [vmem:[#allocation9 + $0xbd0] sm:$0xf]  ;;  %v8495_v23 = vor.u32 %v9600_v10, %v8494_v9  ;;  %5075 = vmatmul.bf16.vlgmr.msra.gmra.mxu0 %v11022_v52  ;;  %v4882_v17 = vadd.f32 %v4881_v8, %v4869_v7  ;;  %v7280_v45 = vld [vmem:[#allocation9 + $0x70] sm:$0xf0] }
 0x329   : > { %v9664_v38 = vld [vmem:[#allocation9 + $0xbec] sm:$0xf0]  ;;  %5100 = vmatpush.bf16.msra.mxu2 %v7759_v20  ;;  %v7248_v3 = vld [vmem:[#allocation9 + $0x30] sm:$0xf0] }
 0x32a   : > { %v8751_v24 = vor.u32 %v9664_v38, %v8750_v35  ;;  %v8462_v27 = vld [vmem:[#allocation9 + $0x990] sm:$0xf]  ;;  %5119 = vmatpush.bf16.msrb.mxu0 %v8495_v23  ;;  %5088 = vmatmul.bf16.vlgmr.msra.gmra.mxu1 %v11026_v49  ;;  %v7635_v35 = vor.u32 %v9380_v0, %v7632_v1  ;;  %v7344_v38 = vld [vmem:[#allocation9 + $0xf0] sm:$0xf0] }
 0x32b   : > { %v9592_v13 = vld [vmem:[#allocation9 + $0x9ac] sm:$0xf0]  ;;  %5113 = vmatpush.bf16.msra.mxu3 %v8015_v34  ;;  %v7347_v22 = vor.u32 %v9308_v15, %v7344_v38  ;;  %v4894_v34 = vpop.f32.mrf.mxu2  ;;  %v9284_v0 = vld [vmem:[#allocation9 + $0x14] sm:$0xf] }
 0x32c   : > { %v8718_v11 = vld [vmem:[#allocation9 + $0xb90] sm:$0xf]  ;;  %v8463_v39 = vor.u32 %v9592_v13, %v8462_v27  ;;  %5132 = vmatpush.bf16.msrb.mxu1 %v8751_v24  ;;  %5101 = vmatmul.bf16.vlgmr.msra.gmra.mxu2 %v11009_v56  ;;  %v4895_v27 = vadd.f32 %v4894_v34, %v4882_v17  ;;  %v4907_v13 = vpop.f32.mrf.mxu3  ;;  %v7984_v8 = vld [vmem:[#allocation9 + $0x5f0] sm:$0xf0]  ;;  %v7251_v38 = vor.u32 %v9284_v0, %v7248_v3 }
 0x32d   : > { %v9656_v37 = vld [vmem:[#allocation9 + $0xbac] sm:$0xf0]  ;;  %5145 = vmatpush.bf16.msrb.mxu2 %v7475_v26  ;;  %v7603_v26 = vor.u32 %v9372_v18, %v7600_v19  ;;  %v9660_v17 = vld [vmem:[#allocation9 + $0xbd4] sm:$0xf] }
 0x32e   : > { %v8719_v41 = vor.u32 %v9656_v37, %v8718_v11  ;;  %v8430_v47 = vld [vmem:[#allocation9 + $0x950] sm:$0xf]  ;;  %5120 = vmatpush.bf16.msrb.mxu0 %v8463_v39  ;;  %5114 = vmatmul.bf16.vlgmr.msra.gmra.mxu3 %v11015_v59  ;;  %v7312_v37 = vld [vmem:[#allocation9 + $0xb0] sm:$0xf0]  ;;  %v4908_v32 = vadd.f32 %v4907_v13, %v4895_v27 }
 0x32f   : > { %v9584_v48 = vld [vmem:[#allocation9 + $0x96c] sm:$0xf0]  ;;  %5158 = vmatpush.bf16.msrb.mxu3 %v7731_v29  ;;  %v9300_v29 = vld [vmem:[#allocation9 + $0x94] sm:$0xf] }
 0x330   : > { %v8686_v50 = vld [vmem:[#allocation9 + $0xb50] sm:$0xf]  ;;  %v8431_v28 = vor.u32 %v9584_v48, %v8430_v47  ;;  %5133 = vmatpush.bf16.msrb.mxu1 %v8719_v41  ;;  %v4870_v41 = vpop.f32.mrf.mxu0  ;;  %v7315_v47 = vor.u32 %v9300_v29, %v7312_v37  ;;  %v5387_v51 = vrot.slane %v4908_v32, 6  ;;  %v8752_v18 = vld [vmem:[#allocation9 + $0xbf0] sm:$0xf0] }
 0x331   : > { %v9648_v46 = vld [vmem:[#allocation9 + $0xb6c] sm:$0xf0]  ;;  %5146 = vmatpush.bf16.msrb.mxu2 %v7443_v42  ;;  %v9460_v34 = vld [vmem:[#allocation9 + $0x594] sm:$0xf] }
 0x332   : > { %v8687_v36 = vor.u32 %v9648_v46, %v8686_v50  ;;  %v8398_v4 = vld [vmem:[#allocation9 + $0x910] sm:$0xf]  ;;  %5121 = vmatpush.bf16.msrb.mxu0 %v8431_v28  ;;  %v4883_v46 = vpop.f32.mrf.mxu1  ;;  %v9356_v28 = vld [vmem:[#allocation9 + $0x254] sm:$0xf] }
 0x333   : > { %v9576_v12 = vld [vmem:[#allocation9 + $0x92c] sm:$0xf0]  ;;  %5159 = vmatpush.bf16.msrb.mxu3 %v7699_v44  ;;  %v4896_v1 = vpop.f32.mrf.mxu2  ;;  %v9588_v27 = vld [vmem:[#allocation9 + $0x994] sm:$0xf] }
 0x334   : > { %v8654_v16 = vld [vmem:[#allocation9 + $0xb10] sm:$0xf]  ;;  %v8399_v2 = vor.u32 %v9576_v12, %v8398_v4  ;;  %5134 = vmatpush.bf16.msrb.mxu1 %v8687_v36  ;;  %v7536_v36 = vld [vmem:[#allocation9 + $0x270] sm:$0xf0]  ;;  %v4909_v7 = vpop.f32.mrf.mxu3 }
 0x335   : > { %v9640_v60 = vld [vmem:[#allocation9 + $0xb2c] sm:$0xf0]  ;;  %5147 = vmatpush.bf16.msrb.mxu2 %v7411_v54  ;;  %v11033_v54 = vsel %vm2415_vm3, %v11018_v25, %v5387_v51  ;;  %v9468_v25 = vld [vmem:[#allocation9 + $0x5d4] sm:$0xf] }
 0x336   : > { %v8655_v5 = vor.u32 %v9640_v60, %v8654_v16  ;;  %v8366_v55 = vld [vmem:[#allocation9 + $0x8d0] sm:$0xf]  ;;  %5122 = vmatpush.bf16.msrb.mxu0 %v8399_v2  ;;  %v7283_v60 = vor.u32 %v9292_v53, %v7280_v45  ;;  %v7539_v2 = vor.u32 %v9356_v28, %v7536_v36  ;;  %v8464_v13 = vld [vmem:[#allocation9 + $0x9b0] sm:$0xf0] }
 0x337   : > { %v9568_v9 = vld [vmem:[#allocation9 + $0x8ec] sm:$0xf0]  ;;  %5160 = vmatpush.bf16.msrb.mxu3 %v7667_v58  ;;  %v8720_v29 = vld [vmem:[#allocation9 + $0xbb0] sm:$0xf0]  ;;  %v8467_v31 = vor.u32 %v9588_v27, %v8464_v13 }
 0x338   : > { %v8622_v10 = vld [vmem:[#allocation9 + $0xad0] sm:$0xf]  ;;  %v8367_v20 = vor.u32 %v9568_v9, %v8366_v55  ;;  %5135 = vmatpush.bf16.msrb.mxu1 %v8655_v5  ;;  %v9348_v5 = vld [vmem:[#allocation9 + $0x214] sm:$0xf] }
 0x339   : > { %v9632_v14 = vld [vmem:[#allocation9 + $0xaec] sm:$0xf0]  ;;  %5148 = vmatpush.bf16.msrb.mxu2 %v7379_v6  ;;  %v7504_v6 = vld [vmem:[#allocation9 + $0x230] sm:$0xf0] }
 0x33a   : > { %v8623_v21 = vor.u32 %v9632_v14, %v8622_v10  ;;  %v8334_v40 = vld [vmem:[#allocation9 + $0x890] sm:$0xf]  ;;  %5123 = vmatpush.bf16.msrb.mxu0 %v8367_v20  ;;  %v9532_v55 = vld [vmem:[#allocation9 + $0x7d4] sm:$0xf]  ;;  %v7507_v19 = vor.u32 %v9348_v5, %v7504_v6  ;;  %v7987_v20 = vor.u32 %v9468_v25, %v7984_v8 }
 0x33b   : > { %v9560_v23 = vld [vmem:[#allocation9 + $0x8ac] sm:$0xf0]  ;;  %5161 = vmatpush.bf16.msrb.mxu3 %v7635_v35  ;;  %v8240_v10 = vld [vmem:[#allocation9 + $0x7f0] sm:$0xf0] }
 0x33c   : > { %v8590_v24 = vld [vmem:[#allocation9 + $0xa90] sm:$0xf]  ;;  %v8335_v33 = vor.u32 %v9560_v23, %v8334_v40  ;;  %5136 = vmatpush.bf16.msrb.mxu1 %v8623_v21  ;;  %v9596_v35 = vld [vmem:[#allocation9 + $0x9d4] sm:$0xf]  ;;  %v8243_v21 = vor.u32 %v9532_v55, %v8240_v10 }
 0x33d   : > { %v9624_v11 = vld [vmem:[#allocation9 + $0xaac] sm:$0xf0]  ;;  %5149 = vmatpush.bf16.msrb.mxu2 %v7347_v22  ;;  %v8496_v14 = vld [vmem:[#allocation9 + $0x9f0] sm:$0xf0] }
 0x33e   : > { %v8302_v39 = vld [vmem:[#allocation9 + $0x850] sm:$0xf]  ;;  %v8591_v42 = vor.u32 %v9624_v11, %v8590_v24  ;;  %5124 = vmatpush.bf16.msrb.mxu0 %v8335_v33  ;;  %v8499_v22 = vor.u32 %v9596_v35, %v8496_v14  ;;  %v7952_v40 = vld [vmem:[#allocation9 + $0x5b0] sm:$0xf0]  ;;  %v8755_v24 = vor.u32 %v9660_v17, %v8752_v18 }
 0x33f   : > { %v9552_v48 = vld [vmem:[#allocation9 + $0x86c] sm:$0xf0]  ;;  %5162 = vmatpush.bf16.msrb.mxu3 %v7603_v26  ;;  %v9524_v23 = vld [vmem:[#allocation9 + $0x794] sm:$0xf]  ;;  %v7955_v37 = vor.u32 %v9460_v34, %v7952_v40 }
 0x340   : > { %v8558_v50 = vld [vmem:[#allocation9 + $0xa50] sm:$0xf]  ;;  %v8303_v4 = vor.u32 %v9552_v48, %v8302_v39  ;;  %5137 = vmatpush.bf16.msrb.mxu1 %v8591_v42  ;;  %v8208_v26 = vld [vmem:[#allocation9 + $0x7b0] sm:$0xf0] }
 0x341   : > { %v9616_v44 = vld [vmem:[#allocation9 + $0xa6c] sm:$0xf0]  ;;  %5150 = vmatpush.bf16.msrb.mxu2 %v7315_v47  ;;  %v9652_v11 = vld [vmem:[#allocation9 + $0xb94] sm:$0xf]  ;;  %v8211_v30 = vor.u32 %v9524_v23, %v8208_v26 }
 0x342   : > { %v8270_v12 = vld [vmem:[#allocation9 + $0x810] sm:$0xf]  ;;  %v8559_v58 = vor.u32 %v9616_v44, %v8558_v50  ;;  %5125 = vmatpush.bf16.msrb.mxu0 %v8303_v4  ;;  %v9452_v32 = vld [vmem:[#allocation9 + $0x554] sm:$0xf]  ;;  %v8723_v41 = vor.u32 %v9652_v11, %v8720_v29  ;;  %v11041_v0 = vpop.f32.mrf.mxu1 }
 0x343   : > { %v9544_v16 = vld [vmem:[#allocation9 + $0x82c] sm:$0xf0]  ;;  %5163 = vmatpush.bf16.msrb.mxu3 %v7571_v43  ;;  %v7920_v33 = vld [vmem:[#allocation9 + $0x570] sm:$0xf0] }
 0x344   : > { %v8526_v61 = vld [vmem:[#allocation9 + $0xa10] sm:$0xf]  ;;  %v8271_v9 = vor.u32 %v9544_v16, %v8270_v12  ;;  %5138 = vmatpush.bf16.msrb.mxu1 %v8559_v58  ;;  %v9516_v39 = vld [vmem:[#allocation9 + $0x754] sm:$0xf]  ;;  %v7923_v46 = vor.u32 %v9452_v32, %v7920_v33 }
 0x345   : > { %v9608_v62 = vld [vmem:[#allocation9 + $0xa2c] sm:$0xf0]  ;;  %5151 = vmatpush.bf16.msrb.mxu2 %v7283_v60  ;;  %v8176_v42 = vld [vmem:[#allocation9 + $0x770] sm:$0xf0] }
 0x346   : > { %v8527_v15 = vor.u32 %v9608_v62, %v8526_v61  ;;  %5126 = vmatpush.bf16.msrb.mxu0 %v8271_v9  ;;  %v9580_v47 = vld [vmem:[#allocation9 + $0x954] sm:$0xf]  ;;  %v8179_v51 = vor.u32 %v9516_v39, %v8176_v42  ;;  %v11039_v61 = vpop.f32.mrf.mxu0 }
 0x347   : > { %5164 = vmatpush.bf16.msrb.mxu3 %v7539_v2  ;;  %v8432_v48 = vld [vmem:[#allocation9 + $0x970] sm:$0xf0]  ;;  %v11043_v34 = vpop.f32.mrf.mxu2 }
 0x348   : > { %5139 = vmatpush.bf16.msrb.mxu1 %v8527_v15  ;;  %v9644_v50 = vld [vmem:[#allocation9 + $0xb54] sm:$0xf]  ;;  %v8435_v43 = vor.u32 %v9580_v47, %v8432_v48 }
 0x349   : > { %5152 = vmatpush.bf16.msrb.mxu2 %v7251_v38  ;;  %5127 = vmatmul.bf16.vlgmr.msrb.gmra.mxu0 %v11006_v63  ;;  %v8688_v44 = vld [vmem:[#allocation9 + $0xb70] sm:$0xf0]  ;;  %v11045_v26 = vpop.f32.mrf.mxu3 }
 0x34a   : > { %5171 = vmatpush.bf16.msra.mxu0 %v7987_v20  ;;  %v9444_v53 = vld [vmem:[#allocation9 + $0x514] sm:$0xf]  ;;  %v8691_v36 = vor.u32 %v9644_v50, %v8688_v44  ;;  %v4935_v13 = vpop.f32.mrf.mxu1 }
 0x34b   : > { %5165 = vmatpush.bf16.msrb.mxu3 %v7507_v19  ;;  %5140 = vmatmul.bf16.vlgmr.msrb.gmra.mxu1 %v11012_v57  ;;  %v7888_v45 = vld [vmem:[#allocation9 + $0x530] sm:$0xf0]  ;;  %v7414_v13 = vld [vmem:[#allocation9 + $0x158] sm:$0xf] }
 0x34c   : > { %5184 = vmatpush.bf16.msra.mxu1 %v8243_v21  ;;  %5153 = vmatmul.bf16.vlgmr.msrb.gmra.mxu2 %v11022_v52  ;;  %v9508_v28 = vld [vmem:[#allocation9 + $0x714] sm:$0xf]  ;;  %v7891_v62 = vor.u32 %v9444_v53, %v7888_v45 }
 0x34d   : > { %5197 = vmatpush.bf16.msra.mxu2 %v8499_v22  ;;  %v8144_v4 = vld [vmem:[#allocation9 + $0x730] sm:$0xf0] }
 0x34e   : > { %5172 = vmatpush.bf16.msra.mxu0 %v7955_v37  ;;  %5166 = vmatmul.bf16.vlgmr.msrb.gmra.mxu3 %v11026_v49  ;;  %v9572_v12 = vld [vmem:[#allocation9 + $0x914] sm:$0xf]  ;;  %v8147_v1 = vor.u32 %v9508_v28, %v8144_v4 }
 0x34f   : > { %5210 = vmatpush.bf16.msra.mxu3 %v8755_v24  ;;  %v8400_v16 = vld [vmem:[#allocation9 + $0x930] sm:$0xf0]  ;;  %v4922_v24 = vpop.f32.mrf.mxu0 }
 0x350   : > { %5185 = vmatpush.bf16.msra.mxu1 %v8211_v30  ;;  %v9636_v58 = vld [vmem:[#allocation9 + $0xb14] sm:$0xf]  ;;  %v8403_v2 = vor.u32 %v9572_v12, %v8400_v16  ;;  %v4948_v16 = vpop.f32.mrf.mxu2 }
 0x351   : > { %5198 = vmatpush.bf16.msra.mxu2 %v8467_v31  ;;  %v8656_v60 = vld [vmem:[#allocation9 + $0xb30] sm:$0xf0]  ;;  %v7606_v16 = vld [vmem:[#allocation9 + $0x2d8] sm:$0xf] }
 0x352   : > { %5173 = vmatpush.bf16.msra.mxu0 %v7923_v46  ;;  %v9436_v3 = vld [vmem:[#allocation9 + $0x4d4] sm:$0xf]  ;;  %v8659_v7 = vor.u32 %v9636_v58, %v8656_v60  ;;  %v7478_v58 = vld [vmem:[#allocation9 + $0x1d8] sm:$0xf] }
 0x353   : > { %5211 = vmatpush.bf16.msra.mxu3 %v8723_v41  ;;  %v7856_v5 = vld [vmem:[#allocation9 + $0x4f0] sm:$0xf0]  ;;  %v9345_v60 = vld [vmem:[#allocation9 + $0x1f4] sm:$0xf0] }
 0x354   : > { %5186 = vmatpush.bf16.msra.mxu1 %v8179_v51  ;;  %v9500_v6 = vld [vmem:[#allocation9 + $0x6d4] sm:$0xf]  ;;  %v7859_v35 = vor.u32 %v9436_v3, %v7856_v5  ;;  %v9409_v3 = vld [vmem:[#allocation9 + $0x3f4] sm:$0xf0] }
 0x355   : > { %5199 = vmatpush.bf16.msra.mxu2 %v8435_v43  ;;  %v8112_v25 = vld [vmem:[#allocation9 + $0x6f0] sm:$0xf0]  ;;  %v7990_v5 = vld [vmem:[#allocation9 + $0x5d8] sm:$0xf] }
 0x356   : > { %v9564_v8 = vld [vmem:[#allocation9 + $0x8d4] sm:$0xf]  ;;  %5174 = vmatpush.bf16.msra.mxu0 %v7891_v62  ;;  %v8115_v14 = vor.u32 %v9500_v6, %v8112_v25  ;;  %v7734_v62 = vld [vmem:[#allocation9 + $0x3d8] sm:$0xf] }
 0x357   : > { %5212 = vmatpush.bf16.msra.mxu3 %v8691_v36  ;;  %v8368_v55 = vld [vmem:[#allocation9 + $0x8f0] sm:$0xf0]  ;;  %v9473_v6 = vld [vmem:[#allocation9 + $0x5f4] sm:$0xf0] }
 0x358   : > { %v9628_v9 = vld [vmem:[#allocation9 + $0xad4] sm:$0xf]  ;;  %5187 = vmatpush.bf16.msra.mxu1 %v8147_v1  ;;  %v8371_v15 = vor.u32 %v9564_v8, %v8368_v55  ;;  %v4961_v1 = vpop.f32.mrf.mxu3  ;;  %v8246_v8 = vld [vmem:[#allocation9 + $0x7d8] sm:$0xf] }
 0x359   : > { %v8624_v10 = vld [vmem:[#allocation9 + $0xaf0] sm:$0xf0]  ;;  %5200 = vmatpush.bf16.msra.mxu2 %v8403_v2  ;;  %v9537_v55 = vld [vmem:[#allocation9 + $0x7f4] sm:$0xf0] }
 0x35a   : > { %v9428_v38 = vld [vmem:[#allocation9 + $0x494] sm:$0xf]  ;;  %v8627_v19 = vor.u32 %v9628_v9, %v8624_v10  ;;  %5175 = vmatpush.bf16.msra.mxu0 %v7859_v35  ;;  %v7479_v10 = vor.u32 %v9345_v60, %v7478_v58  ;;  %v7735_v35 = vor.u32 %v9409_v3, %v7734_v62  ;;  %v9377_v60 = vld [vmem:[#allocation9 + $0x2f4] sm:$0xf0] }
 0x35b   : > { %v7824_v17 = vld [vmem:[#allocation9 + $0x4b0] sm:$0xf0]  ;;  %5213 = vmatpush.bf16.msra.mxu3 %v8659_v7  ;;  %v7862_v62 = vld [vmem:[#allocation9 + $0x4d8] sm:$0xf] }
 0x35c   : > { %v9492_v18 = vld [vmem:[#allocation9 + $0x694] sm:$0xf]  ;;  %v7827_v27 = vor.u32 %v9428_v38, %v7824_v17  ;;  %5188 = vmatpush.bf16.msra.mxu1 %v8115_v14  ;;  %v7991_v14 = vor.u32 %v9473_v6, %v7990_v5  ;;  %v9337_v38 = vld [vmem:[#allocation9 + $0x1b4] sm:$0xf0]  ;;  %v7607_v6 = vor.u32 %v9377_v60, %v7606_v16  ;;  %v7480_v16 = vld [vmem:[#allocation9 + $0x1f8] sm:$0xf0] }
 0x35d   : > { %v8080_v20 = vld [vmem:[#allocation9 + $0x6b0] sm:$0xf0]  ;;  %5201 = vmatpush.bf16.msra.mxu2 %v8371_v15  ;;  %v7446_v15 = vld [vmem:[#allocation9 + $0x198] sm:$0xf] }
 0x35e   : > { %v9556_v21 = vld [vmem:[#allocation9 + $0x894] sm:$0xf]  ;;  %v8083_v11 = vor.u32 %v9492_v18, %v8080_v20  ;;  %5176 = vmatpush.bf16.msra.mxu0 %v7827_v27  ;;  %v7702_v17 = vld [vmem:[#allocation9 + $0x398] sm:$0xf]  ;;  %v8247_v18 = vor.u32 %v9537_v55, %v8246_v8 }
 0x35f   : > { %v8336_v22 = vld [vmem:[#allocation9 + $0x8b0] sm:$0xf0]  ;;  %5214 = vmatpush.bf16.msra.mxu3 %v8627_v19  ;;  %v9401_v19 = vld [vmem:[#allocation9 + $0x3b4] sm:$0xf0] }
 0x360   : > { %v9620_v40 = vld [vmem:[#allocation9 + $0xa94] sm:$0xf]  ;;  %v8339_v29 = vor.u32 %v9556_v21, %v8336_v22  ;;  %5189 = vmatpush.bf16.msra.mxu1 %v8083_v11  ;;  %v7958_v20 = vld [vmem:[#allocation9 + $0x598] sm:$0xf]  ;;  %v7703_v24 = vor.u32 %v9401_v19, %v7702_v17 }
 0x361   : > { %v8592_v23 = vld [vmem:[#allocation9 + $0xab0] sm:$0xf0]  ;;  %v9465_v21 = vld [vmem:[#allocation9 + $0x5b4] sm:$0xf0] }
 0x362   : > { %v9420_v37 = vld [vmem:[#allocation9 + $0x454] sm:$0xf]  ;;  %v8595_v32 = vor.u32 %v9620_v40, %v8592_v23  ;;  %5202 = vmatpush.bf16.msra.mxu2 %v8339_v29  ;;  %v8214_v22 = vld [vmem:[#allocation9 + $0x798] sm:$0xf]  ;;  %v7447_v23 = vor.u32 %v9337_v38, %v7446_v15  ;;  %v7959_v27 = vor.u32 %v9465_v21, %v7958_v20 }
 0x363   : > { %v7792_v30 = vld [vmem:[#allocation9 + $0x470] sm:$0xf0]  ;;  %v9529_v40 = vld [vmem:[#allocation9 + $0x7b4] sm:$0xf0] }
 0x364   : > { %v9484_v31 = vld [vmem:[#allocation9 + $0x654] sm:$0xf]  ;;  %v7795_v48 = vor.u32 %v9420_v37, %v7792_v30  ;;  %5215 = vmatpush.bf16.msra.mxu3 %v8595_v32  ;;  %v9329_v11 = vld [vmem:[#allocation9 + $0x174] sm:$0xf0]  ;;  %v8215_v37 = vor.u32 %v9529_v40, %v8214_v22 }
 0x365   : > { %v8048_v33 = vld [vmem:[#allocation9 + $0x670] sm:$0xf0]  ;;  %v7670_v29 = vld [vmem:[#allocation9 + $0x358] sm:$0xf] }
 0x366   : > { %v9548_v39 = vld [vmem:[#allocation9 + $0x854] sm:$0xf]  ;;  %v8051_v46 = vor.u32 %v9484_v31, %v8048_v33  ;;  %5177 = vmatpush.bf16.msra.mxu0 %v7795_v48  ;;  %v9393_v30 = vld [vmem:[#allocation9 + $0x374] sm:$0xf0] }
 0x367   : > { %v8304_v41 = vld [vmem:[#allocation9 + $0x870] sm:$0xf0]  ;;  %v7926_v31 = vld [vmem:[#allocation9 + $0x558] sm:$0xf]  ;;  %v11055_v15 = vpop.f32.mrf.mxu2 }
 0x368   : > { %v9612_v42 = vld [vmem:[#allocation9 + $0xa54] sm:$0xf]  ;;  %v8307_v51 = vor.u32 %v9548_v39, %v8304_v41  ;;  %5190 = vmatpush.bf16.msra.mxu1 %v8051_v46  ;;  %v9457_v32 = vld [vmem:[#allocation9 + $0x574] sm:$0xf0]  ;;  %v7415_v41 = vor.u32 %v9329_v11, %v7414_v13 }
 0x369   : > { %v8560_v47 = vld [vmem:[#allocation9 + $0xa70] sm:$0xf0]  ;;  %v8182_v33 = vld [vmem:[#allocation9 + $0x758] sm:$0xf] }
 0x36a   : > { %v9412_v50 = vld [vmem:[#allocation9 + $0x414] sm:$0xf]  ;;  %v8563_v28 = vor.u32 %v9612_v42, %v8560_v47  ;;  %5203 = vmatpush.bf16.msra.mxu2 %v8307_v51  ;;  %v9521_v39 = vld [vmem:[#allocation9 + $0x774] sm:$0xf0]  ;;  %v7671_v42 = vor.u32 %v9393_v30, %v7670_v29  ;;  %v7927_v47 = vor.u32 %v9457_v32, %v7926_v31 }
 0x36b   : > { %v7760_v44 = vld [vmem:[#allocation9 + $0x430] sm:$0xf0]  ;;  %v7382_v48 = vld [vmem:[#allocation9 + $0x118] sm:$0xf] }
 0x36c   : > { %v9476_v43 = vld [vmem:[#allocation9 + $0x614] sm:$0xf]  ;;  %v7763_v2 = vor.u32 %v9412_v50, %v7760_v44  ;;  %5216 = vmatpush.bf16.msra.mxu3 %v8563_v28  ;;  %v7638_v50 = vld [vmem:[#allocation9 + $0x318] sm:$0xf]  ;;  %v8183_v44 = vor.u32 %v9521_v39, %v8182_v33 }
 0x36d   : > { %v8016_v53 = vld [vmem:[#allocation9 + $0x630] sm:$0xf0]  ;;  %v9385_v46 = vld [vmem:[#allocation9 + $0x334] sm:$0xf0] }
 0x36e   : > { %v9540_v45 = vld [vmem:[#allocation9 + $0x814] sm:$0xf]  ;;  %v8019_v7 = vor.u32 %v9476_v43, %v8016_v53  ;;  %5178 = vmatpush.bf16.msra.mxu0 %v7763_v2  ;;  %v7894_v51 = vld [vmem:[#allocation9 + $0x518] sm:$0xf]  ;;  %v11051_v53 = vpop.f32.mrf.mxu0  ;;  %v7639_v28 = vor.u32 %v9385_v46, %v7638_v50 }
 0x36f   : > { %v8272_v36 = vld [vmem:[#allocation9 + $0x830] sm:$0xf0]  ;;  %v8150_v43 = vld [vmem:[#allocation9 + $0x718] sm:$0xf] }
 0x370   : > { %v9604_v4 = vld [vmem:[#allocation9 + $0xa14] sm:$0xf]  ;;  %v8275_v25 = vor.u32 %v9540_v45, %v8272_v36  ;;  %5191 = vmatpush.bf16.msra.mxu1 %v8019_v7  ;;  %v9441_v1 = vld [vmem:[#allocation9 + $0x4f4] sm:$0xf0] }
 0x371   : > { %v8528_v12 = vld [vmem:[#allocation9 + $0xa30] sm:$0xf0]  ;;  %5179 = vmatmul.bf16.vlgmr.msra.gmra.mxu0 %v11009_v56  ;;  %v9449_v56 = vld [vmem:[#allocation9 + $0x534] sm:$0xf0]  ;;  %v7863_v7 = vor.u32 %v9441_v1, %v7862_v62  ;;  %v9405_v62 = vld [vmem:[#allocation9 + $0x3dc] sm:$0xf] }
 0x372   : > { %v8531_v9 = vor.u32 %v9604_v4, %v8528_v12  ;;  %5204 = vmatpush.bf16.msra.mxu2 %v8275_v25  ;;  %5223 = vmatpush.bf16.msrb.mxu0 %v7479_v10  ;;  %v7895_v36 = vor.u32 %v9449_v56, %v7894_v51  ;;  %v7350_v4 = vld [vmem:[#allocation9 + $0xd8] sm:$0xf]  ;;  %v5000_v56 = vpop.f32.mrf.mxu2  ;;  %v7736_v1 = vld [vmem:[#allocation9 + $0x3f8] sm:$0xf0] }
 0x373   : > { %5192 = vmatmul.bf16.vlgmr.msra.gmra.mxu1 %v11015_v59  ;;  %v11053_v59 = vpop.f32.mrf.mxu1  ;;  %v9313_v12 = vld [vmem:[#allocation9 + $0xf4] sm:$0xf0] }
 0x374   : > { %5217 = vmatpush.bf16.msra.mxu3 %v8531_v9  ;;  %5236 = vmatpush.bf16.msrb.mxu1 %v7735_v35  ;;  %v8118_v2 = vld [vmem:[#allocation9 + $0x6d8] sm:$0xf]  ;;  %v7351_v5 = vor.u32 %v9313_v12, %v7350_v4  ;;  %v9341_v12 = vld [vmem:[#allocation9 + $0x1dc] sm:$0xf] }
 0x375   : > { %5205 = vmatmul.bf16.vlgmr.msra.gmra.mxu2 %v11006_v63  ;;  %v9321_v63 = vld [vmem:[#allocation9 + $0x134] sm:$0xf0] }
 0x376   : > { %5249 = vmatpush.bf16.msrb.mxu2 %v7991_v14  ;;  %5224 = vmatpush.bf16.msrb.mxu0 %v7447_v23  ;;  %v7383_v45 = vor.u32 %v9321_v63, %v7382_v48  ;;  %v9505_v3 = vld [vmem:[#allocation9 + $0x6f4] sm:$0xf0]  ;;  %v4974_v19 = vpop.f32.mrf.mxu0 }
 0x377   : > { %5218 = vmatmul.bf16.vlgmr.msra.gmra.mxu3 %v11012_v57  ;;  %v9513_v57 = vld [vmem:[#allocation9 + $0x734] sm:$0xf0]  ;;  %v8119_v9 = vor.u32 %v9505_v3, %v8118_v2 }
 0x378   : > { %5262 = vmatpush.bf16.msrb.mxu3 %v8247_v18  ;;  %5237 = vmatpush.bf16.msrb.mxu1 %v7703_v24  ;;  %v8151_v58 = vor.u32 %v9513_v57, %v8150_v43  ;;  %v7318_v25 = vld [vmem:[#allocation9 + $0x98] sm:$0xf]  ;;  %v11057_v18 = vpop.f32.mrf.mxu3 }
 0x379   : > { %v9305_v8 = vld [vmem:[#allocation9 + $0xb4] sm:$0xf0] }
 0x37a   : > { %5250 = vmatpush.bf16.msrb.mxu2 %v7959_v27  ;;  %5225 = vmatpush.bf16.msrb.mxu0 %v7415_v41  ;;  %v7574_v55 = vld [vmem:[#allocation9 + $0x298] sm:$0xf]  ;;  %v7319_v20 = vor.u32 %v9305_v8, %v7318_v25 }
 0x37b   : > { %v9369_v10 = vld [vmem:[#allocation9 + $0x2b4] sm:$0xf0]  ;;  %v4987_v21 = vpop.f32.mrf.mxu1 }
 0x37c   : > { %5263 = vmatpush.bf16.msrb.mxu3 %v8215_v37  ;;  %5238 = vmatpush.bf16.msrb.mxu1 %v7671_v42  ;;  %v7830_v35 = vld [vmem:[#allocation9 + $0x498] sm:$0xf]  ;;  %v7575_v22 = vor.u32 %v9369_v10, %v7574_v55  ;;  %v4934_v55 = vadd.f32 %v11041_v0, %v11039_v61 }
 0x37d   : > { %v9433_v14 = vld [vmem:[#allocation9 + $0x4b4] sm:$0xf0] }
 0x37e   : > { %5251 = vmatpush.bf16.msrb.mxu2 %v7927_v47  ;;  %5226 = vmatpush.bf16.msrb.mxu0 %v7383_v45  ;;  %v8086_v38 = vld [vmem:[#allocation9 + $0x698] sm:$0xf]  ;;  %v7831_v40 = vor.u32 %v9433_v14, %v7830_v35  ;;  %v9333_v35 = vld [vmem:[#allocation9 + $0x19c] sm:$0xf]  ;;  %v4947_v61 = vadd.f32 %v11043_v34, %v4934_v55  ;;  %v5012_v34 = vadd.f32 %v11057_v18, %v11055_v15 }
 0x37f   : > { %v9497_v17 = vld [vmem:[#allocation9 + $0x6b4] sm:$0xf0]  ;;  %v7448_v14 = vld [vmem:[#allocation9 + $0x1b8] sm:$0xf0] }
 0x380   : > { %5264 = vmatpush.bf16.msrb.mxu3 %v8183_v44  ;;  %5239 = vmatpush.bf16.msrb.mxu1 %v7639_v28  ;;  %v7286_v23 = vld [vmem:[#allocation9 + $0x58] sm:$0xf]  ;;  %v8087_v13 = vor.u32 %v9497_v17, %v8086_v38  ;;  %v5013_v28 = vpop.f32.mrf.mxu3  ;;  %v9397_v38 = vld [vmem:[#allocation9 + $0x39c] sm:$0xf]  ;;  %v7451_v21 = vor.u32 %v9333_v35, %v7448_v14 }
 0x381   : > { %v9297_v24 = vld [vmem:[#allocation9 + $0x74] sm:$0xf0]  ;;  %v7704_v17 = vld [vmem:[#allocation9 + $0x3b8] sm:$0xf0] }
 0x382   : > { %5252 = vmatpush.bf16.msrb.mxu2 %v7895_v36  ;;  %5227 = vmatpush.bf16.msrb.mxu0 %v7351_v5  ;;  %v7542_v27 = vld [vmem:[#allocation9 + $0x258] sm:$0xf]  ;;  %v7287_v32 = vor.u32 %v9297_v24, %v7286_v23  ;;  %v7707_v0 = vor.u32 %v9397_v38, %v7704_v17  ;;  %v9301_v38 = vld [vmem:[#allocation9 + $0x9c] sm:$0xf] }
 0x383   : > { %v9361_v11 = vld [vmem:[#allocation9 + $0x274] sm:$0xf0]  ;;  %v7320_v17 = vld [vmem:[#allocation9 + $0xb8] sm:$0xf0] }
 0x384   : > { %5265 = vmatpush.bf16.msrb.mxu3 %v8151_v58  ;;  %5240 = vmatpush.bf16.msrb.mxu1 %v7607_v6  ;;  %v7798_v29 = vld [vmem:[#allocation9 + $0x458] sm:$0xf]  ;;  %v7543_v41 = vor.u32 %v9361_v11, %v7542_v27  ;;  %v7483_v6 = vor.u32 %v9341_v12, %v7480_v16  ;;  %v9325_v27 = vld [vmem:[#allocation9 + $0x15c] sm:$0xf] }
 0x385   : > { %v9425_v37 = vld [vmem:[#allocation9 + $0x474] sm:$0xf0]  ;;  %v9389_v11 = vld [vmem:[#allocation9 + $0x35c] sm:$0xf] }
 0x386   : > { %5253 = vmatpush.bf16.msrb.mxu2 %v7863_v7  ;;  %v8054_v30 = vld [vmem:[#allocation9 + $0x658] sm:$0xf]  ;;  %5228 = vmatpush.bf16.msrb.mxu0 %v7319_v20  ;;  %v7799_v42 = vor.u32 %v9425_v37, %v7798_v29  ;;  %v7672_v29 = vld [vmem:[#allocation9 + $0x378] sm:$0xf0]  ;;  %v11063_v37 = vld [vmem:[#allocation1 + $0x12] sm:$0xff] }
 0x387   : > { %v9489_v31 = vld [vmem:[#allocation9 + $0x674] sm:$0xf0] }
 0x388   : > { %5266 = vmatpush.bf16.msrb.mxu3 %v8119_v9  ;;  %v7254_v33 = vld [vmem:[#allocation9 + $0x18] sm:$0xf]  ;;  %5241 = vmatpush.bf16.msrb.mxu1 %v7575_v22  ;;  %v8055_v50 = vor.u32 %v9489_v31, %v8054_v30  ;;  %v7739_v9 = vor.u32 %v9405_v62, %v7736_v1  ;;  %v9373_v1 = vld [vmem:[#allocation9 + $0x2dc] sm:$0xf] }
 0x389   : > { %v9289_v39 = vld [vmem:[#allocation9 + $0x34] sm:$0xf0] }
 0x38a   : > { %5254 = vmatpush.bf16.msrb.mxu2 %v7831_v40  ;;  %v7510_v47 = vld [vmem:[#allocation9 + $0x218] sm:$0xf]  ;;  %5229 = vmatpush.bf16.msrb.mxu0 %v7287_v32  ;;  %v7255_v36 = vor.u32 %v9289_v39, %v7254_v33 }
 0x38b   : > { %v9353_v48 = vld [vmem:[#allocation9 + $0x234] sm:$0xf0] }
 0x38c   : > { %v7766_v63 = vld [vmem:[#allocation9 + $0x418] sm:$0xf]  ;;  %5267 = vmatpush.bf16.msrb.mxu3 %v8087_v13  ;;  %5242 = vmatpush.bf16.msrb.mxu1 %v7543_v41  ;;  %v7511_v58 = vor.u32 %v9353_v48, %v7510_v47  ;;  %v7416_v13 = vld [vmem:[#allocation9 + $0x178] sm:$0xf0]  ;;  %v4960_v47 = vadd.f32 %v11045_v26, %v4947_v61  ;;  %v7675_v48 = vor.u32 %v9389_v11, %v7672_v29 }
 0x38d   : > { %v9417_v44 = vld [vmem:[#allocation9 + $0x434] sm:$0xf0]  ;;  %v7419_v33 = vor.u32 %v9325_v27, %v7416_v13 }
 0x38e   : > { %v8022_v46 = vld [vmem:[#allocation9 + $0x618] sm:$0xf]  ;;  %5255 = vmatpush.bf16.msrb.mxu2 %v7799_v42  ;;  %v7767_v60 = vor.u32 %v9417_v44, %v7766_v63  ;;  %5230 = vmatpush.bf16.msrb.mxu0 %v7255_v36  ;;  %v7384_v44 = vld [vmem:[#allocation9 + $0x138] sm:$0xf0]  ;;  %v4973_v26 = vadd.f32 %v11051_v53, %v4960_v47 }
 0x38f   : > { %v9481_v51 = vld [vmem:[#allocation9 + $0x634] sm:$0xf0] }
 0x390   : > { %v8502_v43 = vld [vmem:[#allocation9 + $0x9d8] sm:$0xf]  ;;  %5268 = vmatpush.bf16.msrb.mxu3 %v8055_v50  ;;  %v8023_v2 = vor.u32 %v9481_v51, %v8022_v46  ;;  %5243 = vmatpush.bf16.msrb.mxu1 %v7511_v58  ;;  %v9317_v50 = vld [vmem:[#allocation9 + $0x11c] sm:$0xf]  ;;  %v4986_v53 = vadd.f32 %v11053_v59, %v4973_v26 }
 0x391   : > { %v9601_v57 = vld [vmem:[#allocation9 + $0x9f4] sm:$0xf0]  ;;  %5231 = vmatmul.bf16.vlgmr.msrb.gmra.mxu0 %v11022_v52  ;;  %v9381_v46 = vld [vmem:[#allocation9 + $0x31c] sm:$0xf]  ;;  %v7387_v18 = vor.u32 %v9317_v50, %v7384_v44  ;;  %v5063_v35 = vpop.f32.mrf.mxu3 }
 0x392   : > { %v8758_v45 = vld [vmem:[#allocation9 + $0xbd8] sm:$0xf]  ;;  %v8503_v3 = vor.u32 %v9601_v57, %v8502_v43  ;;  %5256 = vmatpush.bf16.msrb.mxu2 %v7767_v60  ;;  %v7640_v51 = vld [vmem:[#allocation9 + $0x338] sm:$0xf0]  ;;  %v5024_v43 = vpop.f32.mrf.mxu0  ;;  %v5388_v11 = vrot.slane %v4986_v53, 4 }
 0x393   : > { %v9665_v4 = vld [vmem:[#allocation9 + $0xbf4] sm:$0xf0]  ;;  %5244 = vmatmul.bf16.vlgmr.msrb.gmra.mxu1 %v11026_v49  ;;  %v5025_v57 = vadd.f32 %v5024_v43, %v5012_v34  ;;  %v7643_v12 = vor.u32 %v9381_v46, %v7640_v51  ;;  %v9309_v58 = vld [vmem:[#allocation9 + $0xdc] sm:$0xf] }
 0x394   : > { %v8759_v5 = vor.u32 %v9665_v4, %v8758_v45  ;;  %v8470_v7 = vld [vmem:[#allocation9 + $0x998] sm:$0xf]  ;;  %5269 = vmatpush.bf16.msrb.mxu3 %v8023_v2  ;;  %5275 = vmatpush.bf16.msra.mxu0 %v8503_v3  ;;  %v5037_v45 = vpop.f32.mrf.mxu1  ;;  %v7352_v60 = vld [vmem:[#allocation9 + $0xf8] sm:$0xf0] }
 0x395   : > { %v9593_v25 = vld [vmem:[#allocation9 + $0x9b4] sm:$0xf0]  ;;  %5257 = vmatmul.bf16.vlgmr.msrb.gmra.mxu2 %v11063_v37  ;;  %v5038_v62 = vadd.f32 %v5037_v45, %v5025_v57  ;;  %v7608_v2 = vld [vmem:[#allocation9 + $0x2f8] sm:$0xf0] }
 0x396   : > { %v8726_v8 = vld [vmem:[#allocation9 + $0xb98] sm:$0xf]  ;;  %v8471_v19 = vor.u32 %v9593_v25, %v8470_v7  ;;  %5288 = vmatpush.bf16.msra.mxu1 %v8759_v5  ;;  %5301 = vmatpush.bf16.msra.mxu2 %v7483_v6  ;;  %v7355_v6 = vor.u32 %v9309_v58, %v7352_v60  ;;  %v5050_v7 = vpop.f32.mrf.mxu2  ;;  %v9293_v34 = vld [vmem:[#allocation9 + $0x5c] sm:$0xf] }
 0x397   : > { %v9657_v10 = vld [vmem:[#allocation9 + $0xbb4] sm:$0xf0]  ;;  %v9285_v43 = vld [vmem:[#allocation9 + $0x1c] sm:$0xf] }
 0x398   : > { %v8727_v20 = vor.u32 %v9657_v10, %v8726_v8  ;;  %v8438_v22 = vld [vmem:[#allocation9 + $0x958] sm:$0xf]  ;;  %5314 = vmatpush.bf16.msra.mxu3 %v7739_v9  ;;  %5276 = vmatpush.bf16.msra.mxu0 %v8471_v19  ;;  %v7611_v9 = vor.u32 %v9373_v1, %v7608_v2  ;;  %v5051_v10 = vadd.f32 %v5050_v7, %v5038_v62  ;;  %v9365_v19 = vld [vmem:[#allocation9 + $0x29c] sm:$0xf] }
 0x399   : > { %v9585_v40 = vld [vmem:[#allocation9 + $0x974] sm:$0xf0]  ;;  %v5065_v26 = vpop.f32.mrf.mxu3  ;;  %v8248_v58 = vld [vmem:[#allocation9 + $0x7f8] sm:$0xf0] }
 0x39a   : > { %v8694_v23 = vld [vmem:[#allocation9 + $0xb58] sm:$0xf]  ;;  %v8439_v30 = vor.u32 %v9585_v40, %v8438_v22  ;;  %5289 = vmatpush.bf16.msra.mxu1 %v8727_v20  ;;  %5302 = vmatpush.bf16.msra.mxu2 %v7451_v21  ;;  %v7576_v20 = vld [vmem:[#allocation9 + $0x2b8] sm:$0xf0]  ;;  %v5064_v21 = vadd.f32 %v5063_v35, %v5051_v10 }
 0x39b   : > { %v9649_v24 = vld [vmem:[#allocation9 + $0xb74] sm:$0xf0]  ;;  %v9597_v60 = vld [vmem:[#allocation9 + $0x9dc] sm:$0xf] }
 0x39c   : > { %v11067_v31 = vld [vmem:[#allocation1 + $0x1b] sm:$0xff]  ;;  %v8695_v32 = vor.u32 %v9649_v24, %v8694_v23  ;;  %5315 = vmatpush.bf16.msra.mxu3 %v7707_v0  ;;  %5277 = vmatpush.bf16.msra.mxu0 %v8439_v30  ;;  %v5026_v23 = vpop.f32.mrf.mxu0  ;;  %v7323_v0 = vor.u32 %v9301_v38, %v7320_v17  ;;  %v5039_v13 = vpop.f32.mrf.mxu1  ;;  %v5389_v29 = vrot.slane %v5064_v21, 2  ;;  %v7579_v30 = vor.u32 %v9365_v19, %v7576_v20 }
 0x39d   : > { %5270 = vmatmul.bf16.vlgmr.msrb.gmra.mxu3 %v11067_v31  ;;  %v8406_v39 = vld [vmem:[#allocation9 + $0x918] sm:$0xf]  ;;  %v8504_v62 = vld [vmem:[#allocation9 + $0x9f8] sm:$0xf0] }
 0x39e   : > { %v9577_v41 = vld [vmem:[#allocation9 + $0x934] sm:$0xf0]  ;;  %5290 = vmatpush.bf16.msra.mxu1 %v8695_v32  ;;  %5303 = vmatpush.bf16.msra.mxu2 %v7419_v33  ;;  %v7288_v32 = vld [vmem:[#allocation9 + $0x78] sm:$0xf0]  ;;  %v2434_v33 = vld [vmem:[#allocation2] sm:$0xff] }
 0x39f   : > { %v8662_v42 = vld [vmem:[#allocation9 + $0xb18] sm:$0xf]  ;;  %v8407_v56 = vor.u32 %v9577_v41, %v8406_v39  ;;  %v9357_v39 = vld [vmem:[#allocation9 + $0x25c] sm:$0xf]  ;;  %v7291_v51 = vor.u32 %v9293_v34, %v7288_v32 }
 0x3a0   : > { %v9641_v63 = vld [vmem:[#allocation9 + $0xb34] sm:$0xf0]  ;;  %5316 = vmatpush.bf16.msra.mxu3 %v7675_v48  ;;  %v7544_v41 = vld [vmem:[#allocation9 + $0x278] sm:$0xf0] }
 0x3a1   : > { %v8663_v15 = vor.u32 %v9641_v63, %v8662_v42  ;;  %v8374_v28 = vld [vmem:[#allocation9 + $0x8d8] sm:$0xf]  ;;  %5278 = vmatpush.bf16.msra.mxu0 %v8407_v56  ;;  %v5394_v42 = vsel %vm2417_vm4, %v5388_v11, %v5389_v29  ;;  %v7547_v45 = vor.u32 %v9357_v39, %v7544_v41  ;;  %v7960_v53 = vld [vmem:[#allocation9 + $0x5b8] sm:$0xf0] }
 0x3a2   : > { %v9569_v36 = vld [vmem:[#allocation9 + $0x8f4] sm:$0xf0]  ;;  %5304 = vmatpush.bf16.msra.mxu2 %v7387_v18  ;;  %v5395_v44 = vsel %vm2419_vm5, %v11033_v54, %v5394_v42  ;;  %v5052_v18 = vpop.f32.mrf.mxu2  ;;  %v8216_v35 = vld [vmem:[#allocation9 + $0x7b8] sm:$0xf0] }
 0x3a3   : > { %v8630_v4 = vld [vmem:[#allocation9 + $0xad8] sm:$0xf]  ;;  %v8375_v3 = vor.u32 %v9569_v36, %v8374_v28  ;;  %5291 = vmatpush.bf16.msra.mxu1 %v8663_v15  ;;  %v7256_v15 = vld [vmem:[#allocation9 + $0x38] sm:$0xf0]  ;;  %v5401_v57 = vadd.f32 %v5395_v44, %v2434_v33 }
 0x3a4   : > { %v9633_v16 = vld [vmem:[#allocation9 + $0xaf4] sm:$0xf0]  ;;  %5317 = vmatpush.bf16.msra.mxu3 %v7643_v12  ;;  %v9349_v28 = vld [vmem:[#allocation9 + $0x21c] sm:$0xf]  ;;  %v7259_v2 = vor.u32 %v9285_v43, %v7256_v15 }
 0x3a5   : > { %v8631_v5 = vor.u32 %v9633_v16, %v8630_v4  ;;  %v8342_v25 = vld [vmem:[#allocation9 + $0x898] sm:$0xf]  ;;  %5279 = vmatpush.bf16.msra.mxu0 %v8375_v3  ;;  %v7512_v36 = vld [vmem:[#allocation9 + $0x238] sm:$0xf0]  ;;  %5405 = vst [vmem:[#allocation1] ss:$4 sm:$0xff] %v5401_v57 }
 0x3a6   : > { %v9561_v8 = vld [vmem:[#allocation9 + $0x8b4] sm:$0xf0]  ;;  %5305 = vmatpush.bf16.msra.mxu2 %v7355_v6  ;;  %v9469_v4 = vld [vmem:[#allocation9 + $0x5dc] sm:$0xf]  ;;  %v7515_v6 = vor.u32 %v9349_v28, %v7512_v36 }
 0x3a7   : > { %v8598_v55 = vld [vmem:[#allocation9 + $0xa98] sm:$0xf]  ;;  %v8343_v22 = vor.u32 %v9561_v8, %v8342_v25  ;;  %5292 = vmatpush.bf16.msra.mxu1 %v8631_v5  ;;  %v7992_v12 = vld [vmem:[#allocation9 + $0x5f8] sm:$0xf0]  ;;  %v8507_v8 = vor.u32 %v9597_v60, %v8504_v62 }
 0x3a8   : > { %v9625_v14 = vld [vmem:[#allocation9 + $0xab4] sm:$0xf0]  ;;  %5318 = vmatpush.bf16.msra.mxu3 %v7611_v9  ;;  %v9533_v16 = vld [vmem:[#allocation9 + $0x7dc] sm:$0xf]  ;;  %v7995_v7 = vor.u32 %v9469_v4, %v7992_v12 }
 0x3a9   : > { %v8310_v40 = vld [vmem:[#allocation9 + $0x858] sm:$0xf]  ;;  %v8599_v61 = vor.u32 %v9625_v14, %v8598_v55  ;;  %5280 = vmatpush.bf16.msra.mxu0 %v8343_v22  ;;  %v9661_v3 = vld [vmem:[#allocation9 + $0xbdc] sm:$0xf]  ;;  %v8251_v25 = vor.u32 %v9533_v16, %v8248_v58 }
 0x3aa   : > { %v9553_v24 = vld [vmem:[#allocation9 + $0x874] sm:$0xf0]  ;;  %5306 = vmatpush.bf16.msra.mxu2 %v7323_v0  ;;  %v8760_v5 = vld [vmem:[#allocation9 + $0xbf8] sm:$0xf0] }
 0x3ab   : > { %v8566_v59 = vld [vmem:[#allocation9 + $0xa58] sm:$0xf]  ;;  %v8311_v47 = vor.u32 %v9553_v24, %v8310_v40  ;;  %5293 = vmatpush.bf16.msra.mxu1 %v8599_v61  ;;  %v9461_v55 = vld [vmem:[#allocation9 + $0x59c] sm:$0xf]  ;;  %v8763_v10 = vor.u32 %v9661_v3, %v8760_v5 }
 0x3ac   : > { %v9617_v27 = vld [vmem:[#allocation9 + $0xa74] sm:$0xf0]  ;;  %5319 = vmatpush.bf16.msra.mxu3 %v7579_v30  ;;  %v9525_v9 = vld [vmem:[#allocation9 + $0x79c] sm:$0xf]  ;;  %v7963_v20 = vor.u32 %v9461_v55, %v7960_v53  ;;  %v11082_v30 = vld [vmem:[#allocation1 + $0x2d] sm:$0xff] }
 0x3ad   : > { %v8278_v48 = vld [vmem:[#allocation9 + $0x818] sm:$0xf]  ;;  %v8567_v46 = vor.u32 %v9617_v27, %v8566_v59  ;;  %5281 = vmatpush.bf16.msra.mxu0 %v8311_v47  ;;  %v9589_v14 = vld [vmem:[#allocation9 + $0x99c] sm:$0xf]  ;;  %v8219_v21 = vor.u32 %v9525_v9, %v8216_v35 }
 0x3ae   : > { %v9545_v63 = vld [vmem:[#allocation9 + $0x834] sm:$0xf0]  ;;  %5307 = vmatpush.bf16.msra.mxu2 %v7291_v51  ;;  %v8472_v38 = vld [vmem:[#allocation9 + $0x9b8] sm:$0xf0] }
 0x3af   : > { %v8534_v50 = vld [vmem:[#allocation9 + $0xa18] sm:$0xf]  ;;  %v8279_v54 = vor.u32 %v9545_v63, %v8278_v48  ;;  %5294 = vmatpush.bf16.msra.mxu1 %v8567_v46  ;;  %v9653_v17 = vld [vmem:[#allocation9 + $0xb9c] sm:$0xf]  ;;  %v8475_v22 = vor.u32 %v9589_v14, %v8472_v38  ;;  %v5076_v46 = vpop.f32.mrf.mxu0 }
 0x3b0   : > { %v9609_v56 = vld [vmem:[#allocation9 + $0xa34] sm:$0xf0]  ;;  %5320 = vmatpush.bf16.msra.mxu3 %v7547_v45  ;;  %v8728_v19 = vld [vmem:[#allocation9 + $0xbb8] sm:$0xf0] }
 0x3b1   : > { %v8535_v1 = vor.u32 %v9609_v56, %v8534_v50  ;;  %5282 = vmatpush.bf16.msra.mxu0 %v8279_v54  ;;  %v9453_v40 = vld [vmem:[#allocation9 + $0x55c] sm:$0xf]  ;;  %v8731_v0 = vor.u32 %v9653_v17, %v8728_v19  ;;  %v5089_v56 = vpop.f32.mrf.mxu1 }
 0x3b2   : > { %5308 = vmatpush.bf16.msra.mxu2 %v7259_v2  ;;  %v7928_v23 = vld [vmem:[#allocation9 + $0x578] sm:$0xf0]  ;;  %v5090_v45 = vadd.f32 %v5089_v56, %v5076_v46 }
 0x3b3   : > { %5295 = vmatpush.bf16.msra.mxu1 %v8535_v1  ;;  %v9517_v61 = vld [vmem:[#allocation9 + $0x75c] sm:$0xf]  ;;  %v7931_v34 = vor.u32 %v9453_v40, %v7928_v23 }
 0x3b4   : > { %5321 = vmatpush.bf16.msra.mxu3 %v7515_v6  ;;  %v11078_v24 = vld [vmem:[#allocation1 + $0x24] sm:$0xff] }
 0x3b5   : > { %5327 = vmatpush.bf16.msrb.mxu0 %v7995_v7  ;;  %v8184_v59 = vld [vmem:[#allocation9 + $0x778] sm:$0xf0]  ;;  %5309 = vmatmul.bf16.vlgmr.msra.gmra.mxu2 %v11022_v52 }
 0x3b6   : > { %5353 = vmatpush.bf16.msrb.mxu2 %v8507_v8  ;;  %5283 = vmatmul.bf16.vlgmr.msra.gmra.mxu0 %v11078_v24  ;;  %v9581_v27 = vld [vmem:[#allocation9 + $0x95c] sm:$0xf]  ;;  %v8187_v32 = vor.u32 %v9517_v61, %v8184_v59 }
 0x3b7   : > { %5340 = vmatpush.bf16.msrb.mxu1 %v8251_v25  ;;  %v8440_v13 = vld [vmem:[#allocation9 + $0x978] sm:$0xf0]  ;;  %5322 = vmatmul.bf16.vlgmr.msra.gmra.mxu3 %v11026_v49  ;;  %v5102_v25 = vpop.f32.mrf.mxu2  ;;  %v5078_v9 = vpop.f32.mrf.mxu0 }
 0x3b8   : > { %5366 = vmatpush.bf16.msrb.mxu3 %v8763_v10  ;;  %v9645_v11 = vld [vmem:[#allocation9 + $0xb5c] sm:$0xf]  ;;  %5296 = vmatmul.bf16.vlgmr.msra.gmra.mxu1 %v11082_v30  ;;  %v8443_v33 = vor.u32 %v9581_v27, %v8440_v13  ;;  %v5103_v53 = vadd.f32 %v5102_v25, %v5090_v45  ;;  %v5115_v10 = vpop.f32.mrf.mxu3 }
 0x3b9   : > { %v8696_v29 = vld [vmem:[#allocation9 + $0xb78] sm:$0xf0]  ;;  %5328 = vmatpush.bf16.msrb.mxu0 %v7963_v20  ;;  %v5091_v14 = vpop.f32.mrf.mxu1 }
 0x3ba   : > { %5354 = vmatpush.bf16.msrb.mxu2 %v8475_v22  ;;  %v9445_v39 = vld [vmem:[#allocation9 + $0x51c] sm:$0xf]  ;;  %v8699_v47 = vor.u32 %v9645_v11, %v8696_v29  ;;  %v11086_v22 = vadd.f32 %v5115_v10, %v5103_v53  ;;  %v9667_v14 = vld [vmem:[#allocation12 + $0x8] sm:$0xff] }
 0x3bb   : > { %5341 = vmatpush.bf16.msrb.mxu1 %v8219_v21  ;;  %v7896_v41 = vld [vmem:[#allocation9 + $0x538] sm:$0xf0] }
 0x3bc   : > { %v9509_v42 = vld [vmem:[#allocation9 + $0x71c] sm:$0xf]  ;;  %5367 = vmatpush.bf16.msrb.mxu3 %v8731_v0  ;;  %v7899_v51 = vor.u32 %v9445_v39, %v7896_v41 }
 0x3bd   : > { %v8152_v52 = vld [vmem:[#allocation9 + $0x738] sm:$0xf0]  ;;  %5329 = vmatpush.bf16.msrb.mxu0 %v7931_v34 }
 0x3be   : > { %v9573_v48 = vld [vmem:[#allocation9 + $0x91c] sm:$0xf]  ;;  %5355 = vmatpush.bf16.msrb.mxu2 %v8443_v33  ;;  %v8155_v49 = vor.u32 %v9509_v42, %v8152_v52 }
 0x3bf   : > { %v8408_v63 = vld [vmem:[#allocation9 + $0x938] sm:$0xf0]  ;;  %5342 = vmatpush.bf16.msrb.mxu1 %v8187_v32  ;;  %v5104_v52 = vpop.f32.mrf.mxu2 }
 0x3c0   : > { %v9637_v50 = vld [vmem:[#allocation9 + $0xb1c] sm:$0xf]  ;;  %v8411_v43 = vor.u32 %v9573_v48, %v8408_v63  ;;  %5368 = vmatpush.bf16.msrb.mxu3 %v8699_v47 }
 0x3c1   : > { %v8664_v44 = vld [vmem:[#allocation9 + $0xb38] sm:$0xf0]  ;;  %5330 = vmatpush.bf16.msrb.mxu0 %v7899_v51 }
 0x3c2   : > { %v9437_v15 = vld [vmem:[#allocation9 + $0x4dc] sm:$0xf]  ;;  %v8667_v28 = vor.u32 %v9637_v50, %v8664_v44  ;;  %5356 = vmatpush.bf16.msrb.mxu2 %v8411_v43  ;;  %v5117_v50 = vpop.f32.mrf.mxu3  ;;  %v9681_v43 = vld [vmem:[#allocation12 + $0x78] sm:$0xff] }
 0x3c3   : > { %v7864_v18 = vld [vmem:[#allocation9 + $0x4f8] sm:$0xf0]  ;;  %5343 = vmatpush.bf16.msrb.mxu1 %v8155_v49  ;;  %v9673_v49 = vld [vmem:[#allocation12 + $0x38] sm:$0xff] }
 0x3c4   : > { %v9501_v57 = vld [vmem:[#allocation9 + $0x6dc] sm:$0xf]  ;;  %v7867_v58 = vor.u32 %v9437_v15, %v7864_v18  ;;  %5369 = vmatpush.bf16.msrb.mxu3 %v8667_v28  ;;  %v9689_v15 = vld [vmem:[#allocation12 + $0xb8] sm:$0xff] }
 0x3c5   : > { %v8120_v36 = vld [vmem:[#allocation9 + $0x6f8] sm:$0xf0]  ;;  %v9697_v18 = vld [vmem:[#allocation12 + $0xf8] sm:$0xff] }
 0x3c6   : > { %v9565_v4 = vld [vmem:[#allocation9 + $0x8dc] sm:$0xf]  ;;  %v8123_v54 = vor.u32 %v9501_v57, %v8120_v36  ;;  %5331 = vmatpush.bf16.msrb.mxu0 %v7867_v58  ;;  %v5128_v58 = vpop.f32.mrf.mxu0 }
 0x3c7   : > { %v8376_v26 = vld [vmem:[#allocation9 + $0x8f8] sm:$0xf0] }
 0x3c8   : > { %v9629_v12 = vld [vmem:[#allocation9 + $0xadc] sm:$0xf]  ;;  %v8379_v60 = vor.u32 %v9565_v4, %v8376_v26  ;;  %5344 = vmatpush.bf16.msrb.mxu1 %v8123_v54  ;;  %v9671_v4 = vld [vmem:[#allocation12 + $0x28] sm:$0xff]  ;;  %v9670_v54 = vld [vmem:[#allocation12 + $0x20] sm:$0xff] }
 0x3c9   : > { %v8632_v16 = vld [vmem:[#allocation9 + $0xaf8] sm:$0xf0]  ;;  %v9679_v26 = vld [vmem:[#allocation12 + $0x68] sm:$0xff] }
 0x3ca   : > { %v9429_v62 = vld [vmem:[#allocation9 + $0x49c] sm:$0xf]  ;;  %v8635_v3 = vor.u32 %v9629_v12, %v8632_v16  ;;  %5357 = vmatpush.bf16.msrb.mxu2 %v8379_v60  ;;  %v9687_v12 = vld [vmem:[#allocation12 + $0xa8] sm:$0xff]  ;;  %v5141_v60 = vpop.f32.mrf.mxu1 }
 0x3cb   : > { %v7832_v1 = vld [vmem:[#allocation9 + $0x4b8] sm:$0xf0]  ;;  %v9695_v16 = vld [vmem:[#allocation12 + $0xe8] sm:$0xff] }
 0x3cc   : > { %v9493_v2 = vld [vmem:[#allocation9 + $0x69c] sm:$0xf]  ;;  %v7835_v35 = vor.u32 %v9429_v62, %v7832_v1  ;;  %5370 = vmatpush.bf16.msrb.mxu3 %v8635_v3  ;;  %v9669_v1 = vld [vmem:[#allocation12 + $0x18] sm:$0xff] }
 0x3cd   : > { %v8088_v5 = vld [vmem:[#allocation9 + $0x6b8] sm:$0xf0]  ;;  %v9685_v3 = vld [vmem:[#allocation12 + $0x98] sm:$0xff] }
 0x3ce   : > { %v9557_v6 = vld [vmem:[#allocation9 + $0x89c] sm:$0xf]  ;;  %v8091_v38 = vor.u32 %v9493_v2, %v8088_v5  ;;  %5332 = vmatpush.bf16.msrb.mxu0 %v7835_v35  ;;  %v9677_v2 = vld [vmem:[#allocation12 + $0x58] sm:$0xff]  ;;  %v5130_v25 = vpop.f32.mrf.mxu0 }
 0x3cf   : > { %v8344_v7 = vld [vmem:[#allocation9 + $0x8b8] sm:$0xf0]  ;;  %v9693_v5 = vld [vmem:[#allocation12 + $0xd8] sm:$0xff]  ;;  %v9718_v25 = vld [vmem:[#allocation12 + $0x1a0] sm:$0xff] }
 0x3d0   : > { %v9621_v8 = vld [vmem:[#allocation9 + $0xa9c] sm:$0xf]  ;;  %v8347_v17 = vor.u32 %v9557_v6, %v8344_v7  ;;  %5345 = vmatpush.bf16.msrb.mxu1 %v8091_v38  ;;  %v5154_v6 = vpop.f32.mrf.mxu2  ;;  %v9675_v38 = vld [vmem:[#allocation12 + $0x48] sm:$0xff] }
 0x3d1   : > { %v8600_v55 = vld [vmem:[#allocation9 + $0xab8] sm:$0xf0]  ;;  %v5167_v7 = vpop.f32.mrf.mxu3 }
 0x3d2   : > { %v9421_v19 = vld [vmem:[#allocation9 + $0x45c] sm:$0xf]  ;;  %v8603_v40 = vor.u32 %v9621_v8, %v8600_v55  ;;  %5358 = vmatpush.bf16.msrb.mxu2 %v8347_v17  ;;  %v5168_v55 = vadd.f32 %v5167_v7, %v5154_v6  ;;  %v5143_v53 = vpop.f32.mrf.mxu1  ;;  %v9683_v17 = vld [vmem:[#allocation12 + $0x88] sm:$0xff]  ;;  %v9710_v6 = vld [vmem:[#allocation12 + $0x160] sm:$0xff] }
 0x3d3   : > { %v7800_v20 = vld [vmem:[#allocation9 + $0x478] sm:$0xf0] }
 0x3d4   : > { %v9485_v21 = vld [vmem:[#allocation9 + $0x65c] sm:$0xf]  ;;  %v7803_v13 = vor.u32 %v9421_v19, %v7800_v20  ;;  %5371 = vmatpush.bf16.msrb.mxu3 %v8603_v40  ;;  %v9691_v19 = vld [vmem:[#allocation12 + $0xc8] sm:$0xff]  ;;  %v9674_v40 = vld [vmem:[#allocation12 + $0x40] sm:$0xff] }
 0x3d5   : > { %v8056_v23 = vld [vmem:[#allocation9 + $0x678] sm:$0xf0] }
 0x3d6   : > { %v9549_v61 = vld [vmem:[#allocation9 + $0x85c] sm:$0xf]  ;;  %v8059_v11 = vor.u32 %v9485_v21, %v8056_v23  ;;  %5333 = vmatpush.bf16.msrb.mxu0 %v7803_v13  ;;  %v9682_v23 = vld [vmem:[#allocation12 + $0x80] sm:$0xff]  ;;  %v5411_v13 = vld.sshfl [vmem:[#allocation1 + $0x18] sm:$0xff pattern:$0x73625140] }
 0x3d7   : > { %v8312_v0 = vld [vmem:[#allocation9 + $0x878] sm:$0xf0] }
 0x3d8   : > { %v9613_v59 = vld [vmem:[#allocation9 + $0xa5c] sm:$0xf]  ;;  %v8315_v29 = vor.u32 %v9549_v61, %v8312_v0  ;;  %5346 = vmatpush.bf16.msrb.mxu1 %v8059_v11  ;;  %v5156_v20 = vpop.f32.mrf.mxu2  ;;  %v9690_v61 = vld [vmem:[#allocation12 + $0xc0] sm:$0xff] }
 0x3d9   : > { %v8568_v27 = vld [vmem:[#allocation9 + $0xa78] sm:$0xf0]  ;;  %v5169_v21 = vpop.f32.mrf.mxu3 }
 0x3da   : > { %v9413_v34 = vld [vmem:[#allocation9 + $0x41c] sm:$0xf]  ;;  %v8571_v39 = vor.u32 %v9613_v59, %v8568_v27  ;;  %5359 = vmatpush.bf16.msrb.mxu2 %v8315_v29  ;;  %v5409_v59 = vld.sshfl [vmem:[#allocation1 + $0x8] sm:$0xff pattern:$0x73625140] }
 0x3db   : > { %v7768_v32 = vld [vmem:[#allocation9 + $0x438] sm:$0xf0]  ;;  %v5410_v27 = vld.sshfl [vmem:[#allocation1 + $0x10] sm:$0xff pattern:$0x73625140]  ;;  %v5425_v29 = vpack.c.bf16 %v5409_v59, %v5409_v59 }
 0x3dc   : > { %v9477_v33 = vld [vmem:[#allocation9 + $0x61c] sm:$0xf]  ;;  %v7771_v44 = vor.u32 %v9413_v34, %v7768_v32  ;;  %5372 = vmatpush.bf16.msrb.mxu3 %v8571_v39  ;;  %v5426_v34 = vpack.c.bf16 %v5410_v27, %v5410_v27  ;;  %v5427_v32 = vpack.c.bf16 %v5411_v13, %v5411_v13  ;;  %v9723_v59 = vld [vmem:[#allocation12 + $0x1c8] sm:$0xff]  ;;  %v9698_v27 = vld [vmem:[#allocation12 + $0x100] sm:$0xff] }
 0x3dd   : > { %v8024_v41 = vld [vmem:[#allocation9 + $0x638] sm:$0xf0]  ;;  %v9706_v13 = vld [vmem:[#allocation12 + $0x140] sm:$0xff] }
 0x3de   : > { %v9541_v42 = vld [vmem:[#allocation9 + $0x81c] sm:$0xf]  ;;  %v8027_v46 = vor.u32 %v9477_v33, %v8024_v41  ;;  %5334 = vmatpush.bf16.msrb.mxu0 %v7771_v44 }
 0x3df   : > { %v8280_v47 = vld [vmem:[#allocation9 + $0x838] sm:$0xf0] }
 0x3e0   : > { %v9605_v48 = vld [vmem:[#allocation9 + $0xa1c] sm:$0xf]  ;;  %v8283_v51 = vor.u32 %v9541_v42, %v8280_v47  ;;  %5347 = vmatpush.bf16.msrb.mxu1 %v8027_v46 }
 0x3e1   : > { %v8536_v63 = vld [vmem:[#allocation9 + $0xa38] sm:$0xf0]  ;;  %5335 = vmatmul.bf16.vlgmr.msrb.gmra.mxu0 %v11063_v37  ;;  %v5129_v37 = vadd.f32 %v5128_v58, %v11086_v22  ;;  %v9666_v22 = vld [vmem:[#allocation12] sm:$0xff] }
 0x3e2   : > { %v8539_v56 = vor.u32 %v9605_v48, %v8536_v63  ;;  %5360 = vmatpush.bf16.msrb.mxu2 %v8283_v51  ;;  %5948 = vmatpush.bf16.msra.mxu0 %v9673_v49  ;;  %v9672_v57 = vld [vmem:[#allocation12 + $0x30] sm:$0xff] }
 0x3e3   : > { %v9680_v45 = vld [vmem:[#allocation12 + $0x70] sm:$0xff]  ;;  %5348 = vmatmul.bf16.vlgmr.msrb.gmra.mxu1 %v11067_v31  ;;  %v9678_v31 = vld [vmem:[#allocation12 + $0x60] sm:$0xff]  ;;  %v11093_v62 = vadd.f32 %v5141_v60, %v5129_v37 }
 0x3e4   : > { %5373 = vmatpush.bf16.msrb.mxu3 %v8539_v56  ;;  %5961 = vmatpush.bf16.msra.mxu1 %v9681_v43  ;;  %v9688_v28 = vld [vmem:[#allocation12 + $0xb0] sm:$0xff] }
 0x3e5   : > { %v9696_v36 = vld [vmem:[#allocation12 + $0xf0] sm:$0xff]  ;;  %5361 = vmatmul.bf16.vlgmr.msrb.gmra.mxu2 %v11078_v24  ;;  %v9686_v24 = vld [vmem:[#allocation12 + $0xa0] sm:$0xff] }
 0x3e6   : > { %5974 = vmatpush.bf16.msra.mxu2 %v9689_v15  ;;  %5949 = vmatpush.bf16.msra.mxu0 %v9672_v57  ;;  %v9668_v8 = vld [vmem:[#allocation12 + $0x10] sm:$0xff] }
 0x3e7   : > { %5374 = vmatmul.bf16.vlgmr.msrb.gmra.mxu3 %v11082_v30  ;;  %v9694_v30 = vld [vmem:[#allocation12 + $0xe0] sm:$0xff]  ;;  %v9676_v9 = vld [vmem:[#allocation12 + $0x50] sm:$0xff] }
 0x3e8   : > { %5987 = vmatpush.bf16.msra.mxu3 %v9697_v18  ;;  %5962 = vmatpush.bf16.msra.mxu1 %v9680_v45  ;;  %v9684_v10 = vld [vmem:[#allocation12 + $0x90] sm:$0xff] }
 0x3e9   : > { %v9692_v35 = vld [vmem:[#allocation12 + $0xd0] sm:$0xff] }
 0x3ea   : > { %5975 = vmatpush.bf16.msra.mxu2 %v9688_v28  ;;  %5950 = vmatpush.bf16.msra.mxu0 %v9671_v4  ;;  %v5408_v0 = vld.sshfl [vmem:[#allocation1] sm:$0xff pattern:$0x73625140] }
 0x3eb   : > { %v5424_v11 = vpack.c.bf16 %v5408_v0, %v5408_v0  ;;  %v9713_v4 = vld [vmem:[#allocation12 + $0x178] sm:$0xff]  ;;  %v9712_v37 = vld [vmem:[#allocation12 + $0x170] sm:$0xff]  ;;  %v9715_v0 = vld [vmem:[#allocation12 + $0x188] sm:$0xff] }
 0x3ec   : > { %5988 = vmatpush.bf16.msra.mxu3 %v9696_v36  ;;  %5963 = vmatpush.bf16.msra.mxu1 %v9679_v26  ;;  %v9705_v36 = vld [vmem:[#allocation12 + $0x138] sm:$0xff]  ;;  %v9720_v60 = vld [vmem:[#allocation12 + $0x1b0] sm:$0xff] }
 0x3ed   : > { %v9721_v26 = vld [vmem:[#allocation12 + $0x1b8] sm:$0xff]  ;;  %v9716_v20 = vld [vmem:[#allocation12 + $0x190] sm:$0xff] }
 0x3ee   : > { %5976 = vmatpush.bf16.msra.mxu2 %v9687_v12  ;;  %5951 = vmatpush.bf16.msra.mxu0 %v9670_v54  ;;  %v5180_v33 = vpop.f32.mrf.mxu0  ;;  %v9704_v54 = vld [vmem:[#allocation12 + $0x130] sm:$0xff] }
 0x3ef   : > { %v5181_v39 = vadd.f32 %v5180_v33, %v5168_v55 }
 0x3f0   : > { %5989 = vmatpush.bf16.msra.mxu3 %v9695_v16  ;;  %5964 = vmatpush.bf16.msra.mxu1 %v9678_v31  ;;  %v5193_v41 = vpop.f32.mrf.mxu1  ;;  %v9729_v16 = vld [vmem:[#allocation12 + $0x1f8] sm:$0xff]  ;;  %v9728_v31 = vld [vmem:[#allocation12 + $0x1f0] sm:$0xff] }
 0x3f1   : > { %v5194_v42 = vadd.f32 %v5193_v41, %v5181_v39 }
 0x3f2   : > { %5977 = vmatpush.bf16.msra.mxu2 %v9686_v24  ;;  %5952 = vmatpush.bf16.msra.mxu0 %v9669_v1  ;;  %v9711_v1 = vld [vmem:[#allocation12 + $0x168] sm:$0xff] }
 0x3f4   : > { %5990 = vmatpush.bf16.msra.mxu3 %v9694_v30  ;;  %5965 = vmatpush.bf16.msra.mxu1 %v9677_v2  ;;  %v9719_v2 = vld [vmem:[#allocation12 + $0x1a8] sm:$0xff] }
 0x3f6   : > { %5978 = vmatpush.bf16.msra.mxu2 %v9685_v3  ;;  %5953 = vmatpush.bf16.msra.mxu0 %v9668_v8  ;;  %v5182_v50 = vpop.f32.mrf.mxu0  ;;  %v9727_v3 = vld [vmem:[#allocation12 + $0x1e8] sm:$0xff]  ;;  %v9726_v8 = vld [vmem:[#allocation12 + $0x1e0] sm:$0xff] }
 0x3f8   : > { %5991 = vmatpush.bf16.msra.mxu3 %v9693_v5  ;;  %5966 = vmatpush.bf16.msra.mxu1 %v9676_v9  ;;  %v5206_v47 = vpop.f32.mrf.mxu2  ;;  %v5195_v44 = vpop.f32.mrf.mxu1  ;;  %v9702_v5 = vld [vmem:[#allocation12 + $0x120] sm:$0xff] }
 0x3f9   : > { %v5207_v52 = vadd.f32 %v5206_v47, %v5194_v42 }
 0x3fa   : > { %5979 = vmatpush.bf16.msra.mxu2 %v9684_v10  ;;  %5954 = vmatpush.bf16.msra.mxu0 %v9667_v14  ;;  %v5219_v48 = vpop.f32.mrf.mxu3  ;;  %v9701_v10 = vld [vmem:[#allocation12 + $0x118] sm:$0xff] }
 0x3fb   : > { %v5220_v63 = vadd.f32 %v5219_v48, %v5207_v52  ;;  %v9717_v14 = vld [vmem:[#allocation12 + $0x198] sm:$0xff] }
 0x3fc   : > { %5992 = vmatpush.bf16.msra.mxu3 %v9692_v35  ;;  %5967 = vmatpush.bf16.msra.mxu1 %v9675_v38  ;;  %v9709_v35 = vld [vmem:[#allocation12 + $0x158] sm:$0xff] }
 0x3fd   : > { %v5390_v46 = vrot.slane %v5220_v63, 6  ;;  %v9725_v38 = vld [vmem:[#allocation12 + $0x1d8] sm:$0xff] }
 0x3fe   : > { %5980 = vmatpush.bf16.msra.mxu2 %v9683_v17  ;;  %5955 = vmatpush.bf16.msra.mxu0 %v9666_v22  ;;  %v9700_v17 = vld [vmem:[#allocation12 + $0x110] sm:$0xff] }
 0x3ff   : > { %v11097_v51 = vsel %vm2415_vm3, %v11093_v62, %v5390_v46  ;;  %v9703_v62 = vld [vmem:[#allocation12 + $0x128] sm:$0xff]  ;;  %v9724_v22 = vld [vmem:[#allocation12 + $0x1d0] sm:$0xff] }
 0x400   : > { %5993 = vmatpush.bf16.msra.mxu3 %v9691_v19  ;;  %5968 = vmatpush.bf16.msra.mxu1 %v9674_v40  ;;  %v5208_v56 = vpop.f32.mrf.mxu2  ;;  %v9708_v19 = vld [vmem:[#allocation12 + $0x150] sm:$0xff] }
 0x401   : > { %5956 = vmatmul.bf16.vlgmr.msra.gmra.mxu0 %v5424_v11  ;;  %v9714_v11 = vld [vmem:[#allocation12 + $0x180] sm:$0xff] }
 0x402   : > { %5981 = vmatpush.bf16.msra.mxu2 %v9682_v23  ;;  %v5221_v49 = vpop.f32.mrf.mxu3  ;;  %6000 = vmatpush.bf16.msrb.mxu0 %v9705_v36  ;;  %v9699_v23 = vld [vmem:[#allocation12 + $0x108] sm:$0xff] }
 0x403   : > { %5969 = vmatmul.bf16.vlgmr.msra.gmra.mxu1 %v5425_v29  ;;  %v9722_v29 = vld [vmem:[#allocation12 + $0x1c0] sm:$0xff] }
 0x404   : > { %5994 = vmatpush.bf16.msra.mxu3 %v9690_v61  ;;  %6013 = vmatpush.bf16.msrb.mxu1 %v9713_v4  ;;  %v9707_v61 = vld [vmem:[#allocation12 + $0x148] sm:$0xff] }
 0x405   : > { %5982 = vmatmul.bf16.vlgmr.msra.gmra.mxu2 %v5426_v34 }
 0x406   : > { %6026 = vmatpush.bf16.msrb.mxu2 %v9721_v26  ;;  %6001 = vmatpush.bf16.msrb.mxu0 %v9704_v54 }
 0x407   : > { %5995 = vmatmul.bf16.vlgmr.msra.gmra.mxu3 %v5427_v32 }
 0x408   : > { %6039 = vmatpush.bf16.msrb.mxu3 %v9729_v16  ;;  %6014 = vmatpush.bf16.msrb.mxu1 %v9712_v37 }
 0x40a   : > { %6027 = vmatpush.bf16.msrb.mxu2 %v9720_v60  ;;  %6002 = vmatpush.bf16.msrb.mxu0 %v9703_v62 }
 0x40c   : > { %6040 = vmatpush.bf16.msrb.mxu3 %v9728_v31  ;;  %6015 = vmatpush.bf16.msrb.mxu1 %v9711_v1 }
 0x40e   : > { %v11099_v43 = vpop.f32.mrf.mxu0  ;;  %6028 = vmatpush.bf16.msrb.mxu2 %v9719_v2  ;;  %6003 = vmatpush.bf16.msrb.mxu0 %v9702_v5 }
 0x410   : > { %v11101_v15 = vpop.f32.mrf.mxu1  ;;  %6041 = vmatpush.bf16.msrb.mxu3 %v9727_v3  ;;  %6016 = vmatpush.bf16.msrb.mxu1 %v9710_v6 }
 0x411   : > { %v5246_v34 = vadd.f32 %v11101_v15, %v11099_v43 }
 0x412   : > { %6029 = vmatpush.bf16.msrb.mxu2 %v9718_v25  ;;  %6004 = vmatpush.bf16.msrb.mxu0 %v9701_v10 }
 0x414   : > { %6042 = vmatpush.bf16.msrb.mxu3 %v9726_v8  ;;  %6017 = vmatpush.bf16.msrb.mxu1 %v9709_v35 }
 0x416   : > { %v5234_v57 = vpop.f32.mrf.mxu0  ;;  %6030 = vmatpush.bf16.msrb.mxu2 %v9717_v14  ;;  %6005 = vmatpush.bf16.msrb.mxu0 %v9700_v17 }
 0x418   : > { %v11103_v18 = vpop.f32.mrf.mxu2  ;;  %v5247_v28 = vpop.f32.mrf.mxu1  ;;  %6043 = vmatpush.bf16.msrb.mxu3 %v9725_v38  ;;  %6018 = vmatpush.bf16.msrb.mxu1 %v9708_v19 }
 0x419   : > { %v5259_v32 = vadd.f32 %v11103_v18, %v5246_v34  ;;  %v2435_v18 = vld [vmem:[#allocation2 + $0x8] sm:$0xff] }
 0x41a   : > { %6031 = vmatpush.bf16.msrb.mxu2 %v9716_v20  ;;  %6006 = vmatpush.bf16.msrb.mxu0 %v9699_v23 }
 0x41c   : > { %6044 = vmatpush.bf16.msrb.mxu3 %v9724_v22  ;;  %6019 = vmatpush.bf16.msrb.mxu1 %v9707_v61 }
 0x41e   : > { %6032 = vmatpush.bf16.msrb.mxu2 %v9715_v0  ;;  %6007 = vmatpush.bf16.msrb.mxu0 %v9698_v27 }
 0x420   : > { %v11105_v45 = vpop.f32.mrf.mxu3  ;;  %v5260_v12 = vpop.f32.mrf.mxu2  ;;  %6045 = vmatpush.bf16.msrb.mxu3 %v9723_v59  ;;  %6020 = vmatpush.bf16.msrb.mxu1 %v9706_v13 }
 0x421   : > { %v5272_v33 = vadd.f32 %v11105_v45, %v5259_v32  ;;  %v9840_v12 = vld [vmem:[#allocation13] ss:$0 sm:$0xff] }
 0x422   : > { %6033 = vmatpush.bf16.msrb.mxu2 %v9714_v11 }
 0x424   : > { %6046 = vmatpush.bf16.msrb.mxu3 %v9722_v29 }
 0x428   : > { %v5273_v58 = vpop.f32.mrf.mxu3 }
 0x433   : > { %v11107_v24 = vpop.f32.mrf.mxu0 }
 0x434   : > { %v5285_v52 = vadd.f32 %v11107_v24, %v5272_v33 }
 0x435   : > { %v11109_v30 = vpop.f32.mrf.mxu1 }
 0x436   : > { %v5298_v50 = vadd.f32 %v11109_v30, %v5285_v52 }
 0x438   : > { %v5310_v7 = vpop.f32.mrf.mxu2  ;;  %v5391_v15 = vrot.slane %v5298_v50, 4 }
 0x43a   : > { %v5323_v55 = vpop.f32.mrf.mxu3 }
 0x43b   : > { %v5286_v53 = vpop.f32.mrf.mxu0  ;;  %v5324_v39 = vadd.f32 %v5323_v55, %v5310_v7 }
 0x43d   : > { %v5299_v9 = vpop.f32.mrf.mxu1 }
 0x440   : > { %v5312_v21 = vpop.f32.mrf.mxu2 }
 0x442   : > { %v5325_v40 = vpop.f32.mrf.mxu3 }
 0x45e   : > { %v5336_v41 = vpop.f32.mrf.mxu0 }
 0x45f   : > { %v5337_v47 = vadd.f32 %v5336_v41, %v5324_v39 }
 0x460   : > { %v5349_v42 = vpop.f32.mrf.mxu1 }
 0x461   : > { %v5350_v48 = vadd.f32 %v5349_v42, %v5337_v47 }
 0x466   : > { %v5338_v56 = vpop.f32.mrf.mxu0 }
 0x468   : > { %v5362_v63 = vpop.f32.mrf.mxu2  ;;  %v5351_v49 = vpop.f32.mrf.mxu1 }
 0x469   : > { %v5363_v44 = vadd.f32 %v5362_v63, %v5350_v48 }
 0x46a   : > { %v5375_v46 = vpop.f32.mrf.mxu3 }
 0x46b   : > { %v5376_v43 = vadd.f32 %v5375_v46, %v5363_v44 }
 0x46d   : > { %v5392_v57 = vrot.slane %v5376_v43, 2 }
 0x46f   : > { %v5397_v45 = vsel %vm2417_vm4, %v5391_v15, %v5392_v57 }
 0x470   : > { %v5398_v28 = vsel %vm2419_vm5, %v11097_v51, %v5397_v45  ;;  %v5364_v36 = vpop.f32.mrf.mxu2 }
 0x471   : > { %v5402_v4 = vadd.f32 %v5398_v28, %v2435_v18 }
 0x472   : > { %v5377_v26 = vpop.f32.mrf.mxu3 }
 0x473   : > { %5407 = vst [vmem:[#allocation1 + $0x20] ss:$4 sm:$0xff] %v5402_v4 }
 0x47a   : > { %v5412_v16 = vld.sshfl [vmem:[#allocation1 + $0x20] sm:$0xff pattern:$0x73625140]  ;;  %v5413_v58 = vld.sshfl [vmem:[#allocation1 + $0x28] sm:$0xff pattern:$0x73625140] }
 0x47b   : > { %v5428_v54 = vpack.c.bf16 %v5412_v16, %v5412_v16  ;;  %v5429_v37 = vpack.c.bf16 %v5413_v58, %v5413_v58  ;;  %v5414_v60 = vld.sshfl [vmem:[#allocation1 + $0x30] sm:$0xff pattern:$0x73625140]  ;;  %v5415_v31 = vld.sshfl [vmem:[#allocation1 + $0x38] sm:$0xff pattern:$0x73625140] }
 0x47c   : > { %v5430_v24 = vpack.c.bf16 %v5414_v60, %v5414_v60  ;;  %v5431_v30 = vpack.c.bf16 %v5415_v31, %v5415_v31 }
 0x47d   : > { %6008 = vmatmul.bf16.vlgmr.msrb.gmra.mxu0 %v5428_v54  ;;  %6021 = vmatmul.bf16.vlgmr.msrb.gmra.mxu1 %v5429_v37 }
 0x47e   : > { %6034 = vmatmul.bf16.vlgmr.msrb.gmra.mxu2 %v5430_v24  ;;  %6047 = vmatmul.bf16.vlgmr.msrb.gmra.mxu3 %v5431_v30  ;;  %v5957_v62 = vpop.f32.mrf.mxu0 }
 0x47f   : > { %v5958_v1 = vadd.f32 %v9840_v12, %v5957_v62 }
 0x480   : > { %v5970_v51 = vpop.f32.mrf.mxu1 }
 0x481   : > { %v5971_v2 = vadd.f32 %v5970_v51, %v5958_v1 }
 0x486   : > { %v5959_v7 = vpop.f32.mrf.mxu0 }
 0x488   : > { %v5983_v3 = vpop.f32.mrf.mxu2  ;;  %v5972_v25 = vpop.f32.mrf.mxu1 }
 0x489   : > { %v5984_v5 = vadd.f32 %v5983_v3, %v5971_v2 }
 0x48a   : > { %v5996_v6 = vpop.f32.mrf.mxu3 }
 0x48b   : > { %v5997_v8 = vadd.f32 %v5996_v6, %v5984_v5 }
 0x490   : > { %v5985_v55 = vpop.f32.mrf.mxu2 }
 0x492   : > { %v5998_v53 = vpop.f32.mrf.mxu3 }
 0x4fa   : > { %v6009_v9 = vpop.f32.mrf.mxu0  ;;  %v6022_v10 = vpop.f32.mrf.mxu1 }
 0x4fb   : > { %v6010_v35 = vadd.f32 %v6009_v9, %v5997_v8 }
 0x4fd   : > { %v6023_v14 = vadd.f32 %v6022_v10, %v6010_v35 }
 0x501   : > { %v6035_v38 = vpop.f32.mrf.mxu2  ;;  %v6048_v17 = vpop.f32.mrf.mxu3 }
 0x502   : > { %v6036_v19 = vadd.f32 %v6035_v38, %v6023_v14  ;;  %v6011_v20 = vpop.f32.mrf.mxu0  ;;  %v6024_v21 = vpop.f32.mrf.mxu1 }
 0x504   : > { %v6049_v22 = vadd.f32 %v6048_v17, %v6036_v19 }
 0x506   : > { %6052 = vst [vmem:[#allocation15] sm:$0x3] %v6049_v22 }
 0x509   : > { %v6037_v40 = vpop.f32.mrf.mxu2  ;;  %v6050_v23 = vpop.f32.mrf.mxu3 }
 0x50a PF: > { %p9792_p3 = scmp.eq.s32.totalorder %s10223_s8, 3  ;;  %s10158_s22 = smov [#allocation15]  }
 0x50b   : > { %s6059_s17 = sshll.u32 %s10158_s22, 4  ;;  %s6061_s19 = sshll.u32 %s11144_s7, 4  ;;  %s6060_s17 = int_to_ptr.vmem [resolvable:$true] %s6059_s17  ;;  %s6062_s19 = int_to_ptr.hbm [resolvable:$true] %s6061_s19 }
 0x50c   : > { %9755 = dma.vmem_to_hbm [thread:$0]  (%p9792_p3), %s6060_s17, 32, %s6062_s19, [#allocation5]  }
 0x50d   : > { %10130 = dma.done.wait (%p9792_p3), [#allocation5], 32  }
 0x50e   : > { %10132 = vsyncadd (%p9792_p3), [#allocation5], 4294967264 }
 0x50f PF: > { %p21_p4 = scmp.ge.s32.totalorder %s10249_s18, 6   ;;  %s11161_s24 = smov %s10139_s25 }
 0x510   : > { %s11162_s25 = smov %s10143_s26  ;;  %s11163_s26 = smov %s10261_s21 }
 0x511   : > { %s11164_s27 = smov %s10249_s18  ;;  %23 = sbr.rel (!%p21_p4) target bundleno = 10 (0xa), region = 125 }
 0x516   :  { %6075 = vsyncpa [#allocation4], 1 }
 0x517   :  { %6077 = vsyncpa [#allocation4 + $0x1], 1 }
 0x518   :  { %6078 = vsyncpa [#allocation7], 1 }
 0x519   :  { %6079 = vsyncpa [#allocation11], 1 }
 0x51a   :  { %6080 = vsyncpa [#allocation14], 1 }
 0x51b   :  { %6081 = vsyncpa [#allocation5], 1 }
 0x51c   :  { %6083 = vsyncpa [#allocation5 + $0x1], 1 }

</bundles_post_ra>
